<compile_context>
chip_gen: v6e
topology: v6e:2x2x1
jax: 0.10.0
libtpu: 0.0.40
codegen_flags: <defaults>
</compile_context>

<pallas_src>
import jax
import jax.numpy as jnp
import numpy as np
from jax.experimental import pallas as pl
from jax.experimental.pallas import tpu as pltpu

EPS = 1e-5
COMPUTE_DTYPE = jnp.bfloat16      # MXU input dtype (accumulation is always f32)


def _compiler_params():
    return pltpu.CompilerParams(
        dimension_semantics=("parallel",),
        vmem_limit_bytes=32 * 1024 * 1024,
    )


# ---------------------------------------------------------------------------
# K1: conv1 (1x1) and extra_conv (1x1) on x, plus per-tile BN partial sums.
# ---------------------------------------------------------------------------
def _conv1_res_kernel(x_ref, w1_ref, wr_ref, y1_ref, yr_ref, st_ref):
    x = x_ref[...].astype(COMPUTE_DTYPE)
    y1 = jnp.dot(x, w1_ref[...].astype(COMPUTE_DTYPE),
                 preferred_element_type=jnp.float32)
    yr = jnp.dot(x, wr_ref[...].astype(COMPUTE_DTYPE),
                 preferred_element_type=jnp.float32)
    y1_ref[...] = y1
    yr_ref[...] = yr
    p = y1.shape[1]
    st = jnp.concatenate(
        [jnp.sum(y1, axis=0, keepdims=True),
         jnp.sum(y1 * y1, axis=0, keepdims=True),
         jnp.sum(yr, axis=0, keepdims=True),
         jnp.sum(yr * yr, axis=0, keepdims=True),
         jnp.zeros((4, p), jnp.float32)], axis=0)
    st_ref[...] = st.reshape((1,) + st.shape)


# ---------------------------------------------------------------------------
# K2: BN1+ReLU fold -> dilated 3x3 conv (dilation=2, padding=2) as one im2col
#     matmul, plus per-image BN2 partial sums.
# ---------------------------------------------------------------------------
def _conv2_dilated_kernel(y1_ref, s1_ref, b1_ref, w2_ref, y2_ref, st_ref, col_ref):
    _, H, W, P = y1_ref.shape
    h1 = jnp.maximum(y1_ref[...][0] * s1_ref[...] + b1_ref[...], 0.0)  # (H,W,P) f32

    # im2col: tap k = ky*3 + kx reads input at (y + 2*(ky-1), x + 2*(kx-1));
    # out-of-range taps are zero (padding=2).  Boundary zeros come from the
    # single scratch init; each tap is one shifted sub-window store.
    col_ref[...] = jnp.zeros_like(col_ref)
    k = 0
    for dy in (-2, 0, 2):
        for dx in (-2, 0, 2):
            dy0, dy1 = max(0, -dy), H - max(0, dy)
            dx0, dx1 = max(0, -dx), W - max(0, dx)
            sy0, sy1 = max(0, dy), H - max(0, -dy)
            sx0, sx1 = max(0, dx), W - max(0, -dx)
            col_ref[dy0:dy1, dx0:dx1, k * P:(k + 1) * P] = h1[sy0:sy1, sx0:sx1, :]
            k += 1

    col = col_ref[...].reshape(H * W, 9 * P).astype(COMPUTE_DTYPE)
    y2 = jnp.dot(col, w2_ref[...].astype(COMPUTE_DTYPE),
                 preferred_element_type=jnp.float32)               # (H*W, P)
    y2_ref[...] = y2.reshape(1, H, W, P)
    st = jnp.concatenate(
        [jnp.sum(y2, axis=0, keepdims=True),
         jnp.sum(y2 * y2, axis=0, keepdims=True),
         jnp.zeros((6, P), jnp.float32)], axis=0)
    st_ref[...] = st.reshape((1,) + st.shape)


# ---------------------------------------------------------------------------
# K3: BN2+ReLU fold -> conv3 (1x1) matmul, plus per-tile BN3 partial sums.
# ---------------------------------------------------------------------------
def _conv3_kernel(y2_ref, s2_ref, b2_ref, w3_ref, y3_ref, st_ref):
    h2 = jnp.maximum(y2_ref[...] * s2_ref[...] + b2_ref[...], 0.0)
    y3 = jnp.dot(h2.astype(COMPUTE_DTYPE), w3_ref[...].astype(COMPUTE_DTYPE),
                 preferred_element_type=jnp.float32)
    y3_ref[...] = y3
    p = y3.shape[1]
    st = jnp.concatenate(
        [jnp.sum(y3, axis=0, keepdims=True),
         jnp.sum(y3 * y3, axis=0, keepdims=True),
         jnp.zeros((6, p), jnp.float32)], axis=0)
    st_ref[...] = st.reshape((1,) + st.shape)


# ---------------------------------------------------------------------------
# K4: BN3 affine + BN_r affine + residual add + final ReLU (elementwise).
# ---------------------------------------------------------------------------
def _finalize_kernel(y3_ref, yr_ref, s3_ref, b3_ref, sr_ref, br_ref, out_ref):
    main = y3_ref[...] * s3_ref[...] + b3_ref[...]
    res = yr_ref[...] * sr_ref[...] + br_ref[...]
    out_ref[...] = jnp.maximum(main + res, 0.0)


# ---------------------------------------------------------------------------
# Wrapper: orchestrates the 4 kernels; tiny (P,)-sized BN-fold glue in between.
# ---------------------------------------------------------------------------
def _bn_fold(chan_sum, chan_sumsq, count, gamma, beta):
    mean = chan_sum / count
    var = chan_sumsq / count - mean * mean        # biased variance (training BN)
    scale = gamma * jax.lax.rsqrt(var + EPS)
    shift = beta - mean * scale
    return scale.reshape(1, -1), shift.reshape(1, -1)


def bottleneck_b_pallas(x_nhwc, params, *, row_tile=256):
    N, H, W, Cin = x_nhwc.shape
    P = params["w1"].shape[1]
    assert H > 4 and W > 4, "dilation-2 taps need spatial dims > 4"
    R = N * H * W
    assert R % row_tile == 0 and row_tile % 8 == 0
    nt = R // row_tile
    count = jnp.float32(R)
    cp = _compiler_params()

    x2d = x_nhwc.reshape(R, Cin)

    # --- K1: conv1 + extra_conv ---------------------------------------------
    y1, yr, st1 = pl.pallas_call(
        _conv1_res_kernel,
        grid=(nt,),
        in_specs=[
            pl.BlockSpec((row_tile, Cin), lambda i: (i, 0)),
            pl.BlockSpec((Cin, P), lambda i: (0, 0)),
            pl.BlockSpec((Cin, P), lambda i: (0, 0)),
        ],
        out_specs=(
            pl.BlockSpec((row_tile, P), lambda i: (i, 0)),
            pl.BlockSpec((row_tile, P), lambda i: (i, 0)),
            pl.BlockSpec((1, 8, P), lambda i: (i, 0, 0)),
        ),
        out_shape=(
            jax.ShapeDtypeStruct((R, P), jnp.float32),
            jax.ShapeDtypeStruct((R, P), jnp.float32),
            jax.ShapeDtypeStruct((nt, 8, P), jnp.float32),
        ),
        compiler_params=cp,
        cost_estimate=pl.CostEstimate(
            flops=4 * R * Cin * P, transcendentals=0,
            bytes_accessed=4 * (R * Cin + 2 * R * P + 2 * Cin * P)),
    )(x2d, params["w1"], params["wr"])

    s1 = jnp.sum(st1, axis=0)
    scale1, shift1 = _bn_fold(s1[0], s1[1], count, params["g1"], params["b1"])
    scaler, shiftr = _bn_fold(s1[2], s1[3], count, params["gr"], params["br"])

    # --- K2: dilated 3x3 conv -------------------------------------------------
    w2_flat = params["w2"].reshape(9 * P, P)
    y2, st2 = pl.pallas_call(
        _conv2_dilated_kernel,
        grid=(N,),
        in_specs=[
            pl.BlockSpec((1, H, W, P), lambda n: (n, 0, 0, 0)),
            pl.BlockSpec((1, P), lambda n: (0, 0)),
            pl.BlockSpec((1, P), lambda n: (0, 0)),
            pl.BlockSpec((9 * P, P), lambda n: (0, 0)),
        ],
        out_specs=(
            pl.BlockSpec((1, H, W, P), lambda n: (n, 0, 0, 0)),
            pl.BlockSpec((1, 8, P), lambda n: (n, 0, 0)),
        ),
        out_shape=(
            jax.ShapeDtypeStruct((N, H, W, P), jnp.float32),
            jax.ShapeDtypeStruct((N, 8, P), jnp.float32),
        ),
        scratch_shapes=[pltpu.VMEM((H, W, 9 * P), jnp.float32)],
        compiler_params=cp,
        cost_estimate=pl.CostEstimate(
            flops=2 * R * 9 * P * P, transcendentals=0,
            bytes_accessed=4 * (2 * R * P + 9 * P * P)),
    )(y1.reshape(N, H, W, P), scale1, shift1, w2_flat)

    s2 = jnp.sum(st2, axis=0)
    scale2, shift2 = _bn_fold(s2[0], s2[1], count, params["g2"], params["b2"])

    # --- K3: conv3 -------------------------------------------------------------
    y3, st3 = pl.pallas_call(
        _conv3_kernel,
        grid=(nt,),
        in_specs=[
            pl.BlockSpec((row_tile, P), lambda i: (i, 0)),
            pl.BlockSpec((1, P), lambda i: (0, 0)),
            pl.BlockSpec((1, P), lambda i: (0, 0)),
            pl.BlockSpec((P, P), lambda i: (0, 0)),
        ],
        out_specs=(
            pl.BlockSpec((row_tile, P), lambda i: (i, 0)),
            pl.BlockSpec((1, 8, P), lambda i: (i, 0, 0)),
        ),
        out_shape=(
            jax.ShapeDtypeStruct((R, P), jnp.float32),
            jax.ShapeDtypeStruct((nt, 8, P), jnp.float32),
        ),
        compiler_params=cp,
        cost_estimate=pl.CostEstimate(
            flops=2 * R * P * P, transcendentals=0,
            bytes_accessed=4 * (2 * R * P + P * P)),
    )(y2.reshape(R, P), scale2, shift2, params["w3"])

    s3 = jnp.sum(st3, axis=0)
    scale3, shift3 = _bn_fold(s3[0], s3[1], count, params["g3"], params["b3"])

    # --- K4: BN3 + BN_r + residual add + ReLU ----------------------------------
    out2d = pl.pallas_call(
        _finalize_kernel,
        grid=(nt,),
        in_specs=[
            pl.BlockSpec((row_tile, P), lambda i: (i, 0)),
            pl.BlockSpec((row_tile, P), lambda i: (i, 0)),
            pl.BlockSpec((1, P), lambda i: (0, 0)),
            pl.BlockSpec((1, P), lambda i: (0, 0)),
            pl.BlockSpec((1, P), lambda i: (0, 0)),
            pl.BlockSpec((1, P), lambda i: (0, 0)),
        ],
        out_specs=pl.BlockSpec((row_tile, P), lambda i: (i, 0)),
        out_shape=jax.ShapeDtypeStruct((R, P), jnp.float32),
        compiler_params=cp,
        cost_estimate=pl.CostEstimate(
            flops=4 * R * P, transcendentals=0,
            bytes_accessed=4 * 3 * R * P),
    )(y3, yr, scale3, shift3, scaler, shiftr)

    return out2d.reshape(N, H, W, P)


# ---------------------------------------------------------------------------
# Pure-JAX reference (lax.conv for the dilated 3x3).  It mirrors the kernel's
# bf16-input / f32-accumulate matmul precision so the comparison is tight.
# ---------------------------------------------------------------------------
def bottleneck_b_ref(x_nhwc, params):
    def bn(h, g, b):
        m = jnp.mean(h, axis=(0, 1, 2), keepdims=True)
        v = jnp.mean((h - m) ** 2, axis=(0, 1, 2), keepdims=True)
        return (h - m) * jax.lax.rsqrt(v + EPS) * g.reshape(1, 1, 1, -1) \
            + b.reshape(1, 1, 1, -1)

    def conv1x1(h, w):
        return jnp.einsum("nhwc,cp->nhwp",
                          h.astype(COMPUTE_DTYPE), w.astype(COMPUTE_DTYPE),
                          preferred_element_type=jnp.float32)

    P = params["w1"].shape[1]
    h = jax.nn.relu(bn(conv1x1(x_nhwc, params["w1"]), params["g1"], params["b1"]))
    w2_hwio = params["w2"].reshape(3, 3, P, P)
    h2 = jax.lax.conv_general_dilated(
        h.astype(COMPUTE_DTYPE), w2_hwio.astype(COMPUTE_DTYPE),
        window_strides=(1, 1), padding=((2, 2), (2, 2)), rhs_dilation=(2, 2),
        dimension_numbers=("NHWC", "HWIO", "NHWC"),
        preferred_element_type=jnp.float32)
    h = jax.nn.relu(bn(h2, params["g2"], params["b2"]))
    h = bn(conv1x1(h, params["w3"]), params["g3"], params["b3"])
    res = bn(conv1x1(x_nhwc, params["wr"]), params["gr"], params["br"])
    return jax.nn.relu(h + res)


def make_params(key, inplanes, planes):
    ks = jax.random.split(key, 12)
    f32 = jnp.float32
    return {
        # Conv weights stored in matmul layout (Cin, Cout); the dilated 3x3
        # conv2 as (9, Cin, Cout) indexed by tap k = ky*3 + kx
        # (== torch conv2.weight[:, :, ky, kx].T).  "wr" is extra_conv's 1x1.
        "w1": 0.2 * jax.random.normal(ks[0], (inplanes, planes), f32),
        "w2": 0.2 * jax.random.normal(ks[1], (9, planes, planes), f32),
        "w3": 0.2 * jax.random.normal(ks[2], (planes, planes), f32),
        "wr": 0.2 * jax.random.normal(ks[3], (inplanes, planes), f32),
        "g1": 1.0 + 0.1 * jax.random.normal(ks[4], (planes,), f32),
        "b1": 0.1 * jax.random.normal(ks[5], (planes,), f32),
        "g2": 1.0 + 0.1 * jax.random.normal(ks[6], (planes,), f32),
        "b2": 0.1 * jax.random.normal(ks[7], (planes,), f32),
        "g3": 1.0 + 0.1 * jax.random.normal(ks[8], (planes,), f32),
        "b3": 0.1 * jax.random.normal(ks[9], (planes,), f32),
        "gr": 1.0 + 0.1 * jax.random.normal(ks[10], (planes,), f32),
        "br": 0.1 * jax.random.normal(ks[11], (planes,), f32),
    }


if __name__ == "__main__":
    # Small but lane-dense shapes: batch=2, inplanes=planes=128 (BottleneckB
    # expansion = 1, so output channels == planes), spatial 16x16.
    N, inplanes, planes, H, W = 2, 128, 128, 16, 16

    key = jax.random.PRNGKey(0)
    k_x, k_p = jax.random.split(key)
    x_nchw = jax.random.normal(k_x, (N, inplanes, H, W), jnp.float32)  # torch layout
    x_nhwc = jnp.transpose(x_nchw, (0, 2, 3, 1))                        # kernel layout
    params = make_params(k_p, inplanes, planes)

    run = jax.jit(bottleneck_b_pallas)
    out = jax.block_until_ready(run(x_nhwc, params))

    ref = jax.block_until_ready(bottleneck_b_ref(x_nhwc, params))
    np.testing.assert_allclose(np.asarray(out), np.asarray(ref),
                               rtol=5e-3, atol=5e-3)
    print("KERNEL_OK")
</pallas_src>

<mosaic_0001>
module attributes {stable_mosaic.version = 11 : i64} {
  func.func @_conv1_res_kernel(%arg0: i32, %arg1: memref<256x128xf32, #tpu.memory_space<vmem>>, %arg2: memref<128x128xf32, #tpu.memory_space<vmem>>, %arg3: memref<128x128xf32, #tpu.memory_space<vmem>>, %arg4: memref<256x128xf32, #tpu.memory_space<vmem>>, %arg5: memref<256x128xf32, #tpu.memory_space<vmem>>, %arg6: memref<1x8x128xf32, #tpu.memory_space<vmem>>) attributes {dimension_semantics = [#tpu.dimension_semantics<parallel>], iteration_bounds = array<i64: 2>, scalar_prefetch = 0 : i64, scratch_operands = 0 : i64, tpu.core_type = #tpu.core_type<tc>, window_params = [{transform_indices = @transform_0, window_bounds = array<i64: 256, 128>}, {pipeline_mode = #tpu.pipeline_mode<synchronous>, transform_indices = @transform_1, window_bounds = array<i64: 128, 128>}, {pipeline_mode = #tpu.pipeline_mode<synchronous>, transform_indices = @transform_2, window_bounds = array<i64: 128, 128>}, {transform_indices = @transform_3, window_bounds = array<i64: 256, 128>}, {transform_indices = @transform_4, window_bounds = array<i64: 256, 128>}, {transform_indices = @transform_5, window_bounds = array<i64: 1, 8, 128>}]} {
    %c0 = arith.constant 0 : index
    %c0_0 = arith.constant 0 : index
    %0 = vector.load %arg1[%c0, %c0_0] : memref<256x128xf32, #tpu.memory_space<vmem>>, vector<256x128xf32>
    %1 = arith.truncf %0 : vector<256x128xf32> to vector<256x128xbf16>
    %c0_1 = arith.constant 0 : index
    %c0_2 = arith.constant 0 : index
    %2 = vector.load %arg2[%c0_1, %c0_2] : memref<128x128xf32, #tpu.memory_space<vmem>>, vector<128x128xf32>
    %3 = arith.truncf %2 : vector<128x128xf32> to vector<128x128xbf16>
    %cst = arith.constant dense<0.000000e+00> : vector<256x128xf32>
    %4 = tpu.matmul %1, %3, %cst {dimension_numbers = #tpu.dot_dimension_numbers<[1], [0], [0], [1], [0, 0, 1, 1], [], []>} : vector<256x128xbf16>, vector<128x128xbf16>, vector<256x128xf32> -> vector<256x128xf32>
    %c0_3 = arith.constant 0 : index
    %c0_4 = arith.constant 0 : index
    %5 = vector.load %arg3[%c0_3, %c0_4] : memref<128x128xf32, #tpu.memory_space<vmem>>, vector<128x128xf32>
    %6 = arith.truncf %5 : vector<128x128xf32> to vector<128x128xbf16>
    %cst_5 = arith.constant dense<0.000000e+00> : vector<256x128xf32>
    %7 = tpu.matmul %1, %6, %cst_5 {dimension_numbers = #tpu.dot_dimension_numbers<[1], [0], [0], [1], [0, 0, 1, 1], [], []>} : vector<256x128xbf16>, vector<128x128xbf16>, vector<256x128xf32> -> vector<256x128xf32>
    %c0_6 = arith.constant 0 : index
    %c0_7 = arith.constant 0 : index
    %8 = vector.load %arg4[%c0_6, %c0_7] : memref<256x128xf32, #tpu.memory_space<vmem>>, vector<256x128xf32>
    tpu.vector_store %arg4[%c0_6, %c0_7], %4 {strides = array<i32>} : memref<256x128xf32, #tpu.memory_space<vmem>>, vector<256x128xf32>,
    %c0_8 = arith.constant 0 : index
    %c0_9 = arith.constant 0 : index
    %9 = vector.load %arg5[%c0_8, %c0_9] : memref<256x128xf32, #tpu.memory_space<vmem>>, vector<256x128xf32>
    tpu.vector_store %arg5[%c0_8, %c0_9], %7 {strides = array<i32>} : memref<256x128xf32, #tpu.memory_space<vmem>>, vector<256x128xf32>,
    %cst_10 = arith.constant dense<0.000000e+00> : vector<128xf32>
    %10 = vector.multi_reduction <add>, %4, %cst_10 [0] : vector<256x128xf32> to vector<128xf32>
    %11 = vector.shape_cast %10 : vector<128xf32> to vector<1x128xf32>
    %12 = arith.mulf %4, %4 : vector<256x128xf32>
    %cst_11 = arith.constant dense<0.000000e+00> : vector<128xf32>
    %13 = vector.multi_reduction <add>, %12, %cst_11 [0] : vector<256x128xf32> to vector<128xf32>
    %14 = vector.shape_cast %13 : vector<128xf32> to vector<1x128xf32>
    %cst_12 = arith.constant dense<0.000000e+00> : vector<128xf32>
    %15 = vector.multi_reduction <add>, %7, %cst_12 [0] : vector<256x128xf32> to vector<128xf32>
    %16 = vector.shape_cast %15 : vector<128xf32> to vector<1x128xf32>
    %17 = arith.mulf %7, %7 : vector<256x128xf32>
    %cst_13 = arith.constant dense<0.000000e+00> : vector<128xf32>
    %18 = vector.multi_reduction <add>, %17, %cst_13 [0] : vector<256x128xf32> to vector<128xf32>
    %19 = vector.shape_cast %18 : vector<128xf32> to vector<1x128xf32>
    %cst_14 = arith.constant 0.000000e+00 : f32
    %20 = vector.broadcast %cst_14 : f32 to vector<4x128xf32>
    %21 = tpu.concatenate %11, %14, %16, %19, %20 in 0 : vector<1x128xf32>, vector<1x128xf32>, vector<1x128xf32>, vector<1x128xf32>, vector<4x128xf32> -> vector<8x128xf32>
    %22 = vector.shape_cast %21 : vector<8x128xf32> to vector<1x8x128xf32>
    %c0_15 = arith.constant 0 : index
    %c0_16 = arith.constant 0 : index
    %c0_17 = arith.constant 0 : index
    %23 = vector.load %arg6[%c0_15, %c0_16, %c0_17] : memref<1x8x128xf32, #tpu.memory_space<vmem>>, vector<1x8x128xf32>
    tpu.vector_store %arg6[%c0_15, %c0_16, %c0_17], %22 {strides = array<i32>} : memref<1x8x128xf32, #tpu.memory_space<vmem>>, vector<1x8x128xf32>,
    return
  }
  func.func @transform_0(%arg0: i32) -> (i32, i32) {
    %c0_i32 = arith.constant 0 : i32
    %c0_i32_0 = arith.constant 0 : i32
    return %arg0, %c0_i32 : i32, i32
  }
  func.func @transform_1(%arg0: i32) -> (i32, i32) {
    %c0_i32 = arith.constant 0 : i32
    %c0_i32_0 = arith.constant 0 : i32
    %c0_i32_1 = arith.constant 0 : i32
    return %c0_i32, %c0_i32_0 : i32, i32
  }
  func.func @transform_2(%arg0: i32) -> (i32, i32) {
    %c0_i32 = arith.constant 0 : i32
    %c0_i32_0 = arith.constant 0 : i32
    %c0_i32_1 = arith.constant 0 : i32
    return %c0_i32, %c0_i32_0 : i32, i32
  }
  func.func @transform_3(%arg0: i32) -> (i32, i32) {
    %c0_i32 = arith.constant 0 : i32
    %c0_i32_0 = arith.constant 0 : i32
    return %arg0, %c0_i32 : i32, i32
  }
  func.func @transform_4(%arg0: i32) -> (i32, i32) {
    %c0_i32 = arith.constant 0 : i32
    %c0_i32_0 = arith.constant 0 : i32
    return %arg0, %c0_i32 : i32, i32
  }
  func.func @transform_5(%arg0: i32) -> (i32, i32, i32) {
    %c0_i32 = arith.constant 0 : i32
    %c0_i32_0 = arith.constant 0 : i32
    %c0_i32_1 = arith.constant 0 : i32
    return %arg0, %c0_i32, %c0_i32_0 : i32, i32, i32
  }
}

module attributes {stable_mosaic.version = 11 : i64} {
  func.func @_conv2_dilated_kernel(%arg0: i32, %arg1: memref<1x16x16x128xf32, #tpu.memory_space<vmem>>, %arg2: memref<1x128xf32, #tpu.memory_space<vmem>>, %arg3: memref<1x128xf32, #tpu.memory_space<vmem>>, %arg4: memref<1152x128xf32, #tpu.memory_space<vmem>>, %arg5: memref<1x16x16x128xf32, #tpu.memory_space<vmem>>, %arg6: memref<1x8x128xf32, #tpu.memory_space<vmem>>, %arg7: memref<16x16x1152xf32, #tpu.memory_space<vmem>>) attributes {dimension_semantics = [#tpu.dimension_semantics<parallel>], iteration_bounds = array<i64: 2>, scalar_prefetch = 0 : i64, scratch_operands = 1 : i64, tpu.core_type = #tpu.core_type<tc>, window_params = [{transform_indices = @transform_0, window_bounds = array<i64: 1, 16, 16, 128>}, {pipeline_mode = #tpu.pipeline_mode<synchronous>, transform_indices = @transform_1, window_bounds = array<i64: 1, 128>}, {pipeline_mode = #tpu.pipeline_mode<synchronous>, transform_indices = @transform_2, window_bounds = array<i64: 1, 128>}, {pipeline_mode = #tpu.pipeline_mode<synchronous>, transform_indices = @transform_3, window_bounds = array<i64: 1152, 128>}, {transform_indices = @transform_4, window_bounds = array<i64: 1, 16, 16, 128>}, {transform_indices = @transform_5, window_bounds = array<i64: 1, 8, 128>}]} {
    %c0 = arith.constant 0 : index
    %c0_0 = arith.constant 0 : index
    %c0_1 = arith.constant 0 : index
    %c0_2 = arith.constant 0 : index
    %0 = vector.load %arg1[%c0, %c0_0, %c0_1, %c0_2] : memref<1x16x16x128xf32, #tpu.memory_space<vmem>>, vector<1x16x16x128xf32>
    %1 = vector.shape_cast %0 : vector<1x16x16x128xf32> to vector<16x16x128xf32>
    %c0_3 = arith.constant 0 : index
    %c0_4 = arith.constant 0 : index
    %2 = vector.load %arg2[%c0_3, %c0_4] : memref<1x128xf32, #tpu.memory_space<vmem>>, vector<1x128xf32>
    %3 = vector.shape_cast %2 : vector<1x128xf32> to vector<1x1x128xf32>
    %4 = vector.broadcast %3 : vector<1x1x128xf32> to vector<16x16x128xf32>
    %5 = arith.mulf %1, %4 : vector<16x16x128xf32>
    %c0_5 = arith.constant 0 : index
    %c0_6 = arith.constant 0 : index
    %6 = vector.load %arg3[%c0_5, %c0_6] : memref<1x128xf32, #tpu.memory_space<vmem>>, vector<1x128xf32>
    %7 = vector.shape_cast %6 : vector<1x128xf32> to vector<1x1x128xf32>
    %8 = vector.broadcast %7 : vector<1x1x128xf32> to vector<16x16x128xf32>
    %9 = arith.addf %5, %8 : vector<16x16x128xf32>
    %cst = arith.constant 0.000000e+00 : f32
    %10 = vector.broadcast %cst : f32 to vector<16x16x128xf32>
    %11 = arith.maximumf %9, %10 : vector<16x16x128xf32>
    %cst_7 = arith.constant 0.000000e+00 : f32
    %12 = vector.broadcast %cst_7 : f32 to vector<16x16x1152xf32>
    %c0_8 = arith.constant 0 : index
    %c0_9 = arith.constant 0 : index
    %c0_10 = arith.constant 0 : index
    %13 = vector.load %arg7[%c0_8, %c0_9, %c0_10] : memref<16x16x1152xf32, #tpu.memory_space<vmem>>, vector<16x16x1152xf32>
    tpu.vector_store %arg7[%c0_8, %c0_9, %c0_10], %12 {strides = array<i32>} : memref<16x16x1152xf32, #tpu.memory_space<vmem>>, vector<16x16x1152xf32>,
    %14 = vector.extract_strided_slice %11 {offsets = [0, 0, 0], sizes = [14, 14, 128], strides = [1, 1, 1]} : vector<16x16x128xf32> to vector<14x14x128xf32>
    %c2 = arith.constant 2 : index
    %c2_11 = arith.constant 2 : index
    %c0_12 = arith.constant 0 : index
    %15 = vector.load %arg7[%c2, %c2_11, %c0_12] : memref<16x16x1152xf32, #tpu.memory_space<vmem>>, vector<14x14x128xf32>
    tpu.vector_store %arg7[%c2, %c2_11, %c0_12], %14 {strides = array<i32>} : memref<16x16x1152xf32, #tpu.memory_space<vmem>>, vector<14x14x128xf32>,
    %16 = vector.extract_strided_slice %11 {offsets = [0, 0, 0], sizes = [14, 16, 128], strides = [1, 1, 1]} : vector<16x16x128xf32> to vector<14x16x128xf32>
    %c2_13 = arith.constant 2 : index
    %c0_14 = arith.constant 0 : index
    %c128 = arith.constant 128 : index
    %17 = vector.load %arg7[%c2_13, %c0_14, %c128] : memref<16x16x1152xf32, #tpu.memory_space<vmem>>, vector<14x16x128xf32>
    tpu.vector_store %arg7[%c2_13, %c0_14, %c128], %16 {strides = array<i32>} : memref<16x16x1152xf32, #tpu.memory_space<vmem>>, vector<14x16x128xf32>,
    %18 = vector.extract_strided_slice %11 {offsets = [0, 2, 0], sizes = [14, 14, 128], strides = [1, 1, 1]} : vector<16x16x128xf32> to vector<14x14x128xf32>
    %c2_15 = arith.constant 2 : index
    %c0_16 = arith.constant 0 : index
    %c256 = arith.constant 256 : index
    %19 = vector.load %arg7[%c2_15, %c0_16, %c256] : memref<16x16x1152xf32, #tpu.memory_space<vmem>>, vector<14x14x128xf32>
    tpu.vector_store %arg7[%c2_15, %c0_16, %c256], %18 {strides = array<i32>} : memref<16x16x1152xf32, #tpu.memory_space<vmem>>, vector<14x14x128xf32>,
    %20 = vector.extract_strided_slice %11 {offsets = [0, 0, 0], sizes = [16, 14, 128], strides = [1, 1, 1]} : vector<16x16x128xf32> to vector<16x14x128xf32>
    %c0_17 = arith.constant 0 : index
    %c2_18 = arith.constant 2 : index
    %c384 = arith.constant 384 : index
    %21 = vector.load %arg7[%c0_17, %c2_18, %c384] : memref<16x16x1152xf32, #tpu.memory_space<vmem>>, vector<16x14x128xf32>
    tpu.vector_store %arg7[%c0_17, %c2_18, %c384], %20 {strides = array<i32>} : memref<16x16x1152xf32, #tpu.memory_space<vmem>>, vector<16x14x128xf32>,
    %c0_19 = arith.constant 0 : index
    %c0_20 = arith.constant 0 : index
    %c512 = arith.constant 512 : index
    %22 = vector.load %arg7[%c0_19, %c0_20, %c512] : memref<16x16x1152xf32, #tpu.memory_space<vmem>>, vector<16x16x128xf32>
    tpu.vector_store %arg7[%c0_19, %c0_20, %c512], %11 {strides = array<i32>} : memref<16x16x1152xf32, #tpu.memory_space<vmem>>, vector<16x16x128xf32>,
    %23 = vector.extract_strided_slice %11 {offsets = [0, 2, 0], sizes = [16, 14, 128], strides = [1, 1, 1]} : vector<16x16x128xf32> to vector<16x14x128xf32>
    %c0_21 = arith.constant 0 : index
    %c0_22 = arith.constant 0 : index
    %c640 = arith.constant 640 : index
    %24 = vector.load %arg7[%c0_21, %c0_22, %c640] : memref<16x16x1152xf32, #tpu.memory_space<vmem>>, vector<16x14x128xf32>
    tpu.vector_store %arg7[%c0_21, %c0_22, %c640], %23 {strides = array<i32>} : memref<16x16x1152xf32, #tpu.memory_space<vmem>>, vector<16x14x128xf32>,
    %25 = vector.extract_strided_slice %11 {offsets = [2, 0, 0], sizes = [14, 14, 128], strides = [1, 1, 1]} : vector<16x16x128xf32> to vector<14x14x128xf32>
    %c0_23 = arith.constant 0 : index
    %c2_24 = arith.constant 2 : index
    %c768 = arith.constant 768 : index
    %26 = vector.load %arg7[%c0_23, %c2_24, %c768] : memref<16x16x1152xf32, #tpu.memory_space<vmem>>, vector<14x14x128xf32>
    tpu.vector_store %arg7[%c0_23, %c2_24, %c768], %25 {strides = array<i32>} : memref<16x16x1152xf32, #tpu.memory_space<vmem>>, vector<14x14x128xf32>,
    %27 = vector.extract_strided_slice %11 {offsets = [2, 0, 0], sizes = [14, 16, 128], strides = [1, 1, 1]} : vector<16x16x128xf32> to vector<14x16x128xf32>
    %c0_25 = arith.constant 0 : index
    %c0_26 = arith.constant 0 : index
    %c896 = arith.constant 896 : index
    %28 = vector.load %arg7[%c0_25, %c0_26, %c896] : memref<16x16x1152xf32, #tpu.memory_space<vmem>>, vector<14x16x128xf32>
    tpu.vector_store %arg7[%c0_25, %c0_26, %c896], %27 {strides = array<i32>} : memref<16x16x1152xf32, #tpu.memory_space<vmem>>, vector<14x16x128xf32>,
    %29 = vector.extract_strided_slice %11 {offsets = [2, 2, 0], sizes = [14, 14, 128], strides = [1, 1, 1]} : vector<16x16x128xf32> to vector<14x14x128xf32>
    %c0_27 = arith.constant 0 : index
    %c0_28 = arith.constant 0 : index
    %c1024 = arith.constant 1024 : index
    %30 = vector.load %arg7[%c0_27, %c0_28, %c1024] : memref<16x16x1152xf32, #tpu.memory_space<vmem>>, vector<14x14x128xf32>
    tpu.vector_store %arg7[%c0_27, %c0_28, %c1024], %29 {strides = array<i32>} : memref<16x16x1152xf32, #tpu.memory_space<vmem>>, vector<14x14x128xf32>,
    %c0_29 = arith.constant 0 : index
    %c0_30 = arith.constant 0 : index
    %c0_31 = arith.constant 0 : index
    %31 = vector.load %arg7[%c0_29, %c0_30, %c0_31] : memref<16x16x1152xf32, #tpu.memory_space<vmem>>, vector<16x16x1152xf32>
    %32 = vector.shape_cast %31 : vector<16x16x1152xf32> to vector<256x1152xf32>
    %33 = arith.truncf %32 : vector<256x1152xf32> to vector<256x1152xbf16>
    %c0_32 = arith.constant 0 : index
    %c0_33 = arith.constant 0 : index
    %34 = vector.load %arg4[%c0_32, %c0_33] : memref<1152x128xf32, #tpu.memory_space<vmem>>, vector<1152x128xf32>
    %35 = arith.truncf %34 : vector<1152x128xf32> to vector<1152x128xbf16>
    %cst_34 = arith.constant dense<0.000000e+00> : vector<256x128xf32>
    %36 = tpu.matmul %33, %35, %cst_34 {dimension_numbers = #tpu.dot_dimension_numbers<[1], [0], [0], [1], [0, 0, 1, 1], [], []>} : vector<256x1152xbf16>, vector<1152x128xbf16>, vector<256x128xf32> -> vector<256x128xf32>
    %37 = vector.shape_cast %36 : vector<256x128xf32> to vector<1x16x16x128xf32>
    %c0_35 = arith.constant 0 : index
    %c0_36 = arith.constant 0 : index
    %c0_37 = arith.constant 0 : index
    %c0_38 = arith.constant 0 : index
    %38 = vector.load %arg5[%c0_35, %c0_36, %c0_37, %c0_38] : memref<1x16x16x128xf32, #tpu.memory_space<vmem>>, vector<1x16x16x128xf32>
    tpu.vector_store %arg5[%c0_35, %c0_36, %c0_37, %c0_38], %37 {strides = array<i32>} : memref<1x16x16x128xf32, #tpu.memory_space<vmem>>, vector<1x16x16x128xf32>,
    %cst_39 = arith.constant dense<0.000000e+00> : vector<128xf32>
    %39 = vector.multi_reduction <add>, %36, %cst_39 [0] : vector<256x128xf32> to vector<128xf32>
    %40 = vector.shape_cast %39 : vector<128xf32> to vector<1x128xf32>
    %41 = arith.mulf %36, %36 : vector<256x128xf32>
    %cst_40 = arith.constant dense<0.000000e+00> : vector<128xf32>
    %42 = vector.multi_reduction <add>, %41, %cst_40 [0] : vector<256x128xf32> to vector<128xf32>
    %43 = vector.shape_cast %42 : vector<128xf32> to vector<1x128xf32>
    %cst_41 = arith.constant 0.000000e+00 : f32
    %44 = vector.broadcast %cst_41 : f32 to vector<6x128xf32>
    %45 = tpu.concatenate %40, %43, %44 in 0 : vector<1x128xf32>, vector<1x128xf32>, vector<6x128xf32> -> vector<8x128xf32>
    %46 = vector.shape_cast %45 : vector<8x128xf32> to vector<1x8x128xf32>
    %c0_42 = arith.constant 0 : index
    %c0_43 = arith.constant 0 : index
    %c0_44 = arith.constant 0 : index
    %47 = vector.load %arg6[%c0_42, %c0_43, %c0_44] : memref<1x8x128xf32, #tpu.memory_space<vmem>>, vector<1x8x128xf32>
    tpu.vector_store %arg6[%c0_42, %c0_43, %c0_44], %46 {strides = array<i32>} : memref<1x8x128xf32, #tpu.memory_space<vmem>>, vector<1x8x128xf32>,
    return
  }
  func.func @transform_0(%arg0: i32) -> (i32, i32, i32, i32) {
    %c0_i32 = arith.constant 0 : i32
    %c0_i32_0 = arith.constant 0 : i32
    %c0_i32_1 = arith.constant 0 : i32
    %c0_i32_2 = arith.constant 0 : i32
    return %arg0, %c0_i32, %c0_i32_0, %c0_i32_1 : i32, i32, i32, i32
  }
  func.func @transform_1(%arg0: i32) -> (i32, i32) {
    %c0_i32 = arith.constant 0 : i32
    %c0_i32_0 = arith.constant 0 : i32
    %c0_i32_1 = arith.constant 0 : i32
    return %c0_i32, %c0_i32_0 : i32, i32
  }
  func.func @transform_2(%arg0: i32) -> (i32, i32) {
    %c0_i32 = arith.constant 0 : i32
    %c0_i32_0 = arith.constant 0 : i32
    %c0_i32_1 = arith.constant 0 : i32
    return %c0_i32, %c0_i32_0 : i32, i32
  }
  func.func @transform_3(%arg0: i32) -> (i32, i32) {
    %c0_i32 = arith.constant 0 : i32
    %c0_i32_0 = arith.constant 0 : i32
    %c0_i32_1 = arith.constant 0 : i32
    return %c0_i32, %c0_i32_0 : i32, i32
  }
  func.func @transform_4(%arg0: i32) -> (i32, i32, i32, i32) {
    %c0_i32 = arith.constant 0 : i32
    %c0_i32_0 = arith.constant 0 : i32
    %c0_i32_1 = arith.constant 0 : i32
    %c0_i32_2 = arith.constant 0 : i32
    return %arg0, %c0_i32, %c0_i32_0, %c0_i32_1 : i32, i32, i32, i32
  }
  func.func @transform_5(%arg0: i32) -> (i32, i32, i32) {
    %c0_i32 = arith.constant 0 : i32
    %c0_i32_0 = arith.constant 0 : i32
    %c0_i32_1 = arith.constant 0 : i32
    return %arg0, %c0_i32, %c0_i32_0 : i32, i32, i32
  }
}

module attributes {stable_mosaic.version = 11 : i64} {
  func.func @_conv3_kernel(%arg0: i32, %arg1: memref<256x128xf32, #tpu.memory_space<vmem>>, %arg2: memref<1x128xf32, #tpu.memory_space<vmem>>, %arg3: memref<1x128xf32, #tpu.memory_space<vmem>>, %arg4: memref<128x128xf32, #tpu.memory_space<vmem>>, %arg5: memref<256x128xf32, #tpu.memory_space<vmem>>, %arg6: memref<1x8x128xf32, #tpu.memory_space<vmem>>) attributes {dimension_semantics = [#tpu.dimension_semantics<parallel>], iteration_bounds = array<i64: 2>, scalar_prefetch = 0 : i64, scratch_operands = 0 : i64, tpu.core_type = #tpu.core_type<tc>, window_params = [{transform_indices = @transform_0, window_bounds = array<i64: 256, 128>}, {pipeline_mode = #tpu.pipeline_mode<synchronous>, transform_indices = @transform_1, window_bounds = array<i64: 1, 128>}, {pipeline_mode = #tpu.pipeline_mode<synchronous>, transform_indices = @transform_2, window_bounds = array<i64: 1, 128>}, {pipeline_mode = #tpu.pipeline_mode<synchronous>, transform_indices = @transform_3, window_bounds = array<i64: 128, 128>}, {transform_indices = @transform_4, window_bounds = array<i64: 256, 128>}, {transform_indices = @transform_5, window_bounds = array<i64: 1, 8, 128>}]} {
    %c0 = arith.constant 0 : index
    %c0_0 = arith.constant 0 : index
    %0 = vector.load %arg1[%c0, %c0_0] : memref<256x128xf32, #tpu.memory_space<vmem>>, vector<256x128xf32>
    %c0_1 = arith.constant 0 : index
    %c0_2 = arith.constant 0 : index
    %1 = vector.load %arg2[%c0_1, %c0_2] : memref<1x128xf32, #tpu.memory_space<vmem>>, vector<1x128xf32>
    %2 = vector.broadcast %1 : vector<1x128xf32> to vector<256x128xf32>
    %3 = arith.mulf %0, %2 : vector<256x128xf32>
    %c0_3 = arith.constant 0 : index
    %c0_4 = arith.constant 0 : index
    %4 = vector.load %arg3[%c0_3, %c0_4] : memref<1x128xf32, #tpu.memory_space<vmem>>, vector<1x128xf32>
    %5 = vector.broadcast %4 : vector<1x128xf32> to vector<256x128xf32>
    %6 = arith.addf %3, %5 : vector<256x128xf32>
    %cst = arith.constant 0.000000e+00 : f32
    %7 = vector.broadcast %cst : f32 to vector<256x128xf32>
    %8 = arith.maximumf %6, %7 : vector<256x128xf32>
    %9 = arith.truncf %8 : vector<256x128xf32> to vector<256x128xbf16>
    %c0_5 = arith.constant 0 : index
    %c0_6 = arith.constant 0 : index
    %10 = vector.load %arg4[%c0_5, %c0_6] : memref<128x128xf32, #tpu.memory_space<vmem>>, vector<128x128xf32>
    %11 = arith.truncf %10 : vector<128x128xf32> to vector<128x128xbf16>
    %cst_7 = arith.constant dense<0.000000e+00> : vector<256x128xf32>
    %12 = tpu.matmul %9, %11, %cst_7 {dimension_numbers = #tpu.dot_dimension_numbers<[1], [0], [0], [1], [0, 0, 1, 1], [], []>} : vector<256x128xbf16>, vector<128x128xbf16>, vector<256x128xf32> -> vector<256x128xf32>
    %c0_8 = arith.constant 0 : index
    %c0_9 = arith.constant 0 : index
    %13 = vector.load %arg5[%c0_8, %c0_9] : memref<256x128xf32, #tpu.memory_space<vmem>>, vector<256x128xf32>
    tpu.vector_store %arg5[%c0_8, %c0_9], %12 {strides = array<i32>} : memref<256x128xf32, #tpu.memory_space<vmem>>, vector<256x128xf32>,
    %cst_10 = arith.constant dense<0.000000e+00> : vector<128xf32>
    %14 = vector.multi_reduction <add>, %12, %cst_10 [0] : vector<256x128xf32> to vector<128xf32>
    %15 = vector.shape_cast %14 : vector<128xf32> to vector<1x128xf32>
    %16 = arith.mulf %12, %12 : vector<256x128xf32>
    %cst_11 = arith.constant dense<0.000000e+00> : vector<128xf32>
    %17 = vector.multi_reduction <add>, %16, %cst_11 [0] : vector<256x128xf32> to vector<128xf32>
    %18 = vector.shape_cast %17 : vector<128xf32> to vector<1x128xf32>
    %cst_12 = arith.constant 0.000000e+00 : f32
    %19 = vector.broadcast %cst_12 : f32 to vector<6x128xf32>
    %20 = tpu.concatenate %15, %18, %19 in 0 : vector<1x128xf32>, vector<1x128xf32>, vector<6x128xf32> -> vector<8x128xf32>
    %21 = vector.shape_cast %20 : vector<8x128xf32> to vector<1x8x128xf32>
    %c0_13 = arith.constant 0 : index
    %c0_14 = arith.constant 0 : index
    %c0_15 = arith.constant 0 : index
    %22 = vector.load %arg6[%c0_13, %c0_14, %c0_15] : memref<1x8x128xf32, #tpu.memory_space<vmem>>, vector<1x8x128xf32>
    tpu.vector_store %arg6[%c0_13, %c0_14, %c0_15], %21 {strides = array<i32>} : memref<1x8x128xf32, #tpu.memory_space<vmem>>, vector<1x8x128xf32>,
    return
  }
  func.func @transform_0(%arg0: i32) -> (i32, i32) {
    %c0_i32 = arith.constant 0 : i32
    %c0_i32_0 = arith.constant 0 : i32
    return %arg0, %c0_i32 : i32, i32
  }
  func.func @transform_1(%arg0: i32) -> (i32, i32) {
    %c0_i32 = arith.constant 0 : i32
    %c0_i32_0 = arith.constant 0 : i32
    %c0_i32_1 = arith.constant 0 : i32
    return %c0_i32, %c0_i32_0 : i32, i32
  }
  func.func @transform_2(%arg0: i32) -> (i32, i32) {
    %c0_i32 = arith.constant 0 : i32
    %c0_i32_0 = arith.constant 0 : i32
    %c0_i32_1 = arith.constant 0 : i32
    return %c0_i32, %c0_i32_0 : i32, i32
  }
  func.func @transform_3(%arg0: i32) -> (i32, i32) {
    %c0_i32 = arith.constant 0 : i32
    %c0_i32_0 = arith.constant 0 : i32
    %c0_i32_1 = arith.constant 0 : i32
    return %c0_i32, %c0_i32_0 : i32, i32
  }
  func.func @transform_4(%arg0: i32) -> (i32, i32) {
    %c0_i32 = arith.constant 0 : i32
    %c0_i32_0 = arith.constant 0 : i32
    return %arg0, %c0_i32 : i32, i32
  }
  func.func @transform_5(%arg0: i32) -> (i32, i32, i32) {
    %c0_i32 = arith.constant 0 : i32
    %c0_i32_0 = arith.constant 0 : i32
    %c0_i32_1 = arith.constant 0 : i32
    return %arg0, %c0_i32, %c0_i32_0 : i32, i32, i32
  }
}

module attributes {stable_mosaic.version = 11 : i64} {
  func.func @_finalize_kernel(%arg0: i32, %arg1: memref<256x128xf32, #tpu.memory_space<vmem>>, %arg2: memref<256x128xf32, #tpu.memory_space<vmem>>, %arg3: memref<1x128xf32, #tpu.memory_space<vmem>>, %arg4: memref<1x128xf32, #tpu.memory_space<vmem>>, %arg5: memref<1x128xf32, #tpu.memory_space<vmem>>, %arg6: memref<1x128xf32, #tpu.memory_space<vmem>>, %arg7: memref<256x128xf32, #tpu.memory_space<vmem>>) attributes {dimension_semantics = [#tpu.dimension_semantics<parallel>], iteration_bounds = array<i64: 2>, scalar_prefetch = 0 : i64, scratch_operands = 0 : i64, tpu.core_type = #tpu.core_type<tc>, window_params = [{transform_indices = @transform_0, window_bounds = array<i64: 256, 128>}, {transform_indices = @transform_1, window_bounds = array<i64: 256, 128>}, {pipeline_mode = #tpu.pipeline_mode<synchronous>, transform_indices = @transform_2, window_bounds = array<i64: 1, 128>}, {pipeline_mode = #tpu.pipeline_mode<synchronous>, transform_indices = @transform_3, window_bounds = array<i64: 1, 128>}, {pipeline_mode = #tpu.pipeline_mode<synchronous>, transform_indices = @transform_4, window_bounds = array<i64: 1, 128>}, {pipeline_mode = #tpu.pipeline_mode<synchronous>, transform_indices = @transform_5, window_bounds = array<i64: 1, 128>}, {transform_indices = @transform_6, window_bounds = array<i64: 256, 128>}]} {
    %c0 = arith.constant 0 : index
    %c0_0 = arith.constant 0 : index
    %0 = vector.load %arg1[%c0, %c0_0] : memref<256x128xf32, #tpu.memory_space<vmem>>, vector<256x128xf32>
    %c0_1 = arith.constant 0 : index
    %c0_2 = arith.constant 0 : index
    %1 = vector.load %arg3[%c0_1, %c0_2] : memref<1x128xf32, #tpu.memory_space<vmem>>, vector<1x128xf32>
    %2 = vector.broadcast %1 : vector<1x128xf32> to vector<256x128xf32>
    %3 = arith.mulf %0, %2 : vector<256x128xf32>
    %c0_3 = arith.constant 0 : index
    %c0_4 = arith.constant 0 : index
    %4 = vector.load %arg4[%c0_3, %c0_4] : memref<1x128xf32, #tpu.memory_space<vmem>>, vector<1x128xf32>
    %5 = vector.broadcast %4 : vector<1x128xf32> to vector<256x128xf32>
    %6 = arith.addf %3, %5 : vector<256x128xf32>
    %c0_5 = arith.constant 0 : index
    %c0_6 = arith.constant 0 : index
    %7 = vector.load %arg2[%c0_5, %c0_6] : memref<256x128xf32, #tpu.memory_space<vmem>>, vector<256x128xf32>
    %c0_7 = arith.constant 0 : index
    %c0_8 = arith.constant 0 : index
    %8 = vector.load %arg5[%c0_7, %c0_8] : memref<1x128xf32, #tpu.memory_space<vmem>>, vector<1x128xf32>
    %9 = vector.broadcast %8 : vector<1x128xf32> to vector<256x128xf32>
    %10 = arith.mulf %7, %9 : vector<256x128xf32>
    %c0_9 = arith.constant 0 : index
    %c0_10 = arith.constant 0 : index
    %11 = vector.load %arg6[%c0_9, %c0_10] : memref<1x128xf32, #tpu.memory_space<vmem>>, vector<1x128xf32>
    %12 = vector.broadcast %11 : vector<1x128xf32> to vector<256x128xf32>
    %13 = arith.addf %10, %12 : vector<256x128xf32>
    %14 = arith.addf %6, %13 : vector<256x128xf32>
    %cst = arith.constant 0.000000e+00 : f32
    %15 = vector.broadcast %cst : f32 to vector<256x128xf32>
    %16 = arith.maximumf %14, %15 : vector<256x128xf32>
    %c0_11 = arith.constant 0 : index
    %c0_12 = arith.constant 0 : index
    %17 = vector.load %arg7[%c0_11, %c0_12] : memref<256x128xf32, #tpu.memory_space<vmem>>, vector<256x128xf32>
    tpu.vector_store %arg7[%c0_11, %c0_12], %16 {strides = array<i32>} : memref<256x128xf32, #tpu.memory_space<vmem>>, vector<256x128xf32>,
    return
  }
  func.func @transform_0(%arg0: i32) -> (i32, i32) {
    %c0_i32 = arith.constant 0 : i32
    %c0_i32_0 = arith.constant 0 : i32
    return %arg0, %c0_i32 : i32, i32
  }
  func.func @transform_1(%arg0: i32) -> (i32, i32) {
    %c0_i32 = arith.constant 0 : i32
    %c0_i32_0 = arith.constant 0 : i32
    return %arg0, %c0_i32 : i32, i32
  }
  func.func @transform_2(%arg0: i32) -> (i32, i32) {
    %c0_i32 = arith.constant 0 : i32
    %c0_i32_0 = arith.constant 0 : i32
    %c0_i32_1 = arith.constant 0 : i32
    return %c0_i32, %c0_i32_0 : i32, i32
  }
  func.func @transform_3(%arg0: i32) -> (i32, i32) {
    %c0_i32 = arith.constant 0 : i32
    %c0_i32_0 = arith.constant 0 : i32
    %c0_i32_1 = arith.constant 0 : i32
    return %c0_i32, %c0_i32_0 : i32, i32
  }
  func.func @transform_4(%arg0: i32) -> (i32, i32) {
    %c0_i32 = arith.constant 0 : i32
    %c0_i32_0 = arith.constant 0 : i32
    %c0_i32_1 = arith.constant 0 : i32
    return %c0_i32, %c0_i32_0 : i32, i32
  }
  func.func @transform_5(%arg0: i32) -> (i32, i32) {
    %c0_i32 = arith.constant 0 : i32
    %c0_i32_0 = arith.constant 0 : i32
    %c0_i32_1 = arith.constant 0 : i32
    return %c0_i32, %c0_i32_0 : i32, i32
  }
  func.func @transform_6(%arg0: i32) -> (i32, i32) {
    %c0_i32 = arith.constant 0 : i32
    %c0_i32_0 = arith.constant 0 : i32
    return %arg0, %c0_i32 : i32, i32
  }
}

</mosaic_0001>

<bundles_post_ra>
// kernel: bottleneck_b_pallas.7
= control target key start
LH: loop header
LB: loop body
LE: loop exit
PB: predicated region body
PF: predicated region fallthrough
CT: control target
= control target key end

     0   :  { %11 = vsyncpa [#allocation3], 0  ;;  %s1201_s0 = inlined_call_operand.vmem [shape: f32[512,128], index: 0, kind: input, shape index: {}]   ;;  %s1202_s1 = inlined_call_operand.vmem [shape: f32[512,128], index: 1, kind: input, shape index: {}]   ;;  %s1203_s2 = inlined_call_operand.vmem [shape: f32[1,128], index: 2, kind: input, shape index: {}]   ;;  %s1204_s3 = inlined_call_operand.vmem [shape: f32[1,128], index: 3, kind: input, shape index: {}]   ;;  %s1205_s4 = inlined_call_operand.vmem [shape: f32[1,128], index: 4, kind: input, shape index: {}]   ;;  %s1206_s5 = inlined_call_operand.vmem [shape: f32[1,128], index: 5, kind: input, shape index: {}]   ;;  %s1207_s6 = inlined_call_operand.hbm [shape: f32[512,128], index: 6, kind: output, shape index: {}]  }
   0x1   :  { %13 = vsyncpa [#allocation3 + $0x1], 0  ;;  %s839_s21 = smov 0   ;;  %s841_s22 = smov 0  }
   0x2   :  { %s843_s23 = smov 0   ;;  %s845_s24 = smov 0  }
   0x3 LB: > { %s860_s25 = sadd.s32 4294967295, %s799_s24   ;;  %s679_s26 = sadd.s32 4294967294, %s799_s24   ;;  %s799_s24 = sphi %s845_s24, %s1213_s24   ;;  %s795_s23 = sphi %s843_s23, %s1212_s23   ;;  %s791_s22 = sphi %s841_s22, %s1211_s22   ;;  %s787_s21 = sphi %s839_s21, %s1210_s21  }
   0x4   : > { %s864_s27 = sadd.s32 1, %s799_s24   ;;  %s162_s28 = sadd.s32 1, %s795_s23 }
   0x5   : > { %s159_s29 = ssub.s32 %s799_s24, %s864_s27  ;;  %p172_p0 = scmp.ne.s32.totalorder %s795_s23, %s791_s22 }
   0x6   : > { %p160_p1 = scmp.eq.s32.totalorder %s159_s29, 0  ;;  %p173_p2 = scmp.eq.s32.totalorder %s860_s25, 1 }
   0x7   : > { %p178_p3 = scmp.ne.s32.totalorder %s791_s22, %s787_s21  ;;  %p179_p4 = scmp.eq.s32.totalorder %s679_s26, 1 }
   0x8   : > { %s875_s30 = scalar_select %p160_p1, %s795_s23, %s162_s28  }
   0x9   : > { %p877_p5 = por %p173_p2, %p172_p0  ;;  %p881_p6 = por %p179_p4, %p178_p3 }
   0xa   : > { %p682_p7 = scmp.ge.s32.totalorder %s799_s24, 1  ;;  %p227_p8 = scmp.lt.s32.totalorder %s799_s24, 3 }
   0xc   : > { %p228_p9 = pnand %p682_p7, %p227_p8 }
   0xd   : > { %s684_s9 = sshll.u32 (!%p228_p9), %s860_s25, 5  ;;  %s259_s11 = sand.u32 (!%p228_p9), 1, %s791_s22  }
   0xe   : > { %231 = sbr.rel (%p228_p9) target bundleno = 90 (0x5a), region = 44  ;;  %p263_p10 = scmp.lt.s32.totalorder (!%p228_p9), %s684_s9, 63 }
   0xf   : > { %s697_s13 = sshll.u32 (!%p228_p9), %s860_s25, 12  ;;  %s1161_s25 = scalar_lea.sflag (!%p228_p9), [#allocation3], %s259_s11 }
  0x10   : > { %s801_s19 = smov (!%p228_p9), [#allocation2]  }
  0x13   : > { %s1215_s9 = smov (!%p263_p10, %s684_s9), 63  ;;  %v891_v0 = vld [vmem:[%s1203_s2] ss:$0 sm:$0xff] }
  0x14   : > { %s685_s10 = sshll.u32 %s1215_s9, 3  ;;  %v896_v1 = vld [vmem:[%s1205_s4] ss:$0 sm:$0xff] }
  0x15   : > { %s901_s17 = scalar_lea.vmem %s1201_s0, %s685_s10  ;;  %s906_s20 = scalar_lea.vmem %s1202_s1, %s685_s10  ;;  %v911_v2 = vld [vmem:[%s1204_s3] ss:$0 sm:$0xff] }
  0x16   : > { %v916_v3 = vld [vmem:[%s1206_s5] ss:$0 sm:$0xff]  ;;  %v276_v6 = vld [vmem:[%s901_s17 + $0x8] sm:$0xff]  ;;  %v277_v11 = vld [vmem:[%s901_s17 + $0x10] sm:$0xff]  ;;  %s936_s10 = sshll.u32 %s259_s11, 8 }
  0x17   : > { %v275_v4 = vld [vmem:[%s901_s17] sm:$0xff]  ;;  %v315_v9 = vmul.f32 %v891_v0, %v276_v6  ;;  %v386_v10 = vld [vmem:[%s906_s20 + $0x8] sm:$0xff]  ;;  %v387_v12 = vld [vmem:[%s906_s20 + $0x10] sm:$0xff]  ;;  %v316_v14 = vmul.f32 %v891_v0, %v277_v11  ;;  %s964_s12 = scalar_lea.vmem [#allocation2], %s936_s10 }
  0x18   : > { %v385_v5 = vld [vmem:[%s906_s20] sm:$0xff]  ;;  %v314_v7 = vmul.f32 %v891_v0, %v275_v4  ;;  %v425_v13 = vmul.f32 %v896_v1, %v386_v10  ;;  %v426_v15 = vmul.f32 %v896_v1, %v387_v12  ;;  %v278_v16 = vld [vmem:[%s901_s17 + $0x18] sm:$0xff]  ;;  %v280_v24 = vld [vmem:[%s901_s17 + $0x28] sm:$0xff]  ;;  %s605_s14 = sshll.u32 %s964_s12, 4  ;;  %s1155_s14 = int_to_ptr.vmem [resolvable:$true] %s605_s14 }
  0x19   : > { %v424_v8 = vmul.f32 %v896_v1, %v385_v5  ;;  %v388_v17 = vld [vmem:[%s906_s20 + $0x18] sm:$0xff]  ;;  %v279_v18 = vld [vmem:[%s901_s17 + $0x20] sm:$0xff]  ;;  %v354_v21 = vadd.f32 %v911_v2, %v315_v9  ;;  %v317_v22 = vmul.f32 %v891_v0, %v278_v16  ;;  %v355_v26 = vadd.f32 %v911_v2, %v316_v14  ;;  %v390_v29 = vld [vmem:[%s906_s20 + $0x28] sm:$0xff]  ;;  %s739_s18 = scalar_lea.vmem %s1155_s14, 4096 }
  0x1a   : > { %v353_v19 = vadd.f32 %v911_v2, %v314_v7  ;;  %v389_v23 = vld [vmem:[%s906_s20 + $0x20] sm:$0xff]  ;;  %v464_v25 = vadd.f32 %v916_v3, %v425_v13  ;;  %v465_v27 = vadd.f32 %v916_v3, %v426_v15  ;;  %v427_v28 = vmul.f32 %v896_v1, %v388_v17  ;;  %v281_v38 = vld [vmem:[%s901_s17 + $0x30] sm:$0xff]  ;;  %v282_v44 = vld [vmem:[%s901_s17 + $0x38] sm:$0xff]  ;;  %p740_p11 = scmp.ne.s32.totalorder %s1155_s14, %s739_s18 }
  0x1b   : > { %v463_v20 = vadd.f32 %v916_v3, %v424_v8  ;;  %v356_v31 = vadd.f32 %v911_v2, %v317_v22  ;;  %v318_v32 = vmul.f32 %v891_v0, %v279_v18  ;;  %v428_v33 = vmul.f32 %v896_v1, %v389_v23  ;;  %v391_v39 = vld [vmem:[%s906_s20 + $0x30] sm:$0xff]  ;;  %v392_v45 = vld [vmem:[%s906_s20 + $0x38] sm:$0xff]  ;;  %v283_v46 = vld [vmem:[%s901_s17 + $0x40] sm:$0xff] }
  0x1c   : > { %v496_v34 = vadd.f32 %v464_v25, %v354_v21  ;;  %v497_v35 = vadd.f32 %v465_v27, %v355_v26  ;;  %v466_v36 = vadd.f32 %v916_v3, %v427_v28  ;;  %v319_v37 = vmul.f32 %v891_v0, %v280_v24  ;;  %v393_v55 = vld [vmem:[%s906_s20 + $0x40] sm:$0xff]  ;;  %v284_v60 = vld [vmem:[%s901_s17 + $0x48] sm:$0xff]  ;;  %v285_v6 = vld [vmem:[%s901_s17 + $0x50] sm:$0xff]  ;;  %p741_p12 = pnand %p740_p11, %p877_p5 }
  0x1d   : > { %v495_v30 = vadd.f32 %v463_v20, %v353_v19  ;;  %v357_v41 = vadd.f32 %v911_v2, %v318_v32  ;;  %v467_v42 = vadd.f32 %v916_v3, %v428_v33  ;;  %v429_v43 = vmul.f32 %v896_v1, %v390_v29  ;;  %v394_v61 = vld [vmem:[%s906_s20 + $0x48] sm:$0xff]  ;;  %v395_v7 = vld [vmem:[%s906_s20 + $0x50] sm:$0xff]  ;;  %v286_v12 = vld [vmem:[%s901_s17 + $0x58] sm:$0xff] }
  0x1e   : > { %v528_v47 = vmax.f32 %v496_v34, 0.0  ;;  %v529_v48 = vmax.f32 %v497_v35, 0.0  ;;  %v498_v49 = vadd.f32 %v466_v36, %v356_v31  ;;  %v358_v50 = vadd.f32 %v911_v2, %v319_v37  ;;  %v396_v21 = vld [vmem:[%s906_s20 + $0x58] sm:$0xff]  ;;  %v287_v22 = vld [vmem:[%s901_s17 + $0x60] sm:$0xff]  ;;  %v288_v28 = vld [vmem:[%s901_s17 + $0x68] sm:$0xff]  ;;  %p742_p13 = pneg %p741_p12 }
  0x1f   : > { %v527_v40 = vmax.f32 %v495_v30, 0.0  ;;  %v499_v51 = vadd.f32 %v467_v42, %v357_v41  ;;  %v468_v52 = vadd.f32 %v916_v3, %v429_v43  ;;  %v320_v53 = vmul.f32 %v891_v0, %v281_v38  ;;  %v397_v27 = vld [vmem:[%s906_s20 + $0x60] sm:$0xff]  ;;  %v398_v33 = vld [vmem:[%s906_s20 + $0x68] sm:$0xff]  ;;  %v289_v38 = vld [vmem:[%s901_s17 + $0x70] sm:$0xff] }
  0x20   : > { %v430_v54 = vmul.f32 %v896_v1, %v391_v39  ;;  %560 = vst [vmem:[%s964_s12 + $0x8] sm:$0xff] %v528_v47  ;;  %561 = vst [vmem:[%s964_s12 + $0x10] sm:$0xff] %v529_v48  ;;  %v530_v56 = vmax.f32 %v498_v49, 0.0  ;;  %v321_v57 = vmul.f32 %v891_v0, %v282_v44  ;;  %v431_v58 = vmul.f32 %v896_v1, %v392_v45  ;;  %v399_v43 = vld [vmem:[%s906_s20 + $0x70] sm:$0xff]  ;;  %v290_v44 = vld [vmem:[%s901_s17 + $0x78] sm:$0xff] }
  0x21   : > { %559 = vst [vmem:[%s964_s12] sm:$0xff] %v527_v40  ;;  %v322_v59 = vmul.f32 %v891_v0, %v283_v46  ;;  %v531_v62 = vmax.f32 %v499_v51, 0.0  ;;  %v500_v63 = vadd.f32 %v468_v52, %v358_v50  ;;  %v359_v4 = vadd.f32 %v911_v2, %v320_v53  ;;  %v400_v49 = vld [vmem:[%s906_s20 + $0x78] sm:$0xff]  ;;  %v291_v50 = vld [vmem:[%s901_s17 + $0x80] sm:$0xff] }
  0x22   : > { %v469_v5 = vadd.f32 %v916_v3, %v430_v54  ;;  %562 = vst [vmem:[%s964_s12 + $0x18] sm:$0xff] %v530_v56  ;;  %v360_v8 = vadd.f32 %v911_v2, %v321_v57  ;;  %v470_v9 = vadd.f32 %v916_v3, %v431_v58  ;;  %v432_v11 = vmul.f32 %v896_v1, %v393_v55 }
  0x23   : > { %v361_v10 = vadd.f32 %v911_v2, %v322_v59  ;;  %563 = vst [vmem:[%s964_s12 + $0x20] sm:$0xff] %v531_v62  ;;  %v532_v13 = vmax.f32 %v500_v63, 0.0  ;;  %v323_v15 = vmul.f32 %v891_v0, %v284_v60  ;;  %v433_v16 = vmul.f32 %v896_v1, %v394_v61  ;;  %v401_v59 = vld [vmem:[%s906_s20 + $0x80] sm:$0xff] }
  0x24   : > { %v501_v14 = vadd.f32 %v469_v5, %v359_v4  ;;  %v502_v17 = vadd.f32 %v470_v9, %v360_v8  ;;  %v471_v18 = vadd.f32 %v916_v3, %v432_v11  ;;  %v324_v19 = vmul.f32 %v891_v0, %v285_v6  ;;  %v292_v4 = vld [vmem:[%s901_s17 + $0x88] sm:$0xff]  ;;  %v403_v11 = vld [vmem:[%s906_s20 + $0x90] sm:$0xff] }
  0x25   : > { %v434_v20 = vmul.f32 %v896_v1, %v395_v7  ;;  %564 = vst [vmem:[%s964_s12 + $0x28] sm:$0xff] %v532_v13  ;;  %v362_v24 = vadd.f32 %v911_v2, %v323_v15  ;;  %v472_v25 = vadd.f32 %v916_v3, %v433_v16  ;;  %v325_v26 = vmul.f32 %v891_v0, %v286_v12  ;;  %v402_v5 = vld [vmem:[%s906_s20 + $0x88] sm:$0xff]  ;;  %v294_v16 = vld [vmem:[%s901_s17 + $0x98] sm:$0xff] }
  0x26   : > { %v533_v23 = vmax.f32 %v501_v14, 0.0  ;;  %v534_v29 = vmax.f32 %v502_v17, 0.0  ;;  %v503_v30 = vadd.f32 %v471_v18, %v361_v10  ;;  %v363_v31 = vadd.f32 %v911_v2, %v324_v19  ;;  %v293_v10 = vld [vmem:[%s901_s17 + $0x90] sm:$0xff] }
  0x27   : > { %v473_v32 = vadd.f32 %v916_v3, %v434_v20  ;;  %v504_v34 = vadd.f32 %v472_v25, %v362_v24  ;;  %v364_v35 = vadd.f32 %v911_v2, %v325_v26  ;;  %v435_v36 = vmul.f32 %v896_v1, %v396_v21  ;;  %v404_v25 = vld [vmem:[%s906_s20 + $0x98] sm:$0xff]  ;;  %v295_v26 = vld [vmem:[%s901_s17 + $0xa0] sm:$0xff] }
  0x28   : > { %565 = vst [vmem:[%s964_s12 + $0x30] sm:$0xff] %v533_v23  ;;  %v326_v37 = vmul.f32 %v891_v0, %v287_v22  ;;  %566 = vst [vmem:[%s964_s12 + $0x38] sm:$0xff] %v534_v29  ;;  %v535_v39 = vmax.f32 %v503_v30, 0.0  ;;  %v436_v41 = vmul.f32 %v896_v1, %v397_v27  ;;  %v327_v42 = vmul.f32 %v891_v0, %v288_v28 }
  0x29   : > { %v505_v40 = vadd.f32 %v473_v32, %v363_v31  ;;  %v536_v45 = vmax.f32 %v504_v34, 0.0  ;;  %v474_v46 = vadd.f32 %v916_v3, %v435_v36  ;;  %v437_v48 = vmul.f32 %v896_v1, %v398_v33  ;;  %v405_v31 = vld [vmem:[%s906_s20 + $0xa0] sm:$0xff]  ;;  %v296_v32 = vld [vmem:[%s901_s17 + $0xa8] sm:$0xff] }
  0x2a   : > { %v365_v47 = vadd.f32 %v911_v2, %v326_v37  ;;  %567 = vst [vmem:[%s964_s12 + $0x40] sm:$0xff] %v535_v39  ;;  %v475_v52 = vadd.f32 %v916_v3, %v436_v41  ;;  %v366_v53 = vadd.f32 %v911_v2, %v327_v42  ;;  %v328_v54 = vmul.f32 %v891_v0, %v289_v38  ;;  %v406_v37 = vld [vmem:[%s906_s20 + $0xa8] sm:$0xff]  ;;  %v297_v42 = vld [vmem:[%s901_s17 + $0xb0] sm:$0xff] }
  0x2b   : > { %v537_v51 = vmax.f32 %v505_v40, 0.0  ;;  %568 = vst [vmem:[%s964_s12 + $0x48] sm:$0xff] %v536_v45  ;;  %v506_v55 = vadd.f32 %v474_v46, %v364_v35  ;;  %v476_v56 = vadd.f32 %v916_v3, %v437_v48  ;;  %v438_v57 = vmul.f32 %v896_v1, %v399_v43  ;;  %v298_v48 = vld [vmem:[%s901_s17 + $0xb8] sm:$0xff] }
  0x2c   : > { %v329_v58 = vmul.f32 %v891_v0, %v290_v44  ;;  %v507_v60 = vadd.f32 %v475_v52, %v365_v47  ;;  %v367_v61 = vadd.f32 %v911_v2, %v328_v54  ;;  %v439_v62 = vmul.f32 %v896_v1, %v400_v49  ;;  %v407_v47 = vld [vmem:[%s906_s20 + $0xb0] sm:$0xff]  ;;  %v299_v54 = vld [vmem:[%s901_s17 + $0xc0] sm:$0xff] }
  0x2d   : > { %569 = vst [vmem:[%s964_s12 + $0x50] sm:$0xff] %v537_v51  ;;  %v330_v63 = vmul.f32 %v891_v0, %v291_v50  ;;  %v538_v6 = vmax.f32 %v506_v55, 0.0  ;;  %v508_v7 = vadd.f32 %v476_v56, %v366_v53  ;;  %v477_v8 = vadd.f32 %v916_v3, %v438_v57  ;;  %v408_v53 = vld [vmem:[%s906_s20 + $0xb8] sm:$0xff] }
  0x2e   : > { %v368_v9 = vadd.f32 %v911_v2, %v329_v58  ;;  %v539_v12 = vmax.f32 %v507_v60, 0.0  ;;  %v478_v13 = vadd.f32 %v916_v3, %v439_v62  ;;  %v440_v15 = vmul.f32 %v896_v1, %v401_v59 }
  0x2f   : > { %v369_v14 = vadd.f32 %v911_v2, %v330_v63  ;;  %570 = vst [vmem:[%s964_s12 + $0x58] sm:$0xff] %v538_v6  ;;  %v540_v17 = vmax.f32 %v508_v7, 0.0  ;;  %v509_v18 = vadd.f32 %v477_v8, %v367_v61  ;;  %v331_v19 = vmul.f32 %v891_v0, %v292_v4  ;;  %v409_v63 = vld [vmem:[%s906_s20 + $0xc0] sm:$0xff]  ;;  %v300_v8 = vld [vmem:[%s901_s17 + $0xc8] sm:$0xff] }
  0x30   : > { %v441_v20 = vmul.f32 %v896_v1, %v402_v5  ;;  %571 = vst [vmem:[%s964_s12 + $0x60] sm:$0xff] %v539_v12  ;;  %v510_v21 = vadd.f32 %v478_v13, %v368_v9  ;;  %v479_v22 = vadd.f32 %v916_v3, %v440_v15  ;;  %v332_v23 = vmul.f32 %v891_v0, %v293_v10  ;;  %v410_v9 = vld [vmem:[%s906_s20 + $0xc8] sm:$0xff]  ;;  %v411_v15 = vld [vmem:[%s906_s20 + $0xd0] sm:$0xff] }
  0x31   : > { %v442_v24 = vmul.f32 %v896_v1, %v403_v11  ;;  %572 = vst [vmem:[%s964_s12 + $0x68] sm:$0xff] %v540_v17  ;;  %v541_v27 = vmax.f32 %v509_v18, 0.0  ;;  %v370_v28 = vadd.f32 %v911_v2, %v331_v19  ;;  %v333_v30 = vmul.f32 %v891_v0, %v294_v16 }
  0x32   : > { %v480_v29 = vadd.f32 %v916_v3, %v441_v20  ;;  %v542_v33 = vmax.f32 %v510_v21, 0.0  ;;  %v511_v34 = vadd.f32 %v479_v22, %v369_v14  ;;  %v371_v35 = vadd.f32 %v911_v2, %v332_v23  ;;  %v301_v14 = vld [vmem:[%s901_s17 + $0xd0] sm:$0xff]  ;;  %v302_v20 = vld [vmem:[%s901_s17 + $0xd8] sm:$0xff] }
  0x33   : > { %v481_v36 = vadd.f32 %v916_v3, %v442_v24  ;;  %573 = vst [vmem:[%s964_s12 + $0x70] sm:$0xff] %v541_v27  ;;  %v372_v39 = vadd.f32 %v911_v2, %v333_v30  ;;  %v443_v40 = vmul.f32 %v896_v1, %v404_v25  ;;  %v334_v41 = vmul.f32 %v891_v0, %v295_v26  ;;  %v303_v30 = vld [vmem:[%s901_s17 + $0xe0] sm:$0xff] }
  0x34   : > { %v512_v38 = vadd.f32 %v480_v29, %v370_v28  ;;  %574 = vst [vmem:[%s964_s12 + $0x78] sm:$0xff] %v542_v33  ;;  %v543_v43 = vmax.f32 %v511_v34, 0.0  ;;  %v444_v45 = vmul.f32 %v896_v1, %v405_v31  ;;  %v335_v46 = vmul.f32 %v891_v0, %v296_v32  ;;  %v412_v29 = vld [vmem:[%s906_s20 + $0xd8] sm:$0xff] }
  0x35   : > { %v513_v44 = vadd.f32 %v481_v36, %v371_v35  ;;  %v482_v50 = vadd.f32 %v916_v3, %v443_v40  ;;  %v373_v51 = vadd.f32 %v911_v2, %v334_v41  ;;  %v445_v52 = vmul.f32 %v896_v1, %v406_v37  ;;  %v413_v35 = vld [vmem:[%s906_s20 + $0xe0] sm:$0xff]  ;;  %v304_v36 = vld [vmem:[%s901_s17 + $0xe8] sm:$0xff] }
  0x36   : > { %v544_v49 = vmax.f32 %v512_v38, 0.0  ;;  %575 = vst [vmem:[%s964_s12 + $0x80] sm:$0xff] %v543_v43  ;;  %v483_v56 = vadd.f32 %v916_v3, %v444_v45  ;;  %v374_v57 = vadd.f32 %v911_v2, %v335_v46  ;;  %v336_v58 = vmul.f32 %v891_v0, %v297_v42  ;;  %v414_v41 = vld [vmem:[%s906_s20 + $0xe8] sm:$0xff]  ;;  %v305_v46 = vld [vmem:[%s901_s17 + $0xf0] sm:$0xff] }
  0x37   : > { %v545_v55 = vmax.f32 %v513_v44, 0.0  ;;  %v514_v59 = vadd.f32 %v482_v50, %v372_v39  ;;  %v484_v60 = vadd.f32 %v916_v3, %v445_v52  ;;  %v446_v61 = vmul.f32 %v896_v1, %v407_v47  ;;  %v306_v52 = vld [vmem:[%s901_s17 + $0xf8] sm:$0xff]  ;;  %s1153_s17 = scalar_lea.hbm %s1207_s6, %s697_s13 }
  0x38   : > { %576 = vst [vmem:[%s964_s12 + $0x88] sm:$0xff] %v544_v49  ;;  %v337_v62 = vmul.f32 %v891_v0, %v298_v48  ;;  %v515_v4 = vadd.f32 %v483_v56, %v373_v51  ;;  %v375_v5 = vadd.f32 %v911_v2, %v336_v58  ;;  %v447_v6 = vmul.f32 %v896_v1, %v408_v53  ;;  %v415_v51 = vld [vmem:[%s906_s20 + $0xf0] sm:$0xff] }
  0x39   : > { %577 = vst [vmem:[%s964_s12 + $0x90] sm:$0xff] %v545_v55  ;;  %v338_v7 = vmul.f32 %v891_v0, %v299_v54  ;;  %v546_v10 = vmax.f32 %v514_v59, 0.0  ;;  %v516_v11 = vadd.f32 %v484_v60, %v374_v57  ;;  %v485_v12 = vadd.f32 %v916_v3, %v446_v61  ;;  %v416_v57 = vld [vmem:[%s906_s20 + $0xf8] sm:$0xff]  ;;  %s743_s20 = sshll.u32 %s801_s19, 4  ;;  %s744_s20 = int_to_ptr.vmem [resolvable:$false] %s743_s20 }
  0x3a   : > { %v376_v13 = vadd.f32 %v911_v2, %v337_v62  ;;  %v547_v16 = vmax.f32 %v515_v4, 0.0  ;;  %v486_v17 = vadd.f32 %v916_v3, %v447_v6  ;;  %v448_v19 = vmul.f32 %v896_v1, %v409_v63  ;;  %s745_s26 = scalar_lea.vmem %s744_s20, 8192  ;;  %p746_p0 = scmp.lt.s32.totalorder %s1155_s14, %s744_s20 }
  0x3b   : > { %v377_v18 = vadd.f32 %v911_v2, %v338_v7  ;;  %578 = vst [vmem:[%s964_s12 + $0x98] sm:$0xff] %v546_v10  ;;  %v548_v21 = vmax.f32 %v516_v11, 0.0  ;;  %v517_v22 = vadd.f32 %v485_v12, %v375_v5  ;;  %v339_v23 = vmul.f32 %v891_v0, %v300_v8  ;;  %p747_p1 = scmp.lt.s32.totalorder %s745_s26, %s739_s18 }
  0x3c   : > { %v449_v24 = vmul.f32 %v896_v1, %v410_v9  ;;  %579 = vst [vmem:[%s964_s12 + $0xa0] sm:$0xff] %v547_v16  ;;  %v518_v25 = vadd.f32 %v486_v17, %v376_v13  ;;  %v487_v26 = vadd.f32 %v916_v3, %v448_v19  ;;  %v340_v27 = vmul.f32 %v891_v0, %v301_v14 }
  0x3d   : > { %v450_v28 = vmul.f32 %v896_v1, %v411_v15  ;;  %580 = vst [vmem:[%s964_s12 + $0xa8] sm:$0xff] %v548_v21  ;;  %v549_v31 = vmax.f32 %v517_v22, 0.0  ;;  %v378_v32 = vadd.f32 %v911_v2, %v339_v23  ;;  %v341_v34 = vmul.f32 %v891_v0, %v302_v20  ;;  %p748_p2 = por %p747_p1, %p746_p0 }
  0x3e   : > { %v488_v33 = vadd.f32 %v916_v3, %v449_v24  ;;  %v550_v37 = vmax.f32 %v518_v25, 0.0  ;;  %v519_v38 = vadd.f32 %v487_v26, %v377_v18  ;;  %v379_v39 = vadd.f32 %v911_v2, %v340_v27 }
  0x3f   : > { %v489_v40 = vadd.f32 %v916_v3, %v450_v28  ;;  %581 = vst [vmem:[%s964_s12 + $0xb0] sm:$0xff] %v549_v31  ;;  %v380_v43 = vadd.f32 %v911_v2, %v341_v34  ;;  %v451_v44 = vmul.f32 %v896_v1, %v412_v29  ;;  %v342_v45 = vmul.f32 %v891_v0, %v303_v30  ;;  %p749_p3 = pnand %p748_p2, %p742_p13 }
  0x40   : > { %v520_v42 = vadd.f32 %v488_v33, %v378_v32  ;;  %582 = vst [vmem:[%s964_s12 + $0xb8] sm:$0xff] %v550_v37  ;;  %v551_v47 = vmax.f32 %v519_v38, 0.0  ;;  %v452_v49 = vmul.f32 %v896_v1, %v413_v35  ;;  %v343_v50 = vmul.f32 %v891_v0, %v304_v36 }
  0x41   : > { %v521_v48 = vadd.f32 %v489_v40, %v379_v39  ;;  %v490_v54 = vadd.f32 %v916_v3, %v451_v44  ;;  %v381_v55 = vadd.f32 %v911_v2, %v342_v45  ;;  %v453_v56 = vmul.f32 %v896_v1, %v414_v41 }
  0x42   : > { %v552_v53 = vmax.f32 %v520_v42, 0.0  ;;  %583 = vst [vmem:[%s964_s12 + $0xc0] sm:$0xff] %v551_v47  ;;  %v491_v59 = vadd.f32 %v916_v3, %v452_v49  ;;  %v382_v60 = vadd.f32 %v911_v2, %v343_v50  ;;  %v344_v61 = vmul.f32 %v891_v0, %v305_v46 }
  0x43   : > { %v553_v58 = vmax.f32 %v521_v48, 0.0  ;;  %v522_v62 = vadd.f32 %v490_v54, %v380_v43  ;;  %v492_v63 = vadd.f32 %v916_v3, %v453_v56  ;;  %v454_v4 = vmul.f32 %v896_v1, %v415_v51 }
  0x44   : > { %584 = vst [vmem:[%s964_s12 + $0xc8] sm:$0xff] %v552_v53  ;;  %v345_v5 = vmul.f32 %v891_v0, %v306_v52  ;;  %v523_v6 = vadd.f32 %v491_v59, %v381_v55  ;;  %v383_v7 = vadd.f32 %v911_v2, %v344_v61  ;;  %v455_v8 = vmul.f32 %v896_v1, %v416_v57 }
  0x45   : > { %585 = vst [vmem:[%s964_s12 + $0xd0] sm:$0xff] %v553_v58  ;;  %v554_v9 = vmax.f32 %v522_v62, 0.0  ;;  %v524_v10 = vadd.f32 %v492_v63, %v382_v60  ;;  %v493_v11 = vadd.f32 %v916_v3, %v454_v4 }
  0x46   : > { %v384_v12 = vadd.f32 %v911_v2, %v345_v5  ;;  %v555_v13 = vmax.f32 %v523_v6, 0.0  ;;  %v494_v0 = vadd.f32 %v916_v3, %v455_v8 }
  0x47   : > { %586 = vst [vmem:[%s964_s12 + $0xd8] sm:$0xff] %v554_v9  ;;  %v556_v14 = vmax.f32 %v524_v10, 0.0  ;;  %v525_v15 = vadd.f32 %v493_v11, %v383_v7 }
  0x48   : > { %587 = vst [vmem:[%s964_s12 + $0xe0] sm:$0xff] %v555_v13  ;;  %v526_v1 = vadd.f32 %v494_v0, %v384_v12 }
  0x49   : > { %588 = vst [vmem:[%s964_s12 + $0xe8] sm:$0xff] %v556_v14  ;;  %v557_v16 = vmax.f32 %v525_v15, 0.0 }
  0x4a   : > { %v558_v2 = vmax.f32 %v526_v1, 0.0 }
  0x4b   : > { %589 = vst [vmem:[%s964_s12 + $0xf0] sm:$0xff] %v557_v16 }
  0x4c   : > { %590 = vst [vmem:[%s964_s12 + $0xf8] sm:$0xff] %v558_v2 }
  0x4d   : > { %752 = shalt.err (!%p749_p3)
}
  0x4e   : > { %s753_s28 = scalar_lea.hbm %s1153_s17, 4096  ;;  %s757_s11 = scalar_lea.hbm %s1207_s6, 8192 }
  0x4f   : > { %p754_p4 = scmp.ne.s32.totalorder %s1153_s17, %s753_s28  ;;  %p758_p9 = scmp.lt.s32.totalorder %s1153_s17, %s1207_s6 }
  0x50   : > { %p759_p10 = scmp.lt.s32.totalorder %s757_s11, %s753_s28 }
  0x51   : > { %p755_p7 = pnand %p754_p4, %p877_p5 }
  0x52   : > { %p760_p11 = por %p759_p10, %p758_p9 }
  0x53   : > { %p756_p8 = pneg %p755_p7 }
  0x55   : > { %p761_p12 = pnand %p760_p11, %p756_p8 }
  0x57   : > { %764 = shalt.err (!%p761_p12)
}
  0x58   : > { %s802_s13 = smov 128   ;;  %s803_s15 = smov 8  }
  0x59   : > { %698 = dma.vmem_to_hbm [thread:$0]  (%p877_p5), %s1155_s14, 4096, %s1153_s17, %s1161_s25, %s802_s13, %s802_s13, %s803_s15  }
  0x5a PF: > { %p704_p13 = scmp.ge.s32.totalorder %s799_s24, 2  ;;  %s620_s16 = sand.u32 1, %s787_s21  }
  0x5b   : > { %s621_s18 = scalar_lea.sflag [#allocation3], %s620_s16 }
  0x5c   : > { %p701_p0 = pnand %p704_p13, %p881_p6 }
  0x5e   : > { %p702_p1 = pneg %p701_p0 }
  0x60   : > { %782 = dma.done.wait (%p702_p1), %s621_s18, 4096  }
  0x61   : > { %784 = vsyncadd (%p702_p1), %s621_s18, 4294963200  ;;  %p16_p2 = scmp.ge.s32.totalorder %s864_s27, 4   ;;  %s1210_s21 = smov %s791_s22 }
  0x62   : > { %s1211_s22 = smov %s795_s23  ;;  %s1212_s23 = smov %s875_s30 }
  0x63   : > { %s1213_s24 = smov %s864_s27  ;;  %18 = sbr.rel (!%p16_p2) target bundleno = 3 (0x3), region = 82 }
  0x68   :  { %626 = vsyncpa [#allocation3], 1 }
  0x69   :  { %628 = vsyncpa [#allocation3 + $0x1], 1 }

// kernel: bottleneck_b_pallas.6
= control target key start
LH: loop header
LB: loop body
LE: loop exit
PB: predicated region body
PF: predicated region fallthrough
CT: control target
= control target key end

     0   :  { %s961_s18 = smov 0   ;;  %s1261_s0 = inlined_call_operand.vmem [shape: f32[512,128], index: 0, kind: input, shape index: {}]   ;;  %s1262_s1 = inlined_call_operand.vmem [shape: f32[1,128], index: 1, kind: input, shape index: {}]   ;;  %s1263_s2 = inlined_call_operand.vmem [shape: f32[1,128], index: 2, kind: input, shape index: {}]   ;;  %s1264_s3 = inlined_call_operand.vmem [shape: f32[128,128], index: 3, kind: input, shape index: {}]   ;;  %s1265_s4 = inlined_call_operand.vmem [shape: f32[512,128], index: 4, kind: output, shape index: {0}]   ;;  %s1266_s5 = inlined_call_operand.vmem [shape: f32[2,8,128], index: 5, kind: output, shape index: {1}]  }
   0x1 LB: > { %s967_s19 = sadd.s32 4294967295, %s929_s18   ;;  %p817_p0 = scmp.ge.s32.totalorder %s929_s18, 1  ;;  %s929_s18 = sphi %s961_s18, %s16_s18  }
   0x2   : > { %p191_p1 = scmp.lt.s32.totalorder %s929_s18, 3 }
   0x4   : > { %p192_p2 = pnand %p817_p0, %p191_p1 }
   0x5   : > { %s818_s26 = sshll.u32 (!%p192_p2), %s967_s19, 5  ;;  %p235_p4 = scmp.lt.s32.totalorder (!%p192_p2), %s967_s19, 1 }
   0x6   : > { %195 = sbr.rel (%p192_p2) target bundleno = 324 (0x144), region = 36  ;;  %p224_p3 = scmp.lt.s32.totalorder (!%p192_p2), %s818_s26, 63 }
   0xb   : > { %v412_v0 = vld [vmem:[%s1264_s3 + $0x70] sm:$0xff]  ;;  %v413_v1 = vld [vmem:[%s1264_s3 + $0x78] sm:$0xff]  ;;  %v410_v2 = vld [vmem:[%s1264_s3 + $0x60] sm:$0xff]  ;;  %s1268_s26 = smov (!%p224_p3, %s818_s26), 63  ;;  %s1270_s19 = smov (!%p235_p4, %s967_s19), 1  ;;  %vm721_vm0 = vcmask 1040384  }
   0xc   : > { %v421_v3 = vpack.c.bf16 %v413_v1, %v412_v0  ;;  %v411_v4 = vld [vmem:[%s1264_s3 + $0x68] sm:$0xff]  ;;  %v408_v6 = vld [vmem:[%s1264_s3 + $0x50] sm:$0xff]  ;;  %v409_v7 = vld [vmem:[%s1264_s3 + $0x58] sm:$0xff]  ;;  %s819_s8 = sshll.u32 %s1268_s26, 3  ;;  %s822_s26 = sshll.u32 %s1270_s19, 3  ;;  %vm723_vm1 = vcmask 1041408  }
   0xd   : > { %v420_v5 = vpack.c.bf16 %v411_v4, %v410_v2  ;;  %v419_v8 = vpack.c.bf16 %v409_v7, %v408_v6  ;;  %v996_v9 = vld [vmem:[%s1262_s1] ss:$0 sm:$0xff]  ;;  %v407_v11 = vld [vmem:[%s1264_s3 + $0x48] sm:$0xff]  ;;  %s1009_s17 = scalar_lea.vmem %s1261_s0, %s819_s8  ;;  %v404_v18 = vld [vmem:[%s1264_s3 + $0x30] sm:$0xff]  ;;  %s238_s21 = scalar_lea.vmem %s1266_s5, %s822_s26 }
   0xe   : > { %851 = vmatprep.subr.bf16.mxu0 %v421_v3  ;;  %899 = vmatprep.subr.bf16.mxu1 %v421_v3  ;;  %v406_v10 = vld [vmem:[%s1264_s3 + $0x40] sm:$0xff]  ;;  %v241_v13 = vld [vmem:[%s1009_s17 + $0x8] sm:$0xff]  ;;  %v405_v19 = vld [vmem:[%s1264_s3 + $0x38] sm:$0xff] }
   0xf   : > { %852 = vmatpush3.bf16.msra.mxu0 %v421_v3  ;;  %907 = vmatpush3.bf16.msra.mxu1 %v421_v3  ;;  %v240_v12 = vld [vmem:[%s1009_s17] sm:$0xff]  ;;  %v280_v16 = vmul.f32 %v996_v9, %v241_v13  ;;  %v418_v17 = vpack.c.bf16 %v407_v11, %v406_v10  ;;  %v417_v24 = vpack.c.bf16 %v405_v19, %v404_v18  ;;  %v403_v26 = vld [vmem:[%s1264_s3 + $0x28] sm:$0xff]  ;;  %v242_v28 = vld [vmem:[%s1009_s17 + $0x10] sm:$0xff] }
  0x10   : > { %853 = vmatprep.subr.bf16.mxu0 %v420_v5  ;;  %900 = vmatprep.subr.bf16.mxu1 %v420_v5  ;;  %v1016_v14 = vld [vmem:[%s1263_s2] ss:$0 sm:$0xff]  ;;  %v279_v15 = vmul.f32 %v996_v9, %v240_v12  ;;  %v243_v29 = vld [vmem:[%s1009_s17 + $0x18] sm:$0xff]  ;;  %v245_v31 = vld [vmem:[%s1009_s17 + $0x28] sm:$0xff]  ;;  %v281_v35 = vmul.f32 %v996_v9, %v242_v28 }
  0x11   : > { %v319_v21 = vadd.f32 %v1016_v14, %v280_v16  ;;  %v402_v25 = vld [vmem:[%s1264_s3 + $0x20] sm:$0xff]  ;;  %v400_v33 = vld [vmem:[%s1264_s3 + $0x10] sm:$0xff]  ;;  %v401_v34 = vld [vmem:[%s1264_s3 + $0x18] sm:$0xff]  ;;  %v282_v36 = vmul.f32 %v996_v9, %v243_v29  ;;  %v284_v39 = vmul.f32 %v996_v9, %v245_v31 }
  0x12   : > { %v318_v20 = vadd.f32 %v1016_v14, %v279_v15  ;;  %v244_v30 = vld [vmem:[%s1009_s17 + $0x20] sm:$0xff]  ;;  %v416_v32 = vpack.c.bf16 %v403_v26, %v402_v25  ;;  %v257_v40 = vld [vmem:[%s1009_s17 + $0x88] sm:$0xff]  ;;  %v258_v42 = vld [vmem:[%s1009_s17 + $0x90] sm:$0xff]  ;;  %v415_v43 = vpack.c.bf16 %v401_v34, %v400_v33  ;;  %v320_v48 = vadd.f32 %v1016_v14, %v281_v35 }
  0x13   : > { %854 = vmatpush3.bf16.msra.mxu0 %v420_v5  ;;  %908 = vmatpush3.bf16.msra.mxu1 %v420_v5  ;;  %v351_v23 = vmax.f32 %v319_v21, 0.0  ;;  %v256_v37 = vld [vmem:[%s1009_s17 + $0x80] sm:$0xff]  ;;  %v283_v38 = vmul.f32 %v996_v9, %v244_v30  ;;  %v399_v44 = vld [vmem:[%s1264_s3 + $0x8] sm:$0xff]  ;;  %v246_v45 = vld [vmem:[%s1009_s17 + $0x30] sm:$0xff]  ;;  %v321_v49 = vadd.f32 %v1016_v14, %v282_v36  ;;  %v296_v51 = vmul.f32 %v996_v9, %v257_v40 }
  0x14   : > { %855 = vmatprep.subr.bf16.mxu0 %v419_v8  ;;  %901 = vmatprep.subr.bf16.mxu1 %v419_v8  ;;  %v350_v22 = vmax.f32 %v318_v20, 0.0  ;;  %v398_v41 = vld [vmem:[%s1264_s3] sm:$0xff]  ;;  %v295_v46 = vmul.f32 %v996_v9, %v256_v37  ;;  %v259_v47 = vld [vmem:[%s1009_s17 + $0x98] sm:$0xff]  ;;  %v323_v54 = vadd.f32 %v1016_v14, %v284_v39  ;;  %v297_v56 = vmul.f32 %v996_v9, %v258_v42  ;;  %v261_v57 = vld [vmem:[%s1009_s17 + $0xa8] sm:$0xff] }
  0x15   : > { %v247_v50 = vld [vmem:[%s1009_s17 + $0x38] sm:$0xff]  ;;  %v260_v52 = vld [vmem:[%s1009_s17 + $0xa0] sm:$0xff]  ;;  %v322_v53 = vadd.f32 %v1016_v14, %v283_v38  ;;  %v414_v58 = vpack.c.bf16 %v399_v44, %v398_v41  ;;  %v285_v59 = vmul.f32 %v996_v9, %v246_v45  ;;  %v335_v60 = vadd.f32 %v1016_v14, %v296_v51  ;;  %v249_v0 = vld [vmem:[%s1009_s17 + $0x48] sm:$0xff] }
  0x16   : > { %v382_v27 = vpack.c.bf16 %v351_v23, %v350_v22  ;;  %v334_v55 = vadd.f32 %v1016_v14, %v295_v46  ;;  %v298_v61 = vmul.f32 %v996_v9, %v259_v47  ;;  %v286_v62 = vmul.f32 %v996_v9, %v247_v50  ;;  %v248_v63 = vld [vmem:[%s1009_s17 + $0x40] sm:$0xff]  ;;  %v263_v10 = vld [vmem:[%s1009_s17 + $0xb8] sm:$0xff]  ;;  %v250_v35 = vld [vmem:[%s1009_s17 + $0x50] sm:$0xff] }
  0x17   : > { %856 = vmatpush3.bf16.msra.mxu0 %v419_v8  ;;  %909 = vmatpush3.bf16.msra.mxu1 %v419_v8  ;;  %v336_v2 = vadd.f32 %v1016_v14, %v297_v56  ;;  %v299_v3 = vmul.f32 %v996_v9, %v260_v52  ;;  %v352_v4 = vmax.f32 %v320_v48, 0.0  ;;  %v367_v5 = vmax.f32 %v335_v60, 0.0  ;;  %v262_v8 = vld [vmem:[%s1009_s17 + $0xb0] sm:$0xff]  ;;  %v264_v16 = vld [vmem:[%s1009_s17 + $0xc0] sm:$0xff]  ;;  %v251_v36 = vld [vmem:[%s1009_s17 + $0x58] sm:$0xff] }
  0x18   : > { %857 = vmatprep.subr.bf16.mxu0 %v418_v17  ;;  %902 = vmatprep.subr.bf16.mxu1 %v418_v17  ;;  %v366_v1 = vmax.f32 %v334_v55, 0.0  ;;  %v337_v6 = vadd.f32 %v1016_v14, %v298_v61  ;;  %v300_v7 = vmul.f32 %v996_v9, %v261_v57  ;;  %v353_v11 = vmax.f32 %v321_v49, 0.0  ;;  %v252_v38 = vld [vmem:[%s1009_s17 + $0x60] sm:$0xff]  ;;  %v253_v39 = vld [vmem:[%s1009_s17 + $0x68] sm:$0xff]  ;;  %v266_v46 = vld [vmem:[%s1009_s17 + $0xd0] sm:$0xff] }
  0x19   : > { %867 = vmatprep.mubr.bf16.mxu0 %v382_v27  ;;  %v354_v12 = vmax.f32 %v322_v53, 0.0  ;;  %v355_v13 = vmax.f32 %v323_v54, 0.0  ;;  %v338_v15 = vadd.f32 %v1016_v14, %v299_v3  ;;  %v287_v18 = vmul.f32 %v996_v9, %v248_v63  ;;  %v267_v47 = vld [vmem:[%s1009_s17 + $0xd8] sm:$0xff]  ;;  %v268_v52 = vld [vmem:[%s1009_s17 + $0xe0] sm:$0xff]  ;;  %v269_v53 = vld [vmem:[%s1009_s17 + $0xe8] sm:$0xff] }
  0x1a   : > { %v288_v19 = vmul.f32 %v996_v9, %v249_v0  ;;  %v390_v20 = vpack.c.bf16 %v367_v5, %v366_v1  ;;  %v339_v21 = vadd.f32 %v1016_v14, %v300_v7  ;;  %v368_v22 = vmax.f32 %v336_v2, 0.0  ;;  %v254_v7 = vld [vmem:[%s1009_s17 + $0x70] sm:$0xff] }
  0x1b   : > { %858 = vmatpush3.bf16.msra.mxu0 %v418_v17  ;;  %910 = vmatpush3.bf16.msra.mxu1 %v418_v17  ;;  %v265_v17 = vld [vmem:[%s1009_s17 + $0xc8] sm:$0xff]  ;;  %v369_v23 = vmax.f32 %v337_v6, 0.0  ;;  %v302_v25 = vmul.f32 %v996_v9, %v263_v10  ;;  %v370_v26 = vmax.f32 %v338_v15, 0.0  ;;  %v303_v28 = vmul.f32 %v996_v9, %v264_v16  ;;  %v255_v10 = vld [vmem:[%s1009_s17 + $0x78] sm:$0xff] }
  0x1c   : > { %859 = vmatprep.subr.bf16.mxu0 %v417_v24  ;;  %903 = vmatprep.subr.bf16.mxu1 %v417_v24  ;;  %v371_v27 = vmax.f32 %v339_v21, 0.0  ;;  %v304_v29 = vmul.f32 %v996_v9, %v265_v17  ;;  %v324_v30 = vadd.f32 %v1016_v14, %v285_v59  ;;  %v325_v31 = vadd.f32 %v1016_v14, %v286_v62 }
  0x1d   : > { %883 = vmatprep.mubr.bf16.mxu1 %v390_v20  ;;  %v326_v33 = vadd.f32 %v1016_v14, %v287_v18  ;;  %v327_v34 = vadd.f32 %v1016_v14, %v288_v19  ;;  %v384_v37 = vpack.c.bf16 %v355_v13, %v354_v12  ;;  %v391_v40 = vpack.c.bf16 %v369_v23, %v368_v22  ;;  %v270_v18 = vld [vmem:[%s1009_s17 + $0xf0] sm:$0xff]  ;;  %v271_v19 = vld [vmem:[%s1009_s17 + $0xf8] sm:$0xff]  ;;  %s1141_s17 = scalar_lea.vmem %s1265_s4, %s819_s8 }
  0x1e   : > { %v341_v42 = vadd.f32 %v1016_v14, %v302_v25  ;;  %v342_v44 = vadd.f32 %v1016_v14, %v303_v28  ;;  %v343_v45 = vadd.f32 %v1016_v14, %v304_v29  ;;  %v356_v48 = vmax.f32 %v324_v30, 0.0 }
  0x1f   : > { %860 = vmatpush3.bf16.msra.mxu0 %v417_v24  ;;  %911 = vmatpush3.bf16.msra.mxu1 %v417_v24  ;;  %v301_v24 = vmul.f32 %v996_v9, %v262_v8  ;;  %v357_v49 = vmax.f32 %v325_v31, 0.0  ;;  %v289_v50 = vmul.f32 %v996_v9, %v250_v35  ;;  %v290_v51 = vmul.f32 %v996_v9, %v251_v36 }
  0x20   : > { %861 = vmatprep.subr.bf16.mxu0 %v416_v32  ;;  %904 = vmatprep.subr.bf16.mxu1 %v416_v32  ;;  %v358_v54 = vmax.f32 %v326_v33, 0.0  ;;  %v359_v55 = vmax.f32 %v327_v34, 0.0  ;;  %v291_v56 = vmul.f32 %v996_v9, %v252_v38  ;;  %v292_v57 = vmul.f32 %v996_v9, %v253_v39 }
  0x21   : > { %v340_v41 = vadd.f32 %v1016_v14, %v301_v24  ;;  %v373_v59 = vmax.f32 %v341_v42, 0.0  ;;  %v305_v60 = vmul.f32 %v996_v9, %v266_v46  ;;  %v306_v61 = vmul.f32 %v996_v9, %v267_v47 }
  0x22   : > { %v374_v62 = vmax.f32 %v342_v44, 0.0  ;;  %v375_v63 = vmax.f32 %v343_v45, 0.0  ;;  %v307_v0 = vmul.f32 %v996_v9, %v268_v52  ;;  %v308_v1 = vmul.f32 %v996_v9, %v269_v53 }
  0x23   : > { %862 = vmatpush3.bf16.msra.mxu0 %v416_v32  ;;  %912 = vmatpush3.bf16.msra.mxu1 %v416_v32  ;;  %v383_v32 = vpack.c.bf16 %v353_v11, %v352_v4  ;;  %v328_v2 = vadd.f32 %v1016_v14, %v289_v50  ;;  %v385_v3 = vpack.c.bf16 %v357_v49, %v356_v48 }
  0x24   : > { %863 = vmatprep.subr.bf16.mxu0 %v415_v43  ;;  %905 = vmatprep.subr.bf16.mxu1 %v415_v43  ;;  %v329_v4 = vadd.f32 %v1016_v14, %v290_v51  ;;  %v330_v5 = vadd.f32 %v1016_v14, %v291_v56  ;;  %v331_v6 = vadd.f32 %v1016_v14, %v292_v57 }
  0x25   : > { %v386_v8 = vpack.c.bf16 %v359_v55, %v358_v54  ;;  %v344_v12 = vadd.f32 %v1016_v14, %v305_v60  ;;  %v345_v13 = vadd.f32 %v1016_v14, %v306_v61  ;;  %v394_v15 = vpack.c.bf16 %v375_v63, %v374_v62 }
  0x26   : > { %v346_v16 = vadd.f32 %v1016_v14, %v307_v0  ;;  %v347_v17 = vadd.f32 %v1016_v14, %v308_v1  ;;  %v360_v20 = vmax.f32 %v328_v2, 0.0  ;;  %v293_v21 = vmul.f32 %v996_v9, %v254_v7 }
  0x27   : > { %864 = vmatpush3.bf16.msra.mxu0 %v415_v43  ;;  %913 = vmatpush3.bf16.msra.mxu1 %v415_v43  ;;  %v392_v43 = vpack.c.bf16 %v371_v27, %v370_v26  ;;  %v361_v22 = vmax.f32 %v329_v4, 0.0  ;;  %v362_v23 = vmax.f32 %v330_v5, 0.0  ;;  %v363_v24 = vmax.f32 %v331_v6, 0.0 }
  0x28   : > { %865 = vmatprep.subr.bf16.mxu0 %v414_v58  ;;  %906 = vmatprep.subr.bf16.mxu1 %v414_v58  ;;  %v294_v25 = vmul.f32 %v996_v9, %v255_v10  ;;  %v376_v26 = vmax.f32 %v344_v12, 0.0  ;;  %v377_v27 = vmax.f32 %v345_v13, 0.0  ;;  %v309_v28 = vmul.f32 %v996_v9, %v270_v18 }
  0x29   : > { %v310_v29 = vmul.f32 %v996_v9, %v271_v19  ;;  %v378_v30 = vmax.f32 %v346_v16, 0.0  ;;  %v379_v31 = vmax.f32 %v347_v17, 0.0  ;;  %v332_v33 = vadd.f32 %v1016_v14, %v293_v21 }
  0x2a   : > { %v333_v34 = vadd.f32 %v1016_v14, %v294_v25  ;;  %v388_v35 = vpack.c.bf16 %v363_v24, %v362_v23  ;;  %v395_v36 = vpack.c.bf16 %v377_v27, %v376_v26 }
  0x2b   : > { %866 = vmatpush3.bf16.msra.mxu0 %v414_v58  ;;  %914 = vmatpush3.bf16.msra.mxu1 %v414_v58  ;;  %v372_v58 = vmax.f32 %v340_v41, 0.0  ;;  %v349_v38 = vadd.f32 %v1016_v14, %v310_v29  ;;  %v396_v39 = vpack.c.bf16 %v379_v31, %v378_v30 }
  0x2c   : > { %v365_v41 = vmax.f32 %v333_v34, 0.0 }
  0x2d   : > { %v393_v11 = vpack.c.bf16 %v373_v59, %v372_v58  ;;  %v381_v42 = vmax.f32 %v349_v38, 0.0 }
  0x2e   : > { %868 = vmatmul.mubr.bf16.vlgmr.msra.gmra.mxu0 %v383_v32  ;;  %884 = vmatmul.mubr.bf16.vlgmr.msra.gmra.mxu1 %v391_v40  ;;  %v387_v32 = vpack.c.bf16 %v361_v22, %v360_v20  ;;  %v364_v40 = vmax.f32 %v332_v33, 0.0 }
  0x2f   : > { %871 = vmatprep.mubr.bf16.mxu0 %v384_v37  ;;  %887 = vmatprep.mubr.bf16.mxu1 %v392_v43  ;;  %v348_v37 = vadd.f32 %v1016_v14, %v309_v28 }
  0x30   : > { %v389_v43 = vpack.c.bf16 %v365_v41, %v364_v40 }
  0x31   : > { %v380_v9 = vmax.f32 %v348_v37, 0.0 }
  0x33   : > { %v397_v44 = vpack.c.bf16 %v381_v42, %v380_v9 }
  0x36   : > { %872 = vmatmul.mubr.bf16.gmra.mxu0 %v385_v3  ;;  %888 = vmatmul.mubr.bf16.gmra.mxu1 %v393_v11 }
  0x37   : > { %875 = vmatprep.mubr.bf16.mxu0 %v386_v8  ;;  %891 = vmatprep.mubr.bf16.mxu1 %v394_v15 }
  0x3e   : > { %876 = vmatmul.mubr.bf16.gmra.mxu0 %v387_v32  ;;  %892 = vmatmul.mubr.bf16.gmra.mxu1 %v395_v36 }
  0x3f   : > { %879 = vmatprep.mubr.bf16.mxu0 %v388_v35  ;;  %895 = vmatprep.mubr.bf16.mxu1 %v396_v39 }
  0x46   : > { %880 = vmatmul.mubr.bf16.gmra.mxu0 %v389_v43  ;;  %896 = vmatmul.mubr.bf16.gmra.mxu1 %v397_v44 }
  0xee   : > { %v869_v14 = vpop.f32.mrf.mxu0  ;;  %v1144_v45 = vpop.f32.mrf.mxu1 }
  0xef   : > { %585 = vst [vmem:[%s1141_s17 + $0x10] sm:$0xff] %v869_v14  ;;  %601 = vst [vmem:[%s1141_s17 + $0x90] sm:$0xff] %v1144_v45  ;;  %v654_v56 = vmul.f32 %v869_v14, %v869_v14 }
  0xf0   : > { %v456_v46 = vpop.f32.mrf.mxu0  ;;  %v1149_v47 = vpop.f32.mrf.mxu1 }
  0xf1   : > { %583 = vst [vmem:[%s1141_s17] sm:$0xff] %v456_v46  ;;  %599 = vst [vmem:[%s1141_s17 + $0x80] sm:$0xff] %v1149_v47  ;;  %v652_v51 = vmul.f32 %v456_v46, %v456_v46 }
  0xf2   : > { %v870_v48 = vpop.f32.mrf.mxu0  ;;  %v1154_v49 = vpop.f32.mrf.mxu1 }
  0xf3   : > { %586 = vst [vmem:[%s1141_s17 + $0x18] sm:$0xff] %v870_v48  ;;  %602 = vst [vmem:[%s1141_s17 + $0x98] sm:$0xff] %v1154_v49  ;;  %v655_v61 = vmul.f32 %v870_v48, %v870_v48 }
  0xf4   : > { %v459_v50 = vpop.f32.mrf.mxu0  ;;  %v1159_v54 = vpop.f32.mrf.mxu1 }
  0xf5   : > { %584 = vst [vmem:[%s1141_s17 + $0x8] sm:$0xff] %v459_v50  ;;  %v615_v52 = vadd.f32 %v459_v50, %v456_v46  ;;  %v653_v53 = vmul.f32 %v459_v50, %v459_v50  ;;  %600 = vst [vmem:[%s1141_s17 + $0x88] sm:$0xff] %v1159_v54 }
  0xf6   : > { %v873_v55 = vpop.f32.mrf.mxu0  ;;  %v1164_v59 = vpop.f32.mrf.mxu1 }
  0xf7   : > { %v616_v57 = vadd.f32 %v869_v14, %v615_v52  ;;  %v684_v58 = vadd.f32 %v653_v53, %v652_v51  ;;  %589 = vst [vmem:[%s1141_s17 + $0x30] sm:$0xff] %v873_v55  ;;  %605 = vst [vmem:[%s1141_s17 + $0xb0] sm:$0xff] %v1164_v59  ;;  %v658_v13 = vmul.f32 %v873_v55, %v873_v55 }
  0xf8   : > { %v472_v60 = vpop.f32.mrf.mxu0  ;;  %v1169_v0 = vpop.f32.mrf.mxu1 }
  0xf9   : > { %v685_v62 = vadd.f32 %v684_v58, %v654_v56  ;;  %587 = vst [vmem:[%s1141_s17 + $0x20] sm:$0xff] %v472_v60  ;;  %v617_v63 = vadd.f32 %v870_v48, %v616_v57  ;;  %603 = vst [vmem:[%s1141_s17 + $0xa0] sm:$0xff] %v1169_v0  ;;  %v656_v3 = vmul.f32 %v472_v60, %v472_v60 }
  0xfa   : > { %v874_v1 = vpop.f32.mrf.mxu0  ;;  %v1174_v5 = vpop.f32.mrf.mxu1 }
  0xfb   : > { %v618_v2 = vadd.f32 %v617_v63, %v472_v60  ;;  %v686_v4 = vadd.f32 %v685_v62, %v655_v61  ;;  %590 = vst [vmem:[%s1141_s17 + $0x38] sm:$0xff] %v874_v1  ;;  %606 = vst [vmem:[%s1141_s17 + $0xb8] sm:$0xff] %v1174_v5  ;;  %v659_v19 = vmul.f32 %v874_v1, %v874_v1 }
  0xfc   : > { %v475_v6 = vpop.f32.mrf.mxu0  ;;  %v1179_v11 = vpop.f32.mrf.mxu1  ;;  %v668_v62 = vmul.f32 %v1149_v47, %v1149_v47 }
  0xfd   : > { %v687_v7 = vadd.f32 %v686_v4, %v656_v3  ;;  %588 = vst [vmem:[%s1141_s17 + $0x28] sm:$0xff] %v475_v6  ;;  %v619_v8 = vadd.f32 %v618_v2, %v475_v6  ;;  %v657_v10 = vmul.f32 %v475_v6, %v475_v6  ;;  %604 = vst [vmem:[%s1141_s17 + $0xa8] sm:$0xff] %v1179_v11 }
  0xfe   : > { %v877_v12 = vpop.f32.mrf.mxu0  ;;  %v1184_v17 = vpop.f32.mrf.mxu1  ;;  %v669_v3 = vmul.f32 %v1159_v54, %v1159_v54  ;;  %v670_v6 = vmul.f32 %v1144_v45, %v1144_v45 }
  0xff   : > { %v620_v15 = vadd.f32 %v873_v55, %v619_v8  ;;  %v688_v16 = vadd.f32 %v687_v7, %v657_v10  ;;  %593 = vst [vmem:[%s1141_s17 + $0x50] sm:$0xff] %v877_v12  ;;  %609 = vst [vmem:[%s1141_s17 + $0xd0] sm:$0xff] %v1184_v17  ;;  %v662_v34 = vmul.f32 %v877_v12, %v877_v12 }
 0x100   : > { %v488_v18 = vpop.f32.mrf.mxu0  ;;  %v1189_v22 = vpop.f32.mrf.mxu1  ;;  %v671_v10 = vmul.f32 %v1154_v49, %v1154_v49 }
 0x101   : > { %v689_v20 = vadd.f32 %v688_v16, %v658_v13  ;;  %591 = vst [vmem:[%s1141_s17 + $0x40] sm:$0xff] %v488_v18  ;;  %v621_v21 = vadd.f32 %v874_v1, %v620_v15  ;;  %607 = vst [vmem:[%s1141_s17 + $0xc0] sm:$0xff] %v1189_v22  ;;  %v660_v25 = vmul.f32 %v488_v18, %v488_v18 }
 0x102   : > { %v878_v23 = vpop.f32.mrf.mxu0  ;;  %v1194_v27 = vpop.f32.mrf.mxu1  ;;  %v672_v15 = vmul.f32 %v1169_v0, %v1169_v0 }
 0x103   : > { %v622_v24 = vadd.f32 %v621_v21, %v488_v18  ;;  %v690_v26 = vadd.f32 %v689_v20, %v659_v19  ;;  %594 = vst [vmem:[%s1141_s17 + $0x58] sm:$0xff] %v878_v23  ;;  %610 = vst [vmem:[%s1141_s17 + $0xd8] sm:$0xff] %v1194_v27  ;;  %v663_v39 = vmul.f32 %v878_v23, %v878_v23 }
 0x104   : > { %v491_v28 = vpop.f32.mrf.mxu0  ;;  %v1199_v32 = vpop.f32.mrf.mxu1  ;;  %v673_v19 = vmul.f32 %v1179_v11, %v1179_v11 }
 0x105   : > { %v691_v29 = vadd.f32 %v690_v26, %v660_v25  ;;  %592 = vst [vmem:[%s1141_s17 + $0x48] sm:$0xff] %v491_v28  ;;  %v623_v30 = vadd.f32 %v622_v24, %v491_v28  ;;  %v661_v31 = vmul.f32 %v491_v28, %v491_v28  ;;  %608 = vst [vmem:[%s1141_s17 + $0xc8] sm:$0xff] %v1199_v32 }
 0x106   : > { %v881_v33 = vpop.f32.mrf.mxu0  ;;  %v1204_v37 = vpop.f32.mrf.mxu1  ;;  %v676_v25 = vmul.f32 %v1189_v22, %v1189_v22 }
 0x107   : > { %v624_v35 = vadd.f32 %v877_v12, %v623_v30  ;;  %v692_v36 = vadd.f32 %v691_v29, %v661_v31  ;;  %597 = vst [vmem:[%s1141_s17 + $0x70] sm:$0xff] %v881_v33  ;;  %613 = vst [vmem:[%s1141_s17 + $0xf0] sm:$0xff] %v1204_v37  ;;  %v666_v55 = vmul.f32 %v881_v33, %v881_v33 }
 0x108   : > { %v504_v38 = vpop.f32.mrf.mxu0  ;;  %v568_v9 = vpop.f32.mrf.mxu1  ;;  %v677_v29 = vmul.f32 %v1199_v32, %v1199_v32 }
 0x109   : > { %v693_v40 = vadd.f32 %v692_v36, %v662_v34  ;;  %595 = vst [vmem:[%s1141_s17 + $0x60] sm:$0xff] %v504_v38  ;;  %v625_v41 = vadd.f32 %v878_v23, %v624_v35  ;;  %611 = vst [vmem:[%s1141_s17 + $0xe0] sm:$0xff] %v568_v9  ;;  %v664_v44 = vmul.f32 %v504_v38, %v504_v38 }
 0x10a   : > { %v882_v42 = vpop.f32.mrf.mxu0  ;;  %v898_v46 = vpop.f32.mrf.mxu1  ;;  %v680_v35 = vmul.f32 %v568_v9, %v568_v9 }
 0x10b   : > { %v626_v43 = vadd.f32 %v625_v41, %v504_v38  ;;  %v694_v14 = vadd.f32 %v693_v40, %v663_v39  ;;  %598 = vst [vmem:[%s1141_s17 + $0x78] sm:$0xff] %v882_v42  ;;  %614 = vst [vmem:[%s1141_s17 + $0xf8] sm:$0xff] %v898_v46  ;;  %v667_v58 = vmul.f32 %v882_v42, %v882_v42 }
 0x10c   : > { %v507_v48 = vpop.f32.mrf.mxu0  ;;  %v571_v53 = vpop.f32.mrf.mxu1  ;;  %v682_v40 = vmul.f32 %v1204_v37, %v1204_v37 }
 0x10d   : > { %v695_v50 = vadd.f32 %v694_v14, %v664_v44  ;;  %596 = vst [vmem:[%s1141_s17 + $0x68] sm:$0xff] %v507_v48  ;;  %v627_v51 = vadd.f32 %v626_v43, %v507_v48  ;;  %v665_v52 = vmul.f32 %v507_v48, %v507_v48  ;;  %612 = vst [vmem:[%s1141_s17 + $0xe8] sm:$0xff] %v571_v53 }
 0x10f   : > { %v628_v56 = vadd.f32 %v881_v33, %v627_v51  ;;  %v696_v57 = vadd.f32 %v695_v50, %v665_v52 }
 0x111   : > { %v629_v60 = vadd.f32 %v882_v42, %v628_v56  ;;  %v697_v61 = vadd.f32 %v696_v57, %v666_v55  ;;  %v683_v42 = vmul.f32 %v898_v46, %v898_v46 }
 0x113   : > { %v698_v63 = vadd.f32 %v697_v61, %v667_v58  ;;  %v630_v1 = vadd.f32 %v629_v60, %v1149_v47 }
 0x115   : > { %v631_v2 = vadd.f32 %v630_v1, %v1159_v54  ;;  %v699_v4 = vadd.f32 %v698_v63, %v668_v62 }
 0x117   : > { %v632_v7 = vadd.f32 %v1144_v45, %v631_v2  ;;  %v700_v8 = vadd.f32 %v699_v4, %v669_v3  ;;  %v674_v45 = vmul.f32 %v1164_v59, %v1164_v59 }
 0x119   : > { %v701_v12 = vadd.f32 %v700_v8, %v670_v6  ;;  %v633_v13 = vadd.f32 %v1154_v49, %v632_v7  ;;  %v675_v49 = vmul.f32 %v1174_v5, %v1174_v5 }
 0x11b   : > { %v634_v47 = vadd.f32 %v633_v13, %v1169_v0  ;;  %v702_v16 = vadd.f32 %v701_v12, %v671_v10 }
 0x11d   : > { %v703_v54 = vadd.f32 %v702_v16, %v672_v15  ;;  %v635_v18 = vadd.f32 %v634_v47, %v1179_v11 }
 0x11f   : > { %v636_v20 = vadd.f32 %v1164_v59, %v635_v18  ;;  %v704_v21 = vadd.f32 %v703_v54, %v673_v19  ;;  %v678_v59 = vmul.f32 %v1184_v17, %v1184_v17 }
 0x121   : > { %v705_v23 = vadd.f32 %v704_v21, %v674_v45  ;;  %v637_v24 = vadd.f32 %v1174_v5, %v636_v20  ;;  %v679_v5 = vmul.f32 %v1194_v27, %v1194_v27 }
 0x123   : > { %v638_v0 = vadd.f32 %v637_v24, %v1189_v22  ;;  %v706_v26 = vadd.f32 %v705_v23, %v675_v49 }
 0x125   : > { %v707_v28 = vadd.f32 %v706_v26, %v676_v25  ;;  %v639_v11 = vadd.f32 %v638_v0, %v1199_v32  ;;  %v681_v32 = vmul.f32 %v571_v53, %v571_v53 }
 0x127   : > { %v640_v30 = vadd.f32 %v1184_v17, %v639_v11  ;;  %v708_v31 = vadd.f32 %v707_v28, %v677_v29 }
 0x129   : > { %v709_v33 = vadd.f32 %v708_v31, %v678_v59  ;;  %v641_v22 = vadd.f32 %v1194_v27, %v640_v30 }
 0x12b   : > { %v642_v34 = vadd.f32 %v641_v22, %v568_v9  ;;  %v710_v36 = vadd.f32 %v709_v33, %v679_v5 }
 0x12d   : > { %v711_v38 = vadd.f32 %v710_v36, %v680_v35  ;;  %v643_v39 = vadd.f32 %v642_v34, %v571_v53 }
 0x12f   : > { %v644_v17 = vadd.f32 %v1204_v37, %v643_v39  ;;  %v712_v41 = vadd.f32 %v711_v38, %v681_v32 }
 0x131   : > { %v645_v43 = vadd.f32 %v898_v46, %v644_v17  ;;  %v713_v44 = vadd.f32 %v712_v41, %v682_v40 }
 0x133   : > { %v646_v14 = vrot.slane %v645_v43, 4  ;;  %v714_v48 = vadd.f32 %v713_v44, %v683_v42 }
 0x135   : > { %v647_v27 = vadd.f32 %v646_v14, %v645_v43  ;;  %v715_v50 = vrot.slane %v714_v48, 4 }
 0x137   : > { %v648_v9 = vrot.slane %v647_v27, 2  ;;  %v716_v51 = vadd.f32 %v715_v50, %v714_v48 }
 0x139   : > { %v649_v52 = vadd.f32 %v648_v9, %v647_v27  ;;  %v717_v55 = vrot.slane %v716_v51, 2 }
 0x13b   : > { %v650_v53 = vrot.slane %v649_v52, 1  ;;  %v718_v56 = vadd.f32 %v717_v55, %v716_v51 }
 0x13d   : > { %v719_v57 = vrot.slane %v718_v56, 1  ;;  %v651_v37 = vadd.f32 %v650_v53, %v649_v52 }
 0x13f   : > { %v720_v58 = vadd.f32 %v719_v57, %v718_v56 }
 0x141   : > { %v722_v46 = vsel %vm721_vm0, %v651_v37, %v720_v58 }
 0x142   : > { %v724_v60 = vsel %vm723_vm1, %v722_v46, 0.0 }
 0x143   : > { %725 = vst [vmem:[%s238_s21] sm:$0xff] %v724_v60 }
 0x144 PF: > { %s16_s18 = sadd.s32 1, %s929_s18  }
 0x145   : > { %p13_p5 = scmp.ge.s32.totalorder %s16_s18, 4  }
 0x147   :  { %15 = sbr.rel (!%p13_p5) target bundleno = 1 (0x1), region = 78 }

// kernel: bottleneck_b_pallas.4
= control target key start
LH: loop header
LB: loop body
LE: loop exit
PB: predicated region body
PF: predicated region fallthrough
CT: control target
= control target key end

     0   :  { %11 = vsyncpa [#allocation3], 0  ;;  %s1792_s0 = inlined_call_operand.hbm [shape: f32[512,128], index: 0, kind: input, shape index: {}]   ;;  %s1793_s1 = inlined_call_operand.hbm [shape: f32[128,128], index: 1, kind: input, shape index: {}]   ;;  %s1794_s2 = inlined_call_operand.hbm [shape: f32[128,128], index: 2, kind: input, shape index: {}]   ;;  %s1795_s3 = inlined_call_operand.vmem [shape: f32[512,128], index: 3, kind: output, shape index: {0}]   ;;  %s1796_s4 = inlined_call_operand.vmem [shape: f32[512,128], index: 4, kind: output, shape index: {1}]   ;;  %s1797_s5 = inlined_call_operand.vmem [shape: f32[2,8,128], index: 5, kind: output, shape index: {2}]  }
   0x1   :  { %13 = vsyncpa [#allocation3 + $0x1], 0 }
   0x2   :  { %14 = vsyncpa [#allocation5], 0  ;;  %s1537_s18 = smov 0   ;;  %s1539_s19 = smov 0  }
   0x3   :  { %s1541_s20 = smov 0   ;;  %s1543_s21 = smov 0  }
   0x4 LB: > { %s1556_s22 = sadd.s32 4294967295, %s1500_s21   ;;  %p40_p0 = scmp.ne.s32.totalorder %s1492_s19, %s1488_s18  ;;  %s1500_s21 = sphi %s1543_s21, %s1812_s21   ;;  %s1496_s20 = sphi %s1541_s20, %s1811_s20   ;;  %s1492_s19 = sphi %s1539_s19, %s1810_s19   ;;  %s1488_s18 = sphi %s1537_s18, %s1809_s18  }
   0x5   : > { %p1798_p1 = scmp.eq.s32.totalorder %s1556_s22, 0  ;;  %p1157_p2 = scmp.ge.s32.totalorder %s1500_s21, 1 }
   0x6   : > { %p171_p3 = scmp.lt.s32.totalorder %s1500_s21, 3  ;;  %s1502_s25 = smov [#allocation4]  }
   0x7   : > { %p1564_p4 = por %p1798_p1, %p40_p0  ;;  %s183_s26 = sshll.u32 %s1502_s25, 4  ;;  %s184_s26 = int_to_ptr.vmem [resolvable:$true] %s183_s26 }
   0x8   : > { %p1568_p5 = pnand %p1157_p2, %p171_p3  ;;  %s1503_s28 = smov [#allocation6]  }
   0x9   : > { %s1801_s23 = scalar_select %p1564_p4, 1, 0 }
   0xa   : > { %s1802_s24 = scalar_select %p1568_p5, 1, 0 }
   0xb   : > { %p1330_p6 = pneg %p1568_p5  ;;  %s196_s29 = sshll.u32 %s1503_s28, 4  ;;  %s197_s29 = int_to_ptr.vmem [resolvable:$true] %s196_s29 }
   0xc   : > { %s1393_s30 = scalar_lea.vmem %s184_s26, 2048  ;;  %p1401_p12 = scmp.lt.s32.totalorder %s184_s26, %s184_s26 }
   0xd   : > { %p1576_p7 = pnand %p1330_p6, %p1798_p1  ;;  %p1394_p9 = scmp.ne.s32.totalorder %s184_s26, %s1393_s30 }
   0xe   : > { %p1402_p13 = scmp.lt.s32.totalorder %s1393_s30, %s1393_s30 }
   0xf   : > { %p1384_p8 = pneg %p1576_p7 }
  0x10   : > { %p1403_p0 = por %p1402_p13, %p1401_p12 }
  0x11   : > { %p1396_p10 = pnand %p1394_p9, %p1384_p8 }
  0x13   : > { %p1397_p11 = pneg %p1396_p10 }
  0x15   : > { %p1404_p2 = pnand %p1403_p0, %p1397_p11 }
  0x17   : > { %1407 = shalt.err (!%p1404_p2)
}
  0x18   : > { %s1504_s6 = smov 128   ;;  %s1505_s7 = smov 8  }
  0x19   : > { %1333 = dma.hbm_to_vmem [thread:$0]  (!%p1576_p7), %s1793_s1, 2048, %s184_s26, [#allocation5], %s1504_s6, %s1504_s6, %s1505_s7  }
  0x1a   : > { %s1419_s10 = scalar_lea.vmem %s197_s29, 2048  ;;  %p1427_p10 = scmp.lt.s32.totalorder %s197_s29, %s197_s29 }
  0x1b   : > { %p1420_p3 = scmp.ne.s32.totalorder %s197_s29, %s1419_s10  ;;  %p1428_p11 = scmp.lt.s32.totalorder %s1419_s10, %s1419_s10 }
  0x1d   : > { %p1422_p6 = pnand %p1420_p3, %p1384_p8  ;;  %p1429_p12 = por %p1428_p11, %p1427_p10 }
  0x1f   : > { %p1423_p9 = pneg %p1422_p6 }
  0x21   : > { %p1430_p13 = pnand %p1429_p12, %p1423_p9 }
  0x23   : > { %1433 = shalt.err (!%p1430_p13)
}
  0x24   : > { %1336 = dma.hbm_to_vmem [thread:$0]  (!%p1576_p7), %s1794_s2, 2048, %s197_s29, [#allocation5], %s1504_s6, %s1504_s6, %s1505_s7  }
  0x25   : > { %s1605_s13 = sadd.s32 1, %s1500_s21   ;;  %s27_s14 = sadd.s32 1, %s1496_s20 }
  0x26   : > { %s24_s15 = ssub.s32 %s1500_s21, %s1605_s13  ;;  %p34_p8 = scmp.ne.s32.totalorder %s1496_s20, %s1492_s19 }
  0x27   : > { %p25_p0 = scmp.eq.s32.totalorder %s24_s15, 0  ;;  %p35_p2 = scmp.eq.s32.totalorder %s1500_s21, 0 }
  0x28   : > { %p1343_p3 = scmp.lt.s32.totalorder %s1500_s21, 2  ;;  %s210_s16 = sand.u32 1, %s1496_s20  }
  0x29   : > { %s1616_s17 = scalar_select %p25_p0, %s1496_s20, %s27_s14  }
  0x2a   : > { %p36_p6 = por %p35_p2, %p34_p8  ;;  %s1161_s18 = sshll.u32 %s210_s16, 8 }
  0x2b   : > { %s1175_s25 = sshll.u32 %s1500_s21, 12  ;;  %s214_s29 = scalar_lea.vmem [#allocation2], %s1161_s18 }
  0x2c   : > { %s1622_s28 = scalar_lea.hbm %s1792_s0, %s1175_s25  ;;  %s221_s30 = sshll.u32 %s214_s29, 4  ;;  %s1628_s30 = int_to_ptr.vmem [resolvable:$true] %s221_s30 }
  0x2d   : > { %p1624_p7 = pnand %p1343_p3, %p36_p6  ;;  %s1630_s9 = scalar_lea.sflag [#allocation3], %s210_s16 }
  0x2e   : > { %s1434_s21 = scalar_lea.hbm %s1622_s28, 4096  ;;  %s1439_s12 = scalar_lea.hbm %s1792_s0, 8192 }
  0x2f   : > { %p1435_p9 = scmp.ne.s32.totalorder %s1622_s28, %s1434_s21  ;;  %p1436_p10 = pneg %p1624_p7 }
  0x30   : > { %p1440_p13 = scmp.lt.s32.totalorder %s1622_s28, %s1792_s0  ;;  %p1441_p8 = scmp.lt.s32.totalorder %s1439_s12, %s1434_s21 }
  0x31   : > { %p1437_p11 = pnand %p1436_p10, %p1435_p9 }
  0x32   : > { %p1442_p0 = por %p1441_p8, %p1440_p13 }
  0x33   : > { %p1438_p12 = pneg %p1437_p11 }
  0x35   : > { %p1443_p2 = pnand %p1442_p0, %p1438_p12 }
  0x37   : > { %1446 = shalt.err (!%p1443_p2)
}
  0x38   : > { %s1447_s16 = scalar_lea.vmem %s1628_s30, 4096  ;;  %s1506_s18 = smov [#allocation2]  }
  0x39   : > { %p1448_p3 = scmp.ne.s32.totalorder %s1628_s30, %s1447_s16  ;;  %s1452_s25 = sshll.u32 %s1506_s18, 4  ;;  %s1453_s25 = int_to_ptr.vmem [resolvable:$false] %s1452_s25 }
  0x3a   : > { %s1454_s26 = scalar_lea.vmem %s1453_s25, 8192  ;;  %p1455_p11 = scmp.lt.s32.totalorder %s1628_s30, %s1453_s25 }
  0x3b   : > { %p1450_p6 = pnand %p1448_p3, %p1436_p10  ;;  %p1456_p1 = scmp.lt.s32.totalorder %s1454_s26, %s1447_s16 }
  0x3d   : > { %p1451_p9 = pneg %p1450_p6  ;;  %p1457_p4 = por %p1456_p1, %p1455_p11 }
  0x3f   : > { %p1458_p5 = pnand %p1457_p4, %p1451_p9 }
  0x41   : > { %1461 = shalt.err (!%p1458_p5)
}
  0x42   : > { %1340 = dma.hbm_to_vmem [thread:$0]  (!%p1624_p7), %s1622_s28, 4096, %s1628_s30, %s1630_s9, %s1504_s6, %s1504_s6, %s1505_s7  }
  0x43   : > { %p1805_p10 = scmp.ne.s32.totalorder %s1802_s24, 0 }
  0x44   : > { %s235_s27 = sand.u32 (!%p1805_p10), 1, %s1492_s19   ;;  %p1806_p1 = scmp.ne.s32.totalorder (!%p1805_p10), %s1801_s23, 0 }
  0x45   : > { %233 = sbr.rel (%p1805_p10) target bundleno = 393 (0x189), region = 32  ;;  %s1165_s29 = sshll.u32 (!%p1805_p10), %s235_s27, 8 }
  0x46   : > { %s236_s21 = scalar_lea.sflag (!%p1805_p10), [#allocation3], %s235_s27  ;;  %s1657_s10 = scalar_lea.vmem (!%p1805_p10), [#allocation2], %s1165_s29 }
  0x4a   : > { %1479 = dma.done.wait (%p1806_p1), %s236_s21, 4096  }
  0x4b   : > { %1481 = vsyncadd (%p1806_p1), %s236_s21, 4294963200  ;;  %p1807_p4 = scmp.eq.s32.totalorder %s1556_s22, 0 }
  0x4d   : > { %1483 = dma.done.wait (%p1807_p4), [#allocation5], 4096   ;;  %p1808_p5 = pmov %p1807_p4 }
  0x4e   : > { %v363_v0 = vld [vmem:[#allocation4 + $0x70] sm:$0xff]  ;;  %v364_v1 = vld [vmem:[#allocation4 + $0x78] sm:$0xff]  ;;  %v361_v5 = vld [vmem:[#allocation4 + $0x60] sm:$0xff]  ;;  %s1168_s23 = sshll.u32 %s1556_s22, 5  ;;  %p296_p12 = scmp.lt.s32.totalorder %s1556_s22, 1  ;;  %vm995_vm0 = vcmask 1040384  }
  0x4f   : > { %1485 = vsyncadd (%p1808_p5), [#allocation5], 4294963200  ;;  %v548_v2 = vld [vmem:[#allocation6 + $0x70] sm:$0xff]  ;;  %v372_v3 = vpack.c.bf16 %v364_v1, %v363_v0  ;;  %v549_v4 = vld [vmem:[#allocation6 + $0x78] sm:$0xff]  ;;  %p285_p7 = scmp.lt.s32.totalorder %s1168_s23, 63  ;;  %vm997_vm1 = vcmask 1041408  }
  0x50   : > { %v362_v6 = vld [vmem:[#allocation4 + $0x68] sm:$0xff]  ;;  %v557_v7 = vpack.c.bf16 %v549_v4, %v548_v2  ;;  %v546_v9 = vld [vmem:[#allocation6 + $0x60] sm:$0xff]  ;;  %v359_v11 = vld [vmem:[#allocation4 + $0x50] sm:$0xff]  ;;  %s1816_s22 = smov (!%p296_p12, %s1556_s22), 1  ;;  %vm999_vm2 = vcmask 1042432   ;;  %vm1001_vm3 = vcmask 1043456  }
  0x51   : > { %v371_v8 = vpack.c.bf16 %v362_v6, %v361_v5  ;;  %v547_v10 = vld [vmem:[#allocation6 + $0x68] sm:$0xff]  ;;  %1224 = vmatprep.subr.bf16.mxu0 %v372_v3  ;;  %v360_v13 = vld [vmem:[#allocation4 + $0x58] sm:$0xff]  ;;  %v544_v14 = vld [vmem:[#allocation6 + $0x50] sm:$0xff]  ;;  %s1814_s23 = smov (!%p285_p7, %s1168_s23), 63  ;;  %s1172_s11 = sshll.u32 %s1816_s22, 3 }
  0x52   : > { %v556_v12 = vpack.c.bf16 %v547_v10, %v546_v9  ;;  %v545_v15 = vld [vmem:[#allocation6 + $0x58] sm:$0xff]  ;;  %1272 = vmatprep.subr.bf16.mxu1 %v557_v7  ;;  %1225 = vmatpush3.bf16.msra.mxu0 %v372_v3  ;;  %v370_v16 = vpack.c.bf16 %v360_v13, %v359_v11  ;;  %v357_v18 = vld [vmem:[#allocation4 + $0x40] sm:$0xff]  ;;  %v358_v19 = vld [vmem:[#allocation4 + $0x48] sm:$0xff]  ;;  %s1169_s24 = sshll.u32 %s1814_s23, 3  ;;  %s299_s15 = scalar_lea.vmem %s1797_s5, %s1172_s11 }
  0x53   : > { %1273 = vmatpush3.bf16.msra.mxu1 %v557_v7  ;;  %1226 = vmatprep.subr.bf16.mxu0 %v371_v8  ;;  %v555_v17 = vpack.c.bf16 %v545_v15, %v544_v14  ;;  %v542_v20 = vld [vmem:[#allocation6 + $0x40] sm:$0xff]  ;;  %v543_v21 = vld [vmem:[#allocation6 + $0x48] sm:$0xff]  ;;  %v369_v22 = vpack.c.bf16 %v358_v19, %v357_v18  ;;  %v355_v24 = vld [vmem:[#allocation4 + $0x30] sm:$0xff]  ;;  %s1703_s28 = scalar_lea.vmem %s1795_s3, %s1169_s24  ;;  %s1708_s9 = scalar_lea.vmem %s1796_s4, %s1169_s24 }
  0x54   : > { %1274 = vmatprep.subr.bf16.mxu1 %v556_v12  ;;  %v554_v23 = vpack.c.bf16 %v543_v21, %v542_v20  ;;  %v356_v25 = vld [vmem:[#allocation4 + $0x38] sm:$0xff]  ;;  %v301_v26 = vld [vmem:[%s1657_s10] sm:$0xff]  ;;  %v540_v27 = vld [vmem:[#allocation6 + $0x30] sm:$0xff] }
  0x55   : > { %v541_v28 = vld [vmem:[#allocation6 + $0x38] sm:$0xff]  ;;  %v302_v29 = vld [vmem:[%s1657_s10 + $0x8] sm:$0xff]  ;;  %v368_v31 = vpack.c.bf16 %v356_v25, %v355_v24  ;;  %v353_v33 = vld [vmem:[#allocation4 + $0x20] sm:$0xff] }
  0x56   : > { %1227 = vmatpush3.bf16.msra.mxu0 %v371_v8  ;;  %v333_v30 = vpack.c.bf16 %v302_v29, %v301_v26  ;;  %v553_v32 = vpack.c.bf16 %v541_v28, %v540_v27  ;;  %v354_v34 = vld [vmem:[#allocation4 + $0x28] sm:$0xff]  ;;  %v538_v35 = vld [vmem:[#allocation6 + $0x20] sm:$0xff]  ;;  %v351_v39 = vld [vmem:[#allocation4 + $0x10] sm:$0xff] }
  0x57   : > { %1275 = vmatpush3.bf16.msra.mxu1 %v556_v12  ;;  %1228 = vmatprep.subr.bf16.mxu0 %v370_v16  ;;  %v539_v36 = vld [vmem:[#allocation6 + $0x28] sm:$0xff]  ;;  %v367_v37 = vpack.c.bf16 %v354_v34, %v353_v33  ;;  %v352_v40 = vld [vmem:[#allocation4 + $0x18] sm:$0xff]  ;;  %v536_v41 = vld [vmem:[#allocation6 + $0x10] sm:$0xff] }
  0x58   : > { %1276 = vmatprep.subr.bf16.mxu1 %v555_v17  ;;  %1240 = vmatprep.mubr.bf16.mxu0 %v333_v30  ;;  %v552_v38 = vpack.c.bf16 %v539_v36, %v538_v35  ;;  %v537_v42 = vld [vmem:[#allocation6 + $0x18] sm:$0xff]  ;;  %v366_v43 = vpack.c.bf16 %v352_v40, %v351_v39  ;;  %v349_v45 = vld [vmem:[#allocation4] sm:$0xff]  ;;  %v350_v46 = vld [vmem:[#allocation4 + $0x8] sm:$0xff] }
  0x59   : > { %1288 = vmatprep.mubr.bf16.mxu1 %v333_v30  ;;  %v551_v44 = vpack.c.bf16 %v537_v42, %v536_v41  ;;  %v534_v47 = vld [vmem:[#allocation6] sm:$0xff]  ;;  %v535_v48 = vld [vmem:[#allocation6 + $0x8] sm:$0xff]  ;;  %v365_v49 = vpack.c.bf16 %v350_v46, %v349_v45  ;;  %v303_v51 = vld [vmem:[%s1657_s10 + $0x10] sm:$0xff] }
  0x5a   : > { %1229 = vmatpush3.bf16.msra.mxu0 %v370_v16  ;;  %v550_v50 = vpack.c.bf16 %v535_v48, %v534_v47  ;;  %v304_v52 = vld [vmem:[%s1657_s10 + $0x18] sm:$0xff]  ;;  %v305_v53 = vld [vmem:[%s1657_s10 + $0x20] sm:$0xff]  ;;  %v306_v54 = vld [vmem:[%s1657_s10 + $0x28] sm:$0xff] }
  0x5b   : > { %1277 = vmatpush3.bf16.msra.mxu1 %v555_v17  ;;  %1230 = vmatprep.subr.bf16.mxu0 %v369_v22  ;;  %v334_v55 = vpack.c.bf16 %v304_v52, %v303_v51  ;;  %v335_v56 = vpack.c.bf16 %v306_v54, %v305_v53  ;;  %v307_v57 = vld [vmem:[%s1657_s10 + $0x30] sm:$0xff]  ;;  %v308_v58 = vld [vmem:[%s1657_s10 + $0x38] sm:$0xff]  ;;  %v309_v59 = vld [vmem:[%s1657_s10 + $0x40] sm:$0xff] }
  0x5c   : > { %1278 = vmatprep.subr.bf16.mxu1 %v554_v23  ;;  %v310_v60 = vld [vmem:[%s1657_s10 + $0x48] sm:$0xff]  ;;  %v336_v61 = vpack.c.bf16 %v308_v58, %v307_v57  ;;  %v311_v63 = vld [vmem:[%s1657_s10 + $0x50] sm:$0xff]  ;;  %v312_v0 = vld [vmem:[%s1657_s10 + $0x58] sm:$0xff] }
  0x5d   : > { %v337_v62 = vpack.c.bf16 %v310_v60, %v309_v59  ;;  %v313_v1 = vld [vmem:[%s1657_s10 + $0x60] sm:$0xff]  ;;  %v314_v2 = vld [vmem:[%s1657_s10 + $0x68] sm:$0xff]  ;;  %v338_v3 = vpack.c.bf16 %v312_v0, %v311_v63  ;;  %v315_v5 = vld [vmem:[%s1657_s10 + $0x70] sm:$0xff] }
  0x5e   : > { %1231 = vmatpush3.bf16.msra.mxu0 %v369_v22  ;;  %v339_v4 = vpack.c.bf16 %v314_v2, %v313_v1  ;;  %v316_v6 = vld [vmem:[%s1657_s10 + $0x78] sm:$0xff]  ;;  %v317_v7 = vld [vmem:[%s1657_s10 + $0x80] sm:$0xff]  ;;  %v318_v8 = vld [vmem:[%s1657_s10 + $0x88] sm:$0xff] }
  0x5f   : > { %1279 = vmatpush3.bf16.msra.mxu1 %v554_v23  ;;  %1232 = vmatprep.subr.bf16.mxu0 %v368_v31  ;;  %v340_v9 = vpack.c.bf16 %v316_v6, %v315_v5  ;;  %v341_v10 = vpack.c.bf16 %v318_v8, %v317_v7  ;;  %v319_v11 = vld [vmem:[%s1657_s10 + $0x90] sm:$0xff]  ;;  %v320_v12 = vld [vmem:[%s1657_s10 + $0x98] sm:$0xff]  ;;  %v321_v13 = vld [vmem:[%s1657_s10 + $0xa0] sm:$0xff] }
  0x60   : > { %1280 = vmatprep.subr.bf16.mxu1 %v553_v32  ;;  %v322_v14 = vld [vmem:[%s1657_s10 + $0xa8] sm:$0xff]  ;;  %v342_v15 = vpack.c.bf16 %v320_v12, %v319_v11  ;;  %v323_v17 = vld [vmem:[%s1657_s10 + $0xb0] sm:$0xff]  ;;  %v324_v18 = vld [vmem:[%s1657_s10 + $0xb8] sm:$0xff] }
  0x61   : > { %v343_v16 = vpack.c.bf16 %v322_v14, %v321_v13  ;;  %v325_v19 = vld [vmem:[%s1657_s10 + $0xc0] sm:$0xff]  ;;  %v326_v20 = vld [vmem:[%s1657_s10 + $0xc8] sm:$0xff]  ;;  %v344_v21 = vpack.c.bf16 %v324_v18, %v323_v17  ;;  %v327_v23 = vld [vmem:[%s1657_s10 + $0xd0] sm:$0xff] }
  0x62   : > { %1233 = vmatpush3.bf16.msra.mxu0 %v368_v31  ;;  %v345_v22 = vpack.c.bf16 %v326_v20, %v325_v19  ;;  %v328_v24 = vld [vmem:[%s1657_s10 + $0xd8] sm:$0xff]  ;;  %v329_v25 = vld [vmem:[%s1657_s10 + $0xe0] sm:$0xff]  ;;  %v330_v26 = vld [vmem:[%s1657_s10 + $0xe8] sm:$0xff] }
  0x63   : > { %1281 = vmatpush3.bf16.msra.mxu1 %v553_v32  ;;  %1234 = vmatprep.subr.bf16.mxu0 %v367_v37  ;;  %v346_v27 = vpack.c.bf16 %v328_v24, %v327_v23  ;;  %v347_v28 = vpack.c.bf16 %v330_v26, %v329_v25  ;;  %v331_v29 = vld [vmem:[%s1657_s10 + $0xf0] sm:$0xff]  ;;  %v332_v30 = vld [vmem:[%s1657_s10 + $0xf8] sm:$0xff] }
  0x64   : > { %1282 = vmatprep.subr.bf16.mxu1 %v552_v38  ;;  %v348_v31 = vpack.c.bf16 %v332_v30, %v331_v29 }
  0x66   : > { %1235 = vmatpush3.bf16.msra.mxu0 %v367_v37 }
  0x67   : > { %1283 = vmatpush3.bf16.msra.mxu1 %v552_v38  ;;  %1236 = vmatprep.subr.bf16.mxu0 %v366_v43 }
  0x68   : > { %1284 = vmatprep.subr.bf16.mxu1 %v551_v44 }
  0x6a   : > { %1237 = vmatpush3.bf16.msra.mxu0 %v366_v43 }
  0x6b   : > { %1285 = vmatpush3.bf16.msra.mxu1 %v551_v44  ;;  %1238 = vmatprep.subr.bf16.mxu0 %v365_v49 }
  0x6c   : > { %1286 = vmatprep.subr.bf16.mxu1 %v550_v50 }
  0x6e   : > { %1239 = vmatpush3.bf16.msra.mxu0 %v365_v49 }
  0x6f   : > { %1287 = vmatpush3.bf16.msra.mxu1 %v550_v50 }
  0x71   : > { %1241 = vmatmul.mubr.bf16.vlgmr.msra.gmra.mxu0 %v334_v55 }
  0x72   : > { %1289 = vmatmul.mubr.bf16.vlgmr.msra.gmra.mxu1 %v334_v55  ;;  %1244 = vmatprep.mubr.bf16.mxu0 %v335_v56 }
  0x73   : > { %1292 = vmatprep.mubr.bf16.mxu1 %v335_v56 }
  0x79   : > { %1245 = vmatmul.mubr.bf16.gmra.mxu0 %v336_v61 }
  0x7a   : > { %1293 = vmatmul.mubr.bf16.gmra.mxu1 %v336_v61  ;;  %1248 = vmatprep.mubr.bf16.mxu0 %v337_v62 }
  0x7b   : > { %1296 = vmatprep.mubr.bf16.mxu1 %v337_v62 }
  0x81   : > { %1249 = vmatmul.mubr.bf16.gmra.mxu0 %v338_v3 }
  0x82   : > { %1297 = vmatmul.mubr.bf16.gmra.mxu1 %v338_v3  ;;  %1252 = vmatprep.mubr.bf16.mxu0 %v339_v4 }
  0x83   : > { %1300 = vmatprep.mubr.bf16.mxu1 %v339_v4 }
  0x89   : > { %1253 = vmatmul.mubr.bf16.gmra.mxu0 %v340_v9 }
  0x8a   : > { %1301 = vmatmul.mubr.bf16.gmra.mxu1 %v340_v9  ;;  %1256 = vmatprep.mubr.bf16.mxu0 %v341_v10 }
  0x8b   : > { %1304 = vmatprep.mubr.bf16.mxu1 %v341_v10 }
  0x91   : > { %1257 = vmatmul.mubr.bf16.gmra.mxu0 %v342_v15 }
  0x92   : > { %1305 = vmatmul.mubr.bf16.gmra.mxu1 %v342_v15  ;;  %1260 = vmatprep.mubr.bf16.mxu0 %v343_v16 }
  0x93   : > { %1308 = vmatprep.mubr.bf16.mxu1 %v343_v16 }
  0x99   : > { %1261 = vmatmul.mubr.bf16.gmra.mxu0 %v344_v21 }
  0x9a   : > { %1309 = vmatmul.mubr.bf16.gmra.mxu1 %v344_v21  ;;  %1264 = vmatprep.mubr.bf16.mxu0 %v345_v22 }
  0x9b   : > { %1312 = vmatprep.mubr.bf16.mxu1 %v345_v22 }
  0xa1   : > { %1265 = vmatmul.mubr.bf16.gmra.mxu0 %v346_v27 }
  0xa2   : > { %1313 = vmatmul.mubr.bf16.gmra.mxu1 %v346_v27  ;;  %1268 = vmatprep.mubr.bf16.mxu0 %v347_v28 }
  0xa3   : > { %1316 = vmatprep.mubr.bf16.mxu1 %v347_v28 }
  0xa9   : > { %1269 = vmatmul.mubr.bf16.gmra.mxu0 %v348_v31 }
  0xaa   : > { %1317 = vmatmul.mubr.bf16.gmra.mxu1 %v348_v31 }
 0x131   : > { %v1242_v32 = vpop.f32.mrf.mxu0 }
 0x132   : > { %721 = vst [vmem:[%s1703_s28 + $0x10] sm:$0xff] %v1242_v32  ;;  %v1290_v33 = vpop.f32.mrf.mxu1  ;;  %v822_v47 = vmul.f32 %v1242_v32, %v1242_v32 }
 0x133   : > { %753 = vst [vmem:[%s1708_s9 + $0x10] sm:$0xff] %v1290_v33  ;;  %v407_v34 = vpop.f32.mrf.mxu0  ;;  %v928_v51 = vmul.f32 %v1290_v33, %v1290_v33 }
 0x134   : > { %719 = vst [vmem:[%s1703_s28] sm:$0xff] %v407_v34  ;;  %v592_v35 = vpop.f32.mrf.mxu1  ;;  %v820_v39 = vmul.f32 %v407_v34, %v407_v34 }
 0x135   : > { %751 = vst [vmem:[%s1708_s9] sm:$0xff] %v592_v35  ;;  %v1243_v36 = vpop.f32.mrf.mxu0  ;;  %v926_v43 = vmul.f32 %v592_v35, %v592_v35 }
 0x136   : > { %722 = vst [vmem:[%s1703_s28 + $0x18] sm:$0xff] %v1243_v36  ;;  %v1291_v37 = vpop.f32.mrf.mxu1  ;;  %v823_v55 = vmul.f32 %v1243_v36, %v1243_v36 }
 0x137   : > { %754 = vst [vmem:[%s1708_s9 + $0x18] sm:$0xff] %v1291_v37  ;;  %v410_v38 = vpop.f32.mrf.mxu0  ;;  %v929_v59 = vmul.f32 %v1291_v37, %v1291_v37 }
 0x138   : > { %720 = vst [vmem:[%s1703_s28 + $0x8] sm:$0xff] %v410_v38  ;;  %v783_v40 = vadd.f32 %v410_v38, %v407_v34  ;;  %v821_v41 = vmul.f32 %v410_v38, %v410_v38  ;;  %v595_v42 = vpop.f32.mrf.mxu1 }
 0x139   : > { %752 = vst [vmem:[%s1708_s9 + $0x8] sm:$0xff] %v595_v42  ;;  %v889_v44 = vadd.f32 %v595_v42, %v592_v35  ;;  %v927_v45 = vmul.f32 %v595_v42, %v595_v42  ;;  %v1246_v46 = vpop.f32.mrf.mxu0 }
 0x13a   : > { %v784_v48 = vadd.f32 %v1242_v32, %v783_v40  ;;  %v852_v49 = vadd.f32 %v821_v41, %v820_v39  ;;  %725 = vst [vmem:[%s1703_s28 + $0x30] sm:$0xff] %v1246_v46  ;;  %v1294_v50 = vpop.f32.mrf.mxu1  ;;  %v826_v15 = vmul.f32 %v1246_v46, %v1246_v46 }
 0x13b   : > { %v890_v52 = vadd.f32 %v1290_v33, %v889_v44  ;;  %v958_v53 = vadd.f32 %v927_v45, %v926_v43  ;;  %757 = vst [vmem:[%s1708_s9 + $0x30] sm:$0xff] %v1294_v50  ;;  %v423_v54 = vpop.f32.mrf.mxu0  ;;  %v932_v19 = vmul.f32 %v1294_v50, %v1294_v50 }
 0x13c   : > { %v853_v56 = vadd.f32 %v852_v49, %v822_v47  ;;  %723 = vst [vmem:[%s1703_s28 + $0x20] sm:$0xff] %v423_v54  ;;  %v785_v57 = vadd.f32 %v1243_v36, %v784_v48  ;;  %v608_v58 = vpop.f32.mrf.mxu1  ;;  %v824_v0 = vmul.f32 %v423_v54, %v423_v54 }
 0x13d   : > { %v959_v60 = vadd.f32 %v958_v53, %v928_v51  ;;  %755 = vst [vmem:[%s1708_s9 + $0x20] sm:$0xff] %v608_v58  ;;  %v891_v61 = vadd.f32 %v1291_v37, %v890_v52  ;;  %v1247_v62 = vpop.f32.mrf.mxu0  ;;  %v930_v4 = vmul.f32 %v608_v58, %v608_v58 }
 0x13e   : > { %v786_v63 = vadd.f32 %v785_v57, %v423_v54  ;;  %v854_v1 = vadd.f32 %v853_v56, %v823_v55  ;;  %726 = vst [vmem:[%s1703_s28 + $0x38] sm:$0xff] %v1247_v62  ;;  %v1295_v2 = vpop.f32.mrf.mxu1  ;;  %v827_v23 = vmul.f32 %v1247_v62, %v1247_v62 }
 0x13f   : > { %v892_v3 = vadd.f32 %v891_v61, %v608_v58  ;;  %v960_v5 = vadd.f32 %v959_v60, %v929_v59  ;;  %758 = vst [vmem:[%s1708_s9 + $0x38] sm:$0xff] %v1295_v2  ;;  %v426_v6 = vpop.f32.mrf.mxu0  ;;  %v933_v27 = vmul.f32 %v1295_v2, %v1295_v2 }
 0x140   : > { %v855_v7 = vadd.f32 %v854_v1, %v824_v0  ;;  %724 = vst [vmem:[%s1703_s28 + $0x28] sm:$0xff] %v426_v6  ;;  %v787_v8 = vadd.f32 %v786_v63, %v426_v6  ;;  %v825_v9 = vmul.f32 %v426_v6, %v426_v6  ;;  %v611_v10 = vpop.f32.mrf.mxu1 }
 0x141   : > { %v961_v11 = vadd.f32 %v960_v5, %v930_v4  ;;  %756 = vst [vmem:[%s1708_s9 + $0x28] sm:$0xff] %v611_v10  ;;  %v893_v12 = vadd.f32 %v892_v3, %v611_v10  ;;  %v931_v13 = vmul.f32 %v611_v10, %v611_v10  ;;  %v1250_v14 = vpop.f32.mrf.mxu0 }
 0x142   : > { %v788_v16 = vadd.f32 %v1246_v46, %v787_v8  ;;  %v856_v17 = vadd.f32 %v855_v7, %v825_v9  ;;  %729 = vst [vmem:[%s1703_s28 + $0x50] sm:$0xff] %v1250_v14  ;;  %v1298_v18 = vpop.f32.mrf.mxu1  ;;  %v830_v47 = vmul.f32 %v1250_v14, %v1250_v14 }
 0x143   : > { %v894_v20 = vadd.f32 %v1294_v50, %v893_v12  ;;  %v962_v21 = vadd.f32 %v961_v11, %v931_v13  ;;  %761 = vst [vmem:[%s1708_s9 + $0x50] sm:$0xff] %v1298_v18  ;;  %v439_v22 = vpop.f32.mrf.mxu0  ;;  %v936_v51 = vmul.f32 %v1298_v18, %v1298_v18 }
 0x144   : > { %v857_v24 = vadd.f32 %v856_v17, %v826_v15  ;;  %727 = vst [vmem:[%s1703_s28 + $0x40] sm:$0xff] %v439_v22  ;;  %v789_v25 = vadd.f32 %v1247_v62, %v788_v16  ;;  %v624_v26 = vpop.f32.mrf.mxu1  ;;  %v828_v32 = vmul.f32 %v439_v22, %v439_v22 }
 0x145   : > { %v963_v28 = vadd.f32 %v962_v21, %v932_v19  ;;  %759 = vst [vmem:[%s1708_s9 + $0x40] sm:$0xff] %v624_v26  ;;  %v895_v29 = vadd.f32 %v1295_v2, %v894_v20  ;;  %v1251_v30 = vpop.f32.mrf.mxu0  ;;  %v934_v36 = vmul.f32 %v624_v26, %v624_v26 }
 0x146   : > { %v790_v31 = vadd.f32 %v789_v25, %v439_v22  ;;  %v858_v33 = vadd.f32 %v857_v24, %v827_v23  ;;  %730 = vst [vmem:[%s1703_s28 + $0x58] sm:$0xff] %v1251_v30  ;;  %v1299_v34 = vpop.f32.mrf.mxu1  ;;  %v831_v55 = vmul.f32 %v1251_v30, %v1251_v30 }
 0x147   : > { %v896_v35 = vadd.f32 %v895_v29, %v624_v26  ;;  %v964_v37 = vadd.f32 %v963_v28, %v933_v27  ;;  %762 = vst [vmem:[%s1708_s9 + $0x58] sm:$0xff] %v1299_v34  ;;  %v442_v38 = vpop.f32.mrf.mxu0  ;;  %v937_v59 = vmul.f32 %v1299_v34, %v1299_v34 }
 0x148   : > { %v859_v39 = vadd.f32 %v858_v33, %v828_v32  ;;  %728 = vst [vmem:[%s1703_s28 + $0x48] sm:$0xff] %v442_v38  ;;  %v791_v40 = vadd.f32 %v790_v31, %v442_v38  ;;  %v829_v41 = vmul.f32 %v442_v38, %v442_v38  ;;  %v627_v42 = vpop.f32.mrf.mxu1 }
 0x149   : > { %v965_v43 = vadd.f32 %v964_v37, %v934_v36  ;;  %760 = vst [vmem:[%s1708_s9 + $0x48] sm:$0xff] %v627_v42  ;;  %v897_v44 = vadd.f32 %v896_v35, %v627_v42  ;;  %v935_v45 = vmul.f32 %v627_v42, %v627_v42  ;;  %v1254_v46 = vpop.f32.mrf.mxu0 }
 0x14a   : > { %v792_v48 = vadd.f32 %v1250_v14, %v791_v40  ;;  %v860_v49 = vadd.f32 %v859_v39, %v829_v41  ;;  %733 = vst [vmem:[%s1703_s28 + $0x70] sm:$0xff] %v1254_v46  ;;  %v1302_v50 = vpop.f32.mrf.mxu1  ;;  %v834_v15 = vmul.f32 %v1254_v46, %v1254_v46 }
 0x14b   : > { %v898_v52 = vadd.f32 %v1298_v18, %v897_v44  ;;  %v966_v53 = vadd.f32 %v965_v43, %v935_v45  ;;  %765 = vst [vmem:[%s1708_s9 + $0x70] sm:$0xff] %v1302_v50  ;;  %v455_v54 = vpop.f32.mrf.mxu0  ;;  %v940_v19 = vmul.f32 %v1302_v50, %v1302_v50 }
 0x14c   : > { %v861_v56 = vadd.f32 %v860_v49, %v830_v47  ;;  %731 = vst [vmem:[%s1703_s28 + $0x60] sm:$0xff] %v455_v54  ;;  %v793_v57 = vadd.f32 %v1251_v30, %v792_v48  ;;  %v640_v58 = vpop.f32.mrf.mxu1  ;;  %v832_v0 = vmul.f32 %v455_v54, %v455_v54 }
 0x14d   : > { %v967_v60 = vadd.f32 %v966_v53, %v936_v51  ;;  %763 = vst [vmem:[%s1708_s9 + $0x60] sm:$0xff] %v640_v58  ;;  %v899_v61 = vadd.f32 %v1299_v34, %v898_v52  ;;  %v1255_v62 = vpop.f32.mrf.mxu0  ;;  %v938_v4 = vmul.f32 %v640_v58, %v640_v58 }
 0x14e   : > { %v794_v63 = vadd.f32 %v793_v57, %v455_v54  ;;  %v862_v1 = vadd.f32 %v861_v56, %v831_v55  ;;  %734 = vst [vmem:[%s1703_s28 + $0x78] sm:$0xff] %v1255_v62  ;;  %v1303_v2 = vpop.f32.mrf.mxu1  ;;  %v835_v23 = vmul.f32 %v1255_v62, %v1255_v62 }
 0x14f   : > { %v900_v3 = vadd.f32 %v899_v61, %v640_v58  ;;  %v968_v5 = vadd.f32 %v967_v60, %v937_v59  ;;  %766 = vst [vmem:[%s1708_s9 + $0x78] sm:$0xff] %v1303_v2  ;;  %v458_v6 = vpop.f32.mrf.mxu0  ;;  %v941_v27 = vmul.f32 %v1303_v2, %v1303_v2 }
 0x150   : > { %v863_v7 = vadd.f32 %v862_v1, %v832_v0  ;;  %732 = vst [vmem:[%s1703_s28 + $0x68] sm:$0xff] %v458_v6  ;;  %v795_v8 = vadd.f32 %v794_v63, %v458_v6  ;;  %v833_v9 = vmul.f32 %v458_v6, %v458_v6  ;;  %v643_v10 = vpop.f32.mrf.mxu1 }
 0x151   : > { %v969_v11 = vadd.f32 %v968_v5, %v938_v4  ;;  %764 = vst [vmem:[%s1708_s9 + $0x68] sm:$0xff] %v643_v10  ;;  %v901_v12 = vadd.f32 %v900_v3, %v643_v10  ;;  %v939_v13 = vmul.f32 %v643_v10, %v643_v10  ;;  %v1258_v14 = vpop.f32.mrf.mxu0 }
 0x152   : > { %v796_v16 = vadd.f32 %v1254_v46, %v795_v8  ;;  %v864_v17 = vadd.f32 %v863_v7, %v833_v9  ;;  %737 = vst [vmem:[%s1703_s28 + $0x90] sm:$0xff] %v1258_v14  ;;  %v1306_v18 = vpop.f32.mrf.mxu1  ;;  %v838_v47 = vmul.f32 %v1258_v14, %v1258_v14 }
 0x153   : > { %v902_v20 = vadd.f32 %v1302_v50, %v901_v12  ;;  %v970_v21 = vadd.f32 %v969_v11, %v939_v13  ;;  %769 = vst [vmem:[%s1708_s9 + $0x90] sm:$0xff] %v1306_v18  ;;  %v471_v22 = vpop.f32.mrf.mxu0  ;;  %v944_v51 = vmul.f32 %v1306_v18, %v1306_v18 }
 0x154   : > { %v865_v24 = vadd.f32 %v864_v17, %v834_v15  ;;  %735 = vst [vmem:[%s1703_s28 + $0x80] sm:$0xff] %v471_v22  ;;  %v797_v25 = vadd.f32 %v1255_v62, %v796_v16  ;;  %v656_v26 = vpop.f32.mrf.mxu1  ;;  %v836_v32 = vmul.f32 %v471_v22, %v471_v22 }
 0x155   : > { %v971_v28 = vadd.f32 %v970_v21, %v940_v19  ;;  %767 = vst [vmem:[%s1708_s9 + $0x80] sm:$0xff] %v656_v26  ;;  %v903_v29 = vadd.f32 %v1303_v2, %v902_v20  ;;  %v1259_v30 = vpop.f32.mrf.mxu0  ;;  %v942_v36 = vmul.f32 %v656_v26, %v656_v26 }
 0x156   : > { %v798_v31 = vadd.f32 %v797_v25, %v471_v22  ;;  %v866_v33 = vadd.f32 %v865_v24, %v835_v23  ;;  %738 = vst [vmem:[%s1703_s28 + $0x98] sm:$0xff] %v1259_v30  ;;  %v1307_v34 = vpop.f32.mrf.mxu1  ;;  %v839_v55 = vmul.f32 %v1259_v30, %v1259_v30 }
 0x157   : > { %v904_v35 = vadd.f32 %v903_v29, %v656_v26  ;;  %v972_v37 = vadd.f32 %v971_v28, %v941_v27  ;;  %770 = vst [vmem:[%s1708_s9 + $0x98] sm:$0xff] %v1307_v34  ;;  %v474_v38 = vpop.f32.mrf.mxu0  ;;  %v945_v59 = vmul.f32 %v1307_v34, %v1307_v34 }
 0x158   : > { %v867_v39 = vadd.f32 %v866_v33, %v836_v32  ;;  %736 = vst [vmem:[%s1703_s28 + $0x88] sm:$0xff] %v474_v38  ;;  %v799_v40 = vadd.f32 %v798_v31, %v474_v38  ;;  %v837_v41 = vmul.f32 %v474_v38, %v474_v38  ;;  %v659_v42 = vpop.f32.mrf.mxu1 }
 0x159   : > { %v973_v43 = vadd.f32 %v972_v37, %v942_v36  ;;  %768 = vst [vmem:[%s1708_s9 + $0x88] sm:$0xff] %v659_v42  ;;  %v905_v44 = vadd.f32 %v904_v35, %v659_v42  ;;  %v943_v45 = vmul.f32 %v659_v42, %v659_v42  ;;  %v1262_v46 = vpop.f32.mrf.mxu0 }
 0x15a   : > { %v800_v48 = vadd.f32 %v1258_v14, %v799_v40  ;;  %v868_v49 = vadd.f32 %v867_v39, %v837_v41  ;;  %741 = vst [vmem:[%s1703_s28 + $0xb0] sm:$0xff] %v1262_v46  ;;  %v1310_v50 = vpop.f32.mrf.mxu1  ;;  %v842_v15 = vmul.f32 %v1262_v46, %v1262_v46 }
 0x15b   : > { %v906_v52 = vadd.f32 %v1306_v18, %v905_v44  ;;  %v974_v53 = vadd.f32 %v973_v43, %v943_v45  ;;  %773 = vst [vmem:[%s1708_s9 + $0xb0] sm:$0xff] %v1310_v50  ;;  %v487_v54 = vpop.f32.mrf.mxu0  ;;  %v948_v19 = vmul.f32 %v1310_v50, %v1310_v50 }
 0x15c   : > { %v869_v56 = vadd.f32 %v868_v49, %v838_v47  ;;  %739 = vst [vmem:[%s1703_s28 + $0xa0] sm:$0xff] %v487_v54  ;;  %v801_v57 = vadd.f32 %v1259_v30, %v800_v48  ;;  %v672_v58 = vpop.f32.mrf.mxu1  ;;  %v840_v0 = vmul.f32 %v487_v54, %v487_v54 }
 0x15d   : > { %v975_v60 = vadd.f32 %v974_v53, %v944_v51  ;;  %771 = vst [vmem:[%s1708_s9 + $0xa0] sm:$0xff] %v672_v58  ;;  %v907_v61 = vadd.f32 %v1307_v34, %v906_v52  ;;  %v1263_v62 = vpop.f32.mrf.mxu0  ;;  %v946_v4 = vmul.f32 %v672_v58, %v672_v58 }
 0x15e   : > { %v802_v63 = vadd.f32 %v801_v57, %v487_v54  ;;  %v870_v1 = vadd.f32 %v869_v56, %v839_v55  ;;  %742 = vst [vmem:[%s1703_s28 + $0xb8] sm:$0xff] %v1263_v62  ;;  %v1311_v2 = vpop.f32.mrf.mxu1  ;;  %v843_v23 = vmul.f32 %v1263_v62, %v1263_v62 }
 0x15f   : > { %v908_v3 = vadd.f32 %v907_v61, %v672_v58  ;;  %v976_v5 = vadd.f32 %v975_v60, %v945_v59  ;;  %774 = vst [vmem:[%s1708_s9 + $0xb8] sm:$0xff] %v1311_v2  ;;  %v490_v6 = vpop.f32.mrf.mxu0  ;;  %v949_v27 = vmul.f32 %v1311_v2, %v1311_v2 }
 0x160   : > { %v871_v7 = vadd.f32 %v870_v1, %v840_v0  ;;  %740 = vst [vmem:[%s1703_s28 + $0xa8] sm:$0xff] %v490_v6  ;;  %v803_v8 = vadd.f32 %v802_v63, %v490_v6  ;;  %v841_v9 = vmul.f32 %v490_v6, %v490_v6  ;;  %v675_v10 = vpop.f32.mrf.mxu1 }
 0x161   : > { %v977_v11 = vadd.f32 %v976_v5, %v946_v4  ;;  %772 = vst [vmem:[%s1708_s9 + $0xa8] sm:$0xff] %v675_v10  ;;  %v909_v12 = vadd.f32 %v908_v3, %v675_v10  ;;  %v947_v13 = vmul.f32 %v675_v10, %v675_v10  ;;  %v1266_v14 = vpop.f32.mrf.mxu0 }
 0x162   : > { %v804_v16 = vadd.f32 %v1262_v46, %v803_v8  ;;  %v872_v17 = vadd.f32 %v871_v7, %v841_v9  ;;  %745 = vst [vmem:[%s1703_s28 + $0xd0] sm:$0xff] %v1266_v14  ;;  %v1314_v18 = vpop.f32.mrf.mxu1  ;;  %v846_v47 = vmul.f32 %v1266_v14, %v1266_v14 }
 0x163   : > { %v910_v20 = vadd.f32 %v1310_v50, %v909_v12  ;;  %v978_v21 = vadd.f32 %v977_v11, %v947_v13  ;;  %777 = vst [vmem:[%s1708_s9 + $0xd0] sm:$0xff] %v1314_v18  ;;  %v503_v22 = vpop.f32.mrf.mxu0  ;;  %v952_v51 = vmul.f32 %v1314_v18, %v1314_v18 }
 0x164   : > { %v873_v24 = vadd.f32 %v872_v17, %v842_v15  ;;  %743 = vst [vmem:[%s1703_s28 + $0xc0] sm:$0xff] %v503_v22  ;;  %v805_v25 = vadd.f32 %v1263_v62, %v804_v16  ;;  %v688_v26 = vpop.f32.mrf.mxu1  ;;  %v844_v32 = vmul.f32 %v503_v22, %v503_v22 }
 0x165   : > { %v979_v28 = vadd.f32 %v978_v21, %v948_v19  ;;  %775 = vst [vmem:[%s1708_s9 + $0xc0] sm:$0xff] %v688_v26  ;;  %v911_v29 = vadd.f32 %v1311_v2, %v910_v20  ;;  %v1267_v30 = vpop.f32.mrf.mxu0  ;;  %v950_v36 = vmul.f32 %v688_v26, %v688_v26 }
 0x166   : > { %v806_v31 = vadd.f32 %v805_v25, %v503_v22  ;;  %v874_v33 = vadd.f32 %v873_v24, %v843_v23  ;;  %746 = vst [vmem:[%s1703_s28 + $0xd8] sm:$0xff] %v1267_v30  ;;  %v1315_v34 = vpop.f32.mrf.mxu1  ;;  %v847_v55 = vmul.f32 %v1267_v30, %v1267_v30 }
 0x167   : > { %v912_v35 = vadd.f32 %v911_v29, %v688_v26  ;;  %v980_v37 = vadd.f32 %v979_v28, %v949_v27  ;;  %778 = vst [vmem:[%s1708_s9 + $0xd8] sm:$0xff] %v1315_v34  ;;  %v506_v38 = vpop.f32.mrf.mxu0  ;;  %v953_v59 = vmul.f32 %v1315_v34, %v1315_v34 }
 0x168   : > { %v875_v39 = vadd.f32 %v874_v33, %v844_v32  ;;  %744 = vst [vmem:[%s1703_s28 + $0xc8] sm:$0xff] %v506_v38  ;;  %v807_v40 = vadd.f32 %v806_v31, %v506_v38  ;;  %v845_v41 = vmul.f32 %v506_v38, %v506_v38  ;;  %v691_v42 = vpop.f32.mrf.mxu1 }
 0x169   : > { %v981_v43 = vadd.f32 %v980_v37, %v950_v36  ;;  %776 = vst [vmem:[%s1708_s9 + $0xc8] sm:$0xff] %v691_v42  ;;  %v913_v44 = vadd.f32 %v912_v35, %v691_v42  ;;  %v951_v45 = vmul.f32 %v691_v42, %v691_v42  ;;  %v1270_v46 = vpop.f32.mrf.mxu0 }
 0x16a   : > { %v808_v48 = vadd.f32 %v1266_v14, %v807_v40  ;;  %v876_v49 = vadd.f32 %v875_v39, %v845_v41  ;;  %749 = vst [vmem:[%s1703_s28 + $0xf0] sm:$0xff] %v1270_v46  ;;  %v1318_v50 = vpop.f32.mrf.mxu1  ;;  %v850_v14 = vmul.f32 %v1270_v46, %v1270_v46 }
 0x16b   : > { %v914_v52 = vadd.f32 %v1314_v18, %v913_v44  ;;  %v982_v53 = vadd.f32 %v981_v43, %v951_v45  ;;  %781 = vst [vmem:[%s1708_s9 + $0xf0] sm:$0xff] %v1318_v50  ;;  %v519_v54 = vpop.f32.mrf.mxu0  ;;  %v956_v17 = vmul.f32 %v1318_v50, %v1318_v50 }
 0x16c   : > { %v877_v56 = vadd.f32 %v876_v49, %v846_v47  ;;  %747 = vst [vmem:[%s1703_s28 + $0xe0] sm:$0xff] %v519_v54  ;;  %v809_v57 = vadd.f32 %v1267_v30, %v808_v48  ;;  %v704_v58 = vpop.f32.mrf.mxu1  ;;  %v848_v0 = vmul.f32 %v519_v54, %v519_v54 }
 0x16d   : > { %v983_v60 = vadd.f32 %v982_v53, %v952_v51  ;;  %779 = vst [vmem:[%s1708_s9 + $0xe0] sm:$0xff] %v704_v58  ;;  %v915_v61 = vadd.f32 %v1315_v34, %v914_v52  ;;  %v1271_v62 = vpop.f32.mrf.mxu0  ;;  %v954_v4 = vmul.f32 %v704_v58, %v704_v58 }
 0x16e   : > { %v810_v63 = vadd.f32 %v809_v57, %v519_v54  ;;  %v878_v1 = vadd.f32 %v877_v56, %v847_v55  ;;  %750 = vst [vmem:[%s1703_s28 + $0xf8] sm:$0xff] %v1271_v62  ;;  %v1319_v2 = vpop.f32.mrf.mxu1  ;;  %v851_v20 = vmul.f32 %v1271_v62, %v1271_v62 }
 0x16f   : > { %v916_v3 = vadd.f32 %v915_v61, %v704_v58  ;;  %v984_v5 = vadd.f32 %v983_v60, %v953_v59  ;;  %782 = vst [vmem:[%s1708_s9 + $0xf8] sm:$0xff] %v1319_v2  ;;  %v522_v6 = vpop.f32.mrf.mxu0  ;;  %v957_v23 = vmul.f32 %v1319_v2, %v1319_v2 }
 0x170   : > { %v879_v7 = vadd.f32 %v878_v1, %v848_v0  ;;  %748 = vst [vmem:[%s1703_s28 + $0xe8] sm:$0xff] %v522_v6  ;;  %v811_v8 = vadd.f32 %v810_v63, %v522_v6  ;;  %v849_v9 = vmul.f32 %v522_v6, %v522_v6  ;;  %v707_v10 = vpop.f32.mrf.mxu1 }
 0x171   : > { %v985_v11 = vadd.f32 %v984_v5, %v954_v4  ;;  %780 = vst [vmem:[%s1708_s9 + $0xe8] sm:$0xff] %v707_v10  ;;  %v917_v12 = vadd.f32 %v916_v3, %v707_v10  ;;  %v955_v13 = vmul.f32 %v707_v10, %v707_v10 }
 0x172   : > { %v812_v15 = vadd.f32 %v1270_v46, %v811_v8  ;;  %v880_v16 = vadd.f32 %v879_v7, %v849_v9 }
 0x173   : > { %v918_v18 = vadd.f32 %v1318_v50, %v917_v12  ;;  %v986_v19 = vadd.f32 %v985_v11, %v955_v13 }
 0x174   : > { %v813_v21 = vadd.f32 %v1271_v62, %v812_v15  ;;  %v881_v22 = vadd.f32 %v880_v16, %v850_v14 }
 0x175   : > { %v919_v24 = vadd.f32 %v1319_v2, %v918_v18  ;;  %v987_v25 = vadd.f32 %v986_v19, %v956_v17 }
 0x176   : > { %v814_v26 = vrot.slane %v813_v21, 4  ;;  %v882_v27 = vadd.f32 %v881_v22, %v851_v20 }
 0x177   : > { %v920_v28 = vrot.slane %v919_v24, 4  ;;  %v988_v29 = vadd.f32 %v987_v25, %v957_v23 }
 0x178   : > { %v815_v30 = vadd.f32 %v814_v26, %v813_v21  ;;  %v883_v31 = vrot.slane %v882_v27, 4 }
 0x179   : > { %v921_v32 = vadd.f32 %v920_v28, %v919_v24  ;;  %v989_v33 = vrot.slane %v988_v29, 4 }
 0x17a   : > { %v816_v34 = vrot.slane %v815_v30, 2  ;;  %v884_v35 = vadd.f32 %v883_v31, %v882_v27 }
 0x17b   : > { %v922_v36 = vrot.slane %v921_v32, 2  ;;  %v990_v37 = vadd.f32 %v989_v33, %v988_v29 }
 0x17c   : > { %v817_v38 = vadd.f32 %v816_v34, %v815_v30  ;;  %v885_v39 = vrot.slane %v884_v35, 2 }
 0x17d   : > { %v923_v40 = vadd.f32 %v922_v36, %v921_v32  ;;  %v991_v41 = vrot.slane %v990_v37, 2 }
 0x17e   : > { %v818_v42 = vrot.slane %v817_v38, 1  ;;  %v886_v43 = vadd.f32 %v885_v39, %v884_v35 }
 0x17f   : > { %v924_v44 = vrot.slane %v923_v40, 1  ;;  %v992_v45 = vadd.f32 %v991_v41, %v990_v37 }
 0x180   : > { %v887_v46 = vrot.slane %v886_v43, 1  ;;  %v819_v48 = vadd.f32 %v818_v42, %v817_v38 }
 0x181   : > { %v993_v47 = vrot.slane %v992_v45, 1  ;;  %v925_v50 = vadd.f32 %v924_v44, %v923_v40 }
 0x182   : > { %v888_v49 = vadd.f32 %v887_v46, %v886_v43 }
 0x183   : > { %v994_v52 = vadd.f32 %v993_v47, %v992_v45 }
 0x184   : > { %v996_v51 = vsel %vm995_vm0, %v819_v48, %v888_v49 }
 0x185   : > { %v998_v53 = vsel %vm997_vm1, %v996_v51, %v925_v50 }
 0x186   : > { %v1000_v54 = vsel %vm999_vm2, %v998_v53, %v994_v52 }
 0x187   : > { %v1002_v55 = vsel %vm1001_vm3, %v1000_v54, 0.0 }
 0x188   : > { %1003 = vst [vmem:[%s299_s15] sm:$0xff] %v1002_v55 }
 0x189 PF: > { %p17_p13 = scmp.ge.s32.totalorder %s1605_s13, 4   ;;  %s1809_s18 = smov %s1492_s19 }
 0x18a   : > { %s1810_s19 = smov %s1496_s20  ;;  %s1811_s20 = smov %s1616_s17 }
 0x18b   : > { %s1812_s21 = smov %s1605_s13  ;;  %19 = sbr.rel (!%p17_p13) target bundleno = 4 (0x4), region = 104 }
 0x190   :  { %1057 = vsyncpa [#allocation3], 1 }
 0x191   :  { %1059 = vsyncpa [#allocation3 + $0x1], 1 }
 0x192   :  { %1060 = vsyncpa [#allocation5], 1 }

// kernel: bottleneck_b_pallas.5
= control target key start
LH: loop header
LB: loop body
LE: loop exit
PB: predicated region body
PF: predicated region fallthrough
CT: control target
= control target key end

     0   :  { %11 = vsyncpa [#allocation4], 0  ;;  %s3500_s18 = smov 0   ;;  %s4898_s0 = inlined_call_operand.vmem [shape: f32[2,16,16,128], index: 0, kind: input, shape index: {}]   ;;  %s4899_s1 = inlined_call_operand.vmem [shape: f32[1,128], index: 1, kind: input, shape index: {}]   ;;  %s4900_s2 = inlined_call_operand.vmem [shape: f32[1,128], index: 2, kind: input, shape index: {}]   ;;  %s4901_s3 = inlined_call_operand.hbm [shape: f32[1152,128], index: 3, kind: input, shape index: {}]   ;;  %s4902_s4 = inlined_call_operand.vmem [shape: f32[2,16,16,128], index: 4, kind: output, shape index: {0}]   ;;  %s4903_s5 = inlined_call_operand.vmem [shape: f32[2,8,128], index: 5, kind: output, shape index: {1}]  }
   0x1 LB: > { %s3506_s19 = sadd.s32 4294967295, %s3463_s18   ;;  %p2836_p0 = scmp.ge.s32.totalorder %s3463_s18, 1  ;;  %s3463_s18 = sphi %s3500_s18, %s17_s18  }
   0x2   : > { %p163_p1 = scmp.lt.s32.totalorder %s3463_s18, 3  ;;  %s3465_s20 = smov [#allocation3]  }
   0x3   : > { %s181_s21 = sshll.u32 %s3465_s20, 4  ;;  %p3396_p3 = scmp.eq.s32.totalorder %s3506_s19, 0  ;;  %s182_s21 = int_to_ptr.vmem [resolvable:$true] %s181_s21 }
   0x4   : > { %p3510_p2 = pnand %p2836_p0, %p163_p1  ;;  %s3438_s23 = scalar_lea.vmem %s182_s21, 18432 }
   0x5   : > { %p3439_p7 = scmp.ne.s32.totalorder %s182_s21, %s3438_s23  ;;  %p3446_p10 = scmp.lt.s32.totalorder %s182_s21, %s182_s21 }
   0x6   : > { %p3392_p4 = pneg %p3510_p2  ;;  %p3447_p11 = scmp.lt.s32.totalorder %s3438_s23, %s3438_s23 }
   0x8   : > { %p3393_p5 = pnand %p3396_p3, %p3392_p4  ;;  %p3448_p12 = por %p3447_p11, %p3446_p10 }
   0xa   : > { %p3429_p6 = pneg %p3393_p5 }
   0xc   : > { %p3441_p8 = pnand %p3439_p7, %p3429_p6 }
   0xe   : > { %p3442_p9 = pneg %p3441_p8 }
  0x10   : > { %p3449_p13 = pnand %p3448_p12, %p3442_p9 }
  0x12   : > { %3452 = shalt.err (!%p3449_p13)
}
  0x13   : > { %s3466_s24 = smov 128   ;;  %s3467_s25 = smov 8  }
  0x14   : > { %3395 = dma.hbm_to_vmem [thread:$0]  (!%p3393_p5), %s4901_s3, 18432, %s182_s21, [#allocation4], %s3466_s24, %s3466_s24, %s3467_s25  }
  0x15   : > { %205 = sbr.rel (%p3510_p2) target bundleno = 595 (0x253), region = 36 }
  0x1a   : > { %3458 = dma.done.wait (%p3396_p3), [#allocation4], 18432  }
  0x1b   : > { %3460 = vsyncadd (%p3396_p3), [#allocation4], 4294948864  ;;  %v3468_v0 = vmov 0.0   ;;  %v3469_v1 = vmov 0.0|0.0   ;;  %p237_p0 = scmp.lt.s32.totalorder %s3506_s19, 1  ;;  %v1603_v2 = vld [vmem:[#allocation3 + $0xf0] sm:$0xff] }
  0x1c   : > { %395 = vst [vmem:[#allocation2 + $0x808] sm:$0xff] %v3468_v0  ;;  %397 = vst [vmem:[#allocation2 + $0x758] sm:$0xff] %v3468_v0  ;;  %1821 = vmatprep.mubr.bf16.mxu0 %v3469_v1  ;;  %v1604_v3 = vld [vmem:[#allocation3 + $0xf8] sm:$0xff]  ;;  %v1587_v4 = vld [vmem:[#allocation3 + $0x70] sm:$0xff]  ;;  %vm710_vm0 = vcmask 1041408   ;;  %vm838_vm1 = vcmask 1045504  }
  0x1d   : > { %400 = vst [vmem:[#allocation2 + $0x8f8] sm:$0xff] %v3468_v0  ;;  %408 = vst [vmem:[#allocation2 + $0x570] sm:$0xff] %v3468_v0  ;;  %s4928_s19 = smov (!%p237_p0, %s3506_s19), 1  ;;  %v1732_v5 = vpack.c.bf16 %v1604_v3, %v1603_v2  ;;  %v1588_v6 = vld [vmem:[#allocation3 + $0x78] sm:$0xff]  ;;  %v1601_v7 = vld [vmem:[#allocation3 + $0xe0] sm:$0xff]  ;;  %vm2732_vm2 = vcmask 1040384  }
  0x1e   : > { %411 = vst [vmem:[#allocation2 + $0x8e0] sm:$0xff] %v3468_v0  ;;  %415 = vst [vmem:[#allocation2 + $0x480] sm:$0xff] %v3468_v0  ;;  %v1602_v8 = vld [vmem:[#allocation3 + $0xe8] sm:$0xff]  ;;  %v1724_v9 = vpack.c.bf16 %v1588_v6, %v1587_v4  ;;  %v1585_v11 = vld [vmem:[#allocation3 + $0x60] sm:$0xff]  ;;  %s2850_s28 = sshll.u32 %s4928_s19, 8  ;;  %s2845_s20 = sshll.u32 %s4928_s19, 3 }
  0x1f   : > { %418 = vst [vmem:[#allocation2 + $0x368] sm:$0xff] %v3468_v0  ;;  %426 = vst [vmem:[#allocation2 + $0x6f0] sm:$0xff] %v3468_v0  ;;  %v1731_v10 = vpack.c.bf16 %v1602_v8, %v1601_v7  ;;  %v1586_v12 = vld [vmem:[#allocation3 + $0x68] sm:$0xff]  ;;  %v1599_v13 = vld [vmem:[#allocation3 + $0xd0] sm:$0xff]  ;;  %2852 = vmatprep.subr.bf16.mxu0 %v1732_v5  ;;  %3372 = vmatprep.subr.bf16.mxu1 %v1732_v5  ;;  %s3628_s6 = scalar_lea.vmem %s4898_s0, %s2850_s28  ;;  %s4762_s17 = scalar_lea.vmem %s4902_s4, %s2850_s28 }
  0x20   : > { %429 = vst [vmem:[#allocation2 + $0x1d0] sm:$0xff] %v3468_v0  ;;  %430 = vst [vmem:[#allocation2 + $0x2c8] sm:$0xff] %v3468_v0  ;;  %v1600_v14 = vld [vmem:[#allocation3 + $0xd8] sm:$0xff]  ;;  %2853 = vmatpush3.bf16.msra.mxu0 %v1724_v9  ;;  %3380 = vmatpush3.bf16.msra.mxu1 %v1724_v9  ;;  %v1723_v15 = vpack.c.bf16 %v1586_v12, %v1585_v11  ;;  %v1583_v17 = vld [vmem:[#allocation3 + $0x50] sm:$0xff]  ;;  %s250_s23 = scalar_lea.vmem %s4903_s5, %s2845_s20 }
  0x21   : > { %433 = vst [vmem:[#allocation2 + $0x740] sm:$0xff] %v3468_v0  ;;  %436 = vst [vmem:[#allocation2 + $0x328] sm:$0xff] %v3468_v0  ;;  %2854 = vmatprep.subr.bf16.mxu0 %v1731_v10  ;;  %3373 = vmatprep.subr.bf16.mxu1 %v1731_v10  ;;  %v1730_v16 = vpack.c.bf16 %v1600_v14, %v1599_v13  ;;  %v1584_v18 = vld [vmem:[#allocation3 + $0x58] sm:$0xff]  ;;  %v1597_v19 = vld [vmem:[#allocation3 + $0xc0] sm:$0xff] }
  0x22   : > { %441 = vst [vmem:[#allocation2 + $0x3d0] sm:$0xff] %v3468_v0  ;;  %444 = vst [vmem:[#allocation2] sm:$0xff] %v3468_v0  ;;  %v1598_v20 = vld [vmem:[#allocation3 + $0xc8] sm:$0xff]  ;;  %v1722_v21 = vpack.c.bf16 %v1584_v18, %v1583_v17  ;;  %v1581_v23 = vld [vmem:[#allocation3 + $0x40] sm:$0xff] }
  0x23   : > { %447 = vst [vmem:[#allocation2 + $0x610] sm:$0xff] %v3468_v0  ;;  %448 = vst [vmem:[#allocation2 + $0x4f8] sm:$0xff] %v3468_v0  ;;  %v1729_v22 = vpack.c.bf16 %v1598_v20, %v1597_v19  ;;  %v1582_v24 = vld [vmem:[#allocation3 + $0x48] sm:$0xff]  ;;  %v1595_v25 = vld [vmem:[#allocation3 + $0xb0] sm:$0xff] }
  0x24   : > { %451 = vst [vmem:[#allocation2 + $0x310] sm:$0xff] %v3468_v0  ;;  %454 = vst [vmem:[#allocation2 + $0x40] sm:$0xff] %v3468_v0  ;;  %2855 = vmatpush3.bf16.msra.mxu0 %v1723_v15  ;;  %3381 = vmatpush3.bf16.msra.mxu1 %v1723_v15  ;;  %v1596_v26 = vld [vmem:[#allocation3 + $0xb8] sm:$0xff]  ;;  %v272_v27 = vld [vmem:[%s3628_s6 + $0xa0] sm:$0xff]  ;;  %v1721_v31 = vpack.c.bf16 %v1582_v24, %v1581_v23 }
  0x25   : > { %459 = vst [vmem:[#allocation2 + $0x538] sm:$0xff] %v3468_v0  ;;  %462 = vst [vmem:[#allocation2 + $0x788] sm:$0xff] %v3468_v0  ;;  %2856 = vmatprep.subr.bf16.mxu0 %v1730_v16  ;;  %3374 = vmatprep.subr.bf16.mxu1 %v1730_v16  ;;  %v273_v28 = vld [vmem:[%s3628_s6 + $0xa8] sm:$0xff]  ;;  %v3635_v29 = vld [vmem:[%s4899_s1] ss:$0 sm:$0xff]  ;;  %v1728_v34 = vpack.c.bf16 %v1596_v26, %v1595_v25 }
  0x26   : > { %465 = vst [vmem:[#allocation2 + $0x350] sm:$0xff] %v3468_v0  ;;  %466 = vst [vmem:[#allocation2 + $0x170] sm:$0xff] %v3468_v0  ;;  %v3640_v30 = vld [vmem:[%s4900_s2] ss:$0 sm:$0xff]  ;;  %v311_v32 = vmul.f32 %v3635_v29, %v272_v27  ;;  %v312_v33 = vmul.f32 %v3635_v29, %v273_v28  ;;  %v1579_v35 = vld [vmem:[#allocation3 + $0x30] sm:$0xff] }
  0x27   : > { %469 = vst [vmem:[#allocation2 + $0x660] sm:$0xff] %v3468_v0  ;;  %472 = vst [vmem:[#allocation2 + $0x5d8] sm:$0xff] %v3468_v0  ;;  %v1580_v36 = vld [vmem:[#allocation3 + $0x38] sm:$0xff]  ;;  %v1593_v37 = vld [vmem:[#allocation3 + $0xa0] sm:$0xff] }
  0x28   : > { %477 = vst [vmem:[#allocation2 + $0x360] sm:$0xff] %v3468_v0  ;;  %480 = vst [vmem:[#allocation2 + $0x800] sm:$0xff] %v3468_v0  ;;  %2857 = vmatpush3.bf16.msra.mxu0 %v1722_v21  ;;  %3382 = vmatpush3.bf16.msra.mxu1 %v1722_v21  ;;  %v1594_v38 = vld [vmem:[#allocation3 + $0xa8] sm:$0xff]  ;;  %v350_v39 = vadd.f32 %v3640_v30, %v311_v32  ;;  %v351_v40 = vadd.f32 %v3640_v30, %v312_v33  ;;  %v274_v44 = vld [vmem:[%s3628_s6 + $0xb0] sm:$0xff] }
  0x29   : > { %483 = vst [vmem:[#allocation2 + $0x378] sm:$0xff] %v3468_v0  ;;  %484 = vst [vmem:[#allocation2 + $0x798] sm:$0xff] %v3468_v0  ;;  %2858 = vmatprep.subr.bf16.mxu0 %v1729_v22  ;;  %3375 = vmatprep.subr.bf16.mxu1 %v1729_v22  ;;  %v1720_v41 = vpack.c.bf16 %v1580_v36, %v1579_v35  ;;  %v275_v45 = vld [vmem:[%s3628_s6 + $0xb8] sm:$0xff]  ;;  %v1727_v46 = vpack.c.bf16 %v1594_v38, %v1593_v37  ;;  %v1577_v47 = vld [vmem:[#allocation3 + $0x20] sm:$0xff] }
  0x2a   : > { %487 = vst [vmem:[#allocation2 + $0x488] sm:$0xff] %v3468_v0  ;;  %490 = vst [vmem:[#allocation2 + $0x518] sm:$0xff] %v3468_v0  ;;  %v382_v42 = vmax.f32 %v350_v39, 0.0  ;;  %v3646_v43 = vmax.f32 %v351_v40, 0.0  ;;  %v1578_v48 = vld [vmem:[#allocation3 + $0x28] sm:$0xff]  ;;  %v313_v49 = vmul.f32 %v3635_v29, %v274_v44  ;;  %v314_v50 = vmul.f32 %v3635_v29, %v275_v45  ;;  %v1591_v51 = vld [vmem:[#allocation3 + $0x90] sm:$0xff] }
  0x2b   : > { %495 = vst [vmem:[#allocation2 + $0x198] sm:$0xff] %v3468_v0  ;;  %498 = vst [vmem:[#allocation2 + $0x230] sm:$0xff] %v3468_v0  ;;  %v1592_v52 = vld [vmem:[#allocation3 + $0x98] sm:$0xff]  ;;  %v1719_v58 = vpack.c.bf16 %v1578_v48, %v1577_v47  ;;  %v1575_v59 = vld [vmem:[#allocation3 + $0x10] sm:$0xff] }
  0x2c   : > { %501 = vst [vmem:[#allocation2 + $0x558] sm:$0xff] %v3468_v0  ;;  %502 = vst [vmem:[#allocation2 + $0x608] sm:$0xff] %v3468_v0  ;;  %2859 = vmatpush3.bf16.msra.mxu0 %v1721_v31  ;;  %3383 = vmatpush3.bf16.msra.mxu1 %v1721_v31  ;;  %v1538_v53 = vpack.c.bf16 %v3646_v43, %v382_v42  ;;  %v741_v54 = vrot.slane %v382_v42, 6  ;;  %v742_v55 = vrot.slane %v3646_v43, 6  ;;  %v1576_v60 = vld [vmem:[#allocation3 + $0x18] sm:$0xff]  ;;  %v252_v62 = vld [vmem:[%s3628_s6] sm:$0xff] }
  0x2d   : > { %505 = vst [vmem:[#allocation2 + $0x5c8] sm:$0xff] %v3468_v0  ;;  %508 = vst [vmem:[#allocation2 + $0x640] sm:$0xff] %v3468_v0  ;;  %2860 = vmatprep.subr.bf16.mxu0 %v1728_v34  ;;  %3376 = vmatprep.subr.bf16.mxu1 %v1728_v34  ;;  %v352_v56 = vadd.f32 %v3640_v30, %v313_v49  ;;  %v353_v57 = vadd.f32 %v3640_v30, %v314_v50  ;;  %v253_v3 = vld [vmem:[%s3628_s6 + $0x8] sm:$0xff]  ;;  %v276_v5 = vld [vmem:[%s3628_s6 + $0xc0] sm:$0xff]  ;;  %v3693_v24 = vrot.slane %v3646_v43, 2 }
  0x2e   : > { %513 = vst [vmem:[#allocation2 + $0x7d8] sm:$0xff] %v3468_v0  ;;  %516 = vst [vmem:[#allocation2 + $0x5e8] sm:$0xff] %v3468_v0  ;;  %v3659_v61 = vsel %vm710_vm0, %v741_v54, %v742_v55  ;;  %v1726_v63 = vpack.c.bf16 %v1592_v52, %v1591_v51  ;;  %v291_v4 = vmul.f32 %v3635_v29, %v252_v62  ;;  %v277_v6 = vld [vmem:[%s3628_s6 + $0xc8] sm:$0xff]  ;;  %v1589_v7 = vld [vmem:[#allocation3 + $0x80] sm:$0xff]  ;;  %1917 = vmatprep.mubr.bf16.mxu1 %v1538_v53 }
  0x2f   : > { %519 = vst [vmem:[#allocation2 + $0x28] sm:$0xff] %v3468_v0  ;;  %520 = vst [vmem:[#allocation2 + $0x178] sm:$0xff] %v3468_v0  ;;  %v3666_v2 = vmax.f32 %v353_v57, 0.0  ;;  %v1590_v8 = vld [vmem:[#allocation3 + $0x88] sm:$0xff]  ;;  %v292_v9 = vmul.f32 %v3635_v29, %v253_v3  ;;  %v315_v10 = vmul.f32 %v3635_v29, %v276_v5  ;;  %v316_v11 = vmul.f32 %v3635_v29, %v277_v6  ;;  %v1573_v13 = vld [vmem:[#allocation3] sm:$0xff] }
  0x30   : > { %523 = vst [vmem:[#allocation2 + $0x500] sm:$0xff] %v3468_v0  ;;  %526 = vst [vmem:[#allocation2 + $0x6b0] sm:$0xff] %v3468_v0  ;;  %2861 = vmatpush3.bf16.msra.mxu0 %v1720_v41  ;;  %3384 = vmatpush3.bf16.msra.mxu1 %v1720_v41  ;;  %v1718_v12 = vpack.c.bf16 %v1576_v60, %v1575_v59  ;;  %v1574_v14 = vld [vmem:[#allocation3 + $0x8] sm:$0xff]  ;;  %v330_v17 = vadd.f32 %v3640_v30, %v291_v4  ;;  %v3684_v18 = vld [vmem:[#allocation3 + $0x1f0] sm:$0xff] }
  0x31   : > { %531 = vst [vmem:[#allocation2 + $0x158] sm:$0xff] %v3468_v0  ;;  %534 = vst [vmem:[#allocation2 + $0x4b8] sm:$0xff] %v3468_v0  ;;  %2862 = vmatprep.subr.bf16.mxu0 %v1727_v46  ;;  %3377 = vmatprep.subr.bf16.mxu1 %v1727_v46  ;;  %v745_v16 = vrot.slane %v3666_v2, 6  ;;  %v3686_v19 = vld [vmem:[#allocation3 + $0x1f8] sm:$0xff]  ;;  %v331_v20 = vadd.f32 %v3640_v30, %v292_v9  ;;  %v354_v21 = vadd.f32 %v3640_v30, %v315_v10  ;;  %v254_v23 = vld [vmem:[%s3628_s6 + $0x10] sm:$0xff] }
  0x32   : > { %537 = vst [vmem:[#allocation2 + $0x6f8] sm:$0xff] %v3468_v0  ;;  %538 = vst [vmem:[#allocation2 + $0x50] sm:$0xff] %v3468_v0  ;;  %v355_v22 = vadd.f32 %v3640_v30, %v316_v11  ;;  %v1725_v25 = vpack.c.bf16 %v1590_v8, %v1589_v7  ;;  %v3695_v26 = vld [vmem:[#allocation3 + $0x2f0] sm:$0xff]  ;;  %v3697_v27 = vld [vmem:[#allocation3 + $0x2f8] sm:$0xff]  ;;  %v3702_v31 = vmax.f32 %v330_v17, 0.0  ;;  %v293_v39 = vmul.f32 %v3635_v29, %v254_v23 }
  0x33   : > { %541 = vst [vmem:[#allocation2 + $0x530] sm:$0xff] %v3468_v0  ;;  %544 = vst [vmem:[#allocation2 + $0x408] sm:$0xff] %v3468_v0  ;;  %v255_v32 = vld [vmem:[%s3628_s6 + $0x18] sm:$0xff]  ;;  %v3705_v33 = vld [vmem:[#allocation3 + $0x170] sm:$0xff]  ;;  %v3709_v34 = vmax.f32 %v331_v20, 0.0  ;;  %v3711_v35 = vmax.f32 %v354_v21, 0.0  ;;  %v1748_v45 = vpack.c.bf16 %v3686_v19, %v3684_v18  ;;  %v1764_v46 = vpack.c.bf16 %v3697_v27, %v3695_v26 }
  0x34   : > { %549 = vst [vmem:[#allocation2 + $0x498] sm:$0xff] %v3468_v0  ;;  %552 = vst [vmem:[#allocation2 + $0x3c0] sm:$0xff] %v3468_v0  ;;  %2863 = vmatpush3.bf16.msra.mxu0 %v1719_v58  ;;  %3385 = vmatpush3.bf16.msra.mxu1 %v1719_v58  ;;  %v3713_v36 = vmax.f32 %v355_v22, 0.0  ;;  %v3718_v37 = vld [vmem:[#allocation3 + $0x178] sm:$0xff]  ;;  %v711_v38 = vrot.slane %v3702_v31, 6  ;;  %v294_v40 = vmul.f32 %v3635_v29, %v255_v32  ;;  %v278_v41 = vld [vmem:[%s3628_s6 + $0xd0] sm:$0xff] }
  0x35   : > { %555 = vst [vmem:[#allocation2 + $0xa8] sm:$0xff] %v3468_v0  ;;  %556 = vst [vmem:[#allocation2 + $0x228] sm:$0xff] %v3468_v0  ;;  %2864 = vmatprep.subr.bf16.mxu0 %v1726_v63  ;;  %3378 = vmatprep.subr.bf16.mxu1 %v1726_v63  ;;  %v712_v47 = vrot.slane %v3709_v34, 6  ;;  %v3740_v48 = vld [vmem:[#allocation3 + $0x270] sm:$0xff]  ;;  %v3742_v49 = vld [vmem:[#allocation3 + $0x278] sm:$0xff]  ;;  %v747_v51 = vrot.slane %v3711_v35, 6  ;;  %v332_v53 = vadd.f32 %v3640_v30, %v293_v39 }
  0x36   : > { %559 = vst [vmem:[#allocation2 + $0x588] sm:$0xff] %v3468_v0  ;;  %562 = vst [vmem:[#allocation2 + $0x298] sm:$0xff] %v3468_v0  ;;  %v3744_v50 = vld [vmem:[#allocation3 + $0x1e0] sm:$0xff]  ;;  %v748_v52 = vrot.slane %v3713_v36, 6  ;;  %v1740_v55 = vpack.c.bf16 %v3718_v37, %v3705_v33  ;;  %v3756_v58 = vld [vmem:[#allocation3 + $0x168] sm:$0xff]  ;;  %v317_v60 = vmul.f32 %v3635_v29, %v278_v41  ;;  %v3828_v39 = vrot.slane %v3709_v34, 2 }
  0x37   : > { %567 = vst [vmem:[#allocation2 + $0x240] sm:$0xff] %v3468_v0  ;;  %570 = vst [vmem:[#allocation2 + $0x5b8] sm:$0xff] %v3468_v0  ;;  %v3754_v57 = vld [vmem:[#allocation3 + $0x160] sm:$0xff]  ;;  %v3759_v59 = vsel %vm710_vm0, %v711_v38, %v712_v47  ;;  %v3765_v3 = vld [vmem:[#allocation3 + $0x1d0] sm:$0xff]  ;;  %v3774_v7 = vmax.f32 %v332_v53, 0.0 }
  0x38   : > { %573 = vst [vmem:[#allocation2 + $0x528] sm:$0xff] %v3468_v0  ;;  %574 = vst [vmem:[#allocation2 + $0x550] sm:$0xff] %v3468_v0  ;;  %2865 = vmatpush3.bf16.msra.mxu0 %v1718_v12  ;;  %3386 = vmatpush3.bf16.msra.mxu1 %v1718_v12  ;;  %v3767_v4 = vld [vmem:[#allocation3 + $0x2e0] sm:$0xff]  ;;  %v3769_v5 = vld [vmem:[#allocation3 + $0x2e8] sm:$0xff]  ;;  %v3772_v6 = vsel %vm710_vm0, %v747_v51, %v748_v52  ;;  %v356_v11 = vadd.f32 %v3640_v30, %v317_v60  ;;  %v839_v52 = vrot.slane %v3702_v31, 2 }
  0x39   : > { %577 = vst [vmem:[#allocation2 + $0x38] sm:$0xff] %v3468_v0  ;;  %580 = vst [vmem:[#allocation2 + $0x860] sm:$0xff] %v3468_v0  ;;  %2866 = vmatprep.subr.bf16.mxu0 %v1725_v25  ;;  %3379 = vmatprep.subr.bf16.mxu1 %v1725_v25  ;;  %v3780_v9 = vld [vmem:[#allocation3 + $0x1d8] sm:$0xff]  ;;  %v3782_v10 = vld [vmem:[#allocation3 + $0x150] sm:$0xff]  ;;  %v714_v18 = vrot.slane %v3774_v7, 6  ;;  %v1763_v23 = vpack.c.bf16 %v3769_v5, %v3767_v4  ;;  %v1448_v5 = vpack.c.bf16 %v3709_v34, %v3702_v31 }
  0x3a   : > { %585 = vst [vmem:[#allocation2 + $0x7c0] sm:$0xff] %v3468_v0  ;;  %588 = vst [vmem:[#allocation2 + $0x670] sm:$0xff] %v3468_v0  ;;  %v3795_v17 = vld [vmem:[#allocation3 + $0x268] sm:$0xff]  ;;  %v3804_v22 = vld [vmem:[#allocation3 + $0x158] sm:$0xff]  ;;  %v3808_v25 = vmax.f32 %v356_v11, 0.0  ;;  %v1746_v33 = vpack.c.bf16 %v3780_v9, %v3765_v3 }
  0x3b   : > { %591 = vst [vmem:[#allocation2 + $0x220] sm:$0xff] %v3468_v0  ;;  %592 = vst [vmem:[#allocation2 + $0x778] sm:$0xff] %v3468_v0  ;;  %v257_v20 = vld [vmem:[%s3628_s6 + $0x28] sm:$0xff]  ;;  %v3812_v27 = vld [vmem:[#allocation3 + $0x2d0] sm:$0xff]  ;;  %v1738_v47 = vpack.c.bf16 %v3804_v22, %v3782_v10 }
  0x3c   : > { %595 = vst [vmem:[#allocation2 + $0x7a8] sm:$0xff] %v3468_v0  ;;  %598 = vst [vmem:[#allocation2 + $0x1b0] sm:$0xff] %v3468_v0  ;;  %v3814_v32 = vld [vmem:[#allocation3 + $0x2d8] sm:$0xff]  ;;  %v3832_v41 = vld [vmem:[#allocation3 + $0x140] sm:$0xff] }
  0x3d   : > { %603 = vst [vmem:[#allocation2 + $0x508] sm:$0xff] %v3468_v0  ;;  %606 = vst [vmem:[#allocation2 + $0x4e0] sm:$0xff] %v3468_v0  ;;  %v261_v60 = vld [vmem:[%s3628_s6 + $0x48] sm:$0xff]  ;;  %v3879_v11 = vld [vmem:[#allocation3 + $0x250] sm:$0xff] }
  0x3e   : > { %609 = vst [vmem:[#allocation2 + $0x208] sm:$0xff] %v3468_v0  ;;  %610 = vst [vmem:[#allocation2 + $0x548] sm:$0xff] %v3468_v0  ;;  %v3919_v3 = vld [vmem:[#allocation3 + $0x1a8] sm:$0xff]  ;;  %v3921_v9 = vld [vmem:[#allocation3 + $0x120] sm:$0xff] }
  0x3f   : > { %613 = vst [vmem:[#allocation2 + $0x128] sm:$0xff] %v3468_v0  ;;  %616 = vst [vmem:[#allocation2 + $0x1e0] sm:$0xff] %v3468_v0 }
  0x40   : > { %621 = vst [vmem:[#allocation2 + $0x738] sm:$0xff] %v3468_v0  ;;  %624 = vst [vmem:[#allocation2 + $0x70] sm:$0xff] %v3468_v0 }
  0x41   : > { %627 = vst [vmem:[#allocation2 + $0x410] sm:$0xff] %v3468_v0  ;;  %628 = vst [vmem:[#allocation2 + $0x6c0] sm:$0xff] %v3468_v0 }
  0x42   : > { %631 = vst [vmem:[#allocation2 + $0x318] sm:$0xff] %v3468_v0  ;;  %634 = vst [vmem:[#allocation2 + $0x428] sm:$0xff] %v3468_v0 }
  0x43   : > { %639 = vst [vmem:[#allocation2 + $0x280] sm:$0xff] %v3468_v0  ;;  %642 = vst [vmem:[#allocation2 + $0x748] sm:$0xff] %v3468_v0 }
  0x44   : > { %645 = vst [vmem:[#allocation2 + $0x690] sm:$0xff] %v3468_v0  ;;  %646 = vst [vmem:[#allocation2 + $0x658] sm:$0xff] %v3468_v0 }
  0x45   : > { %649 = vst [vmem:[#allocation2 + $0x1a0] sm:$0xff] %v3468_v0  ;;  %657 = vst [vmem:[#allocation2 + $0x150] sm:$0xff] %v3468_v0 }
  0x46   : > { %660 = vst [vmem:[#allocation2 + $0xa0] sm:$0xff] %v3468_v0  ;;  %664 = vst [vmem:[#allocation2 + $0x460] sm:$0xff] %v3468_v0 }
  0x47   : > { %667 = vst [vmem:[#allocation2 + $0x338] sm:$0xff] %v3468_v0  ;;  %675 = vst [vmem:[#allocation2 + $0x60] sm:$0xff] %v3468_v0 }
  0x48   : > { %678 = vst [vmem:[#allocation2 + $0x870] sm:$0xff] %v3468_v0  ;;  %830 = vst [vmem:[#allocation2 + $0x260] sm:$0xff] %v382_v42  ;;  %v3664_v0 = vmax.f32 %v352_v56, 0.0  ;;  %v3752_v56 = vld [vmem:[#allocation3 + $0x1e8] sm:$0xff] }
  0x49   : > { %1003 = vst [vmem:[#allocation2 + $0x6d8] sm:$0xff] %v382_v42  ;;  %1004 = vst [vmem:[#allocation2 + $0x2b8] sm:$0xff] %v3646_v43 }
  0x4a   : > { %1101 = vst [vmem:[#allocation2 + $0x3e8] sm:$0xff] %v382_v42  ;;  %1102 = vst [vmem:[#allocation2 + $0x490] sm:$0xff] %v3646_v43  ;;  %v744_v15 = vrot.slane %v3664_v0, 6  ;;  %v279_v42 = vld [vmem:[%s3628_s6 + $0xd8] sm:$0xff]  ;;  %v1717_v43 = vpack.c.bf16 %v1574_v14, %v1573_v13  ;;  %v256_v13 = vld [vmem:[%s3628_s6 + $0x20] sm:$0xff]  ;;  %v1747_v14 = vpack.c.bf16 %v3752_v56, %v3744_v50  ;;  %v1547_v21 = vpack.c.bf16 %v3666_v2, %v3664_v0 }
  0x4b   : > { %802 = vst [vmem:[#allocation2 + $0x548] sm:$0xfc] %v741_v54  ;;  %971 = vst [vmem:[#allocation2 + $0x38] sm:$0xfc] %v741_v54  ;;  %v318_v62 = vmul.f32 %v3635_v29, %v279_v42  ;;  %v3834_v42 = vld [vmem:[#allocation3 + $0x148] sm:$0xff]  ;;  %v258_v50 = vld [vmem:[%s3628_s6 + $0x30] sm:$0xff] }
  0x4c   : > { %1073 = vst [vmem:[#allocation2 + $0x408] sm:$0xfc] %v741_v54  ;;  %972 = vst [vmem:[#allocation2 + $0x6b8] sm:$0xff] %v3659_v61  ;;  %v3700_v28 = vsel %vm710_vm0, %v744_v15, %v745_v16  ;;  %v333_v54 = vadd.f32 %v3640_v30, %v294_v40  ;;  %2867 = vmatpush3.bf16.msra.mxu0 %v1717_v43  ;;  %3387 = vmatpush3.bf16.msra.mxu1 %v1717_v43  ;;  %v3793_v16 = vld [vmem:[#allocation3 + $0x260] sm:$0xff] }
  0x4d   : > { %1074 = vst [vmem:[#allocation2 + $0x1f0] sm:$0xff] %v3659_v61  ;;  %832 = vst [vmem:[#allocation2 + $0x1c0] sm:$0xff] %v3664_v0  ;;  %v357_v12 = vadd.f32 %v3640_v30, %v318_v62  ;;  %2964 = vmatprep.subr.bf16.mxu1 %v1748_v45  ;;  %3076 = vmatprep.subr.bf16.mxu0 %v1764_v46  ;;  %v1755_v43 = vpack.c.bf16 %v3795_v17, %v3793_v16  ;;  %v260_v56 = vld [vmem:[%s3628_s6 + $0x40] sm:$0xff]  ;;  %v3896_v16 = vld [vmem:[#allocation3 + $0x2c8] sm:$0xff] }
  0x4e   : > { %833 = vst [vmem:[#allocation2 + $0x8c0] sm:$0xff] %v3666_v2  ;;  %1005 = vst [vmem:[#allocation2 + $0x118] sm:$0xff] %v3664_v0  ;;  %v3776_v8 = vmax.f32 %v333_v54, 0.0  ;;  %v296_v46 = vmul.f32 %v3635_v29, %v257_v20  ;;  %v1737_v4 = vpack.c.bf16 %v3834_v42, %v3832_v41  ;;  %v297_v17 = vmul.f32 %v3635_v29, %v258_v50  ;;  %v4011_v41 = vld [vmem:[#allocation3 + $0x2a8] sm:$0xff] }
  0x4f   : > { %1006 = vst [vmem:[#allocation2 + $0x700] sm:$0xff] %v3666_v2  ;;  %1103 = vst [vmem:[#allocation2 + $0x80] sm:$0xff] %v3664_v0  ;;  %v3810_v26 = vmax.f32 %v357_v12, 0.0  ;;  %1822 = vmatmul.mubr.bf16.vlgmr.msra.gmra.mxu0 %v3469_v1  ;;  %v3819_v0 = vld [vmem:[#allocation3 + $0x1c0] sm:$0xff]  ;;  %v3881_v12 = vld [vmem:[#allocation3 + $0x258] sm:$0xff]  ;;  %v3917_v20 = vsel %vm838_vm1, %v839_v52, %v3828_v39 }
  0x50   : > { %1104 = vst [vmem:[#allocation2 + $0x4c0] sm:$0xff] %v3666_v2  ;;  %804 = vst [vmem:[#allocation2 + $0x6c0] sm:$0xfc] %v744_v15  ;;  %v715_v19 = vrot.slane %v3776_v8, 6  ;;  %v3821_v2 = vld [vmem:[#allocation3 + $0x1c8] sm:$0xff]  ;;  %1829 = vmatprep.mubr.bf16.mxu0 %v3469_v1  ;;  %v3867_v62 = vrot.slane %v3776_v8, 2 }
  0x51   : > { %973 = vst [vmem:[#allocation2 + $0x7a8] sm:$0xfc] %v744_v15  ;;  %1075 = vst [vmem:[#allocation2 + $0x298] sm:$0xfc] %v744_v15  ;;  %v1739_v15 = vpack.c.bf16 %v3756_v58, %v3754_v57  ;;  %v751_v45 = vrot.slane %v3810_v26, 6  ;;  %v1745_v53 = vpack.c.bf16 %v3821_v2, %v3819_v0  ;;  %v3909_v57 = vld [vmem:[#allocation3 + $0x1a0] sm:$0xff]  ;;  %v1457_v0 = vpack.c.bf16 %v3776_v8, %v3774_v7 }
  0x52   : > { %974 = vst [vmem:[#allocation2 + $0x160] sm:$0xff] %v3700_v28  ;;  %1076 = vst [vmem:[#allocation2 + $0x780] sm:$0xff] %v3700_v28  ;;  %v3726_v44 = vld [vmem:[#allocation2 + $0x548] sm:$0xff]  ;;  %v3824_v37 = vsel %vm710_vm0, %v714_v18, %v715_v19  ;;  %v300_v19 = vmul.f32 %v3635_v29, %v261_v60  ;;  %v1743_v22 = vpack.c.bf16 %v3919_v3, %v3909_v57  ;;  %v3974_v2 = vld [vmem:[#allocation3 + $0x190] sm:$0xff] }
  0x53   : > { %930 = vst [vmem:[#allocation2 + $0x738] sm:$0x3f] %v3693_v24  ;;  %1046 = vst [vmem:[#allocation2 + $0x670] sm:$0x3f] %v3693_v24  ;;  %v1537_v63 = vpack.c.bf16 %v3659_v61, %v3726_v44  ;;  %v1756_v61 = vpack.c.bf16 %v3742_v49, %v3740_v48  ;;  %v750_v44 = vrot.slane %v3808_v25, 6  ;;  %v1762_v48 = vpack.c.bf16 %v3814_v32, %v3812_v27  ;;  %v4062_v57 = vld [vmem:[#allocation3 + $0x188] sm:$0xff] }
  0x54   : > { %1130 = vst [vmem:[#allocation2 + $0xa8] sm:$0x3f] %v3693_v24  ;;  %983 = vst [vmem:[#allocation2 + $0x320] sm:$0xff] %v3702_v31  ;;  %v3890_v31 = vld [vmem:[#allocation3 + $0x1b8] sm:$0xff]  ;;  %v336_v32 = vadd.f32 %v3640_v30, %v297_v17  ;;  %v1565_v42 = vpack.c.bf16 %v3810_v26, %v3808_v25  ;;  %v4064_v3 = vld [vmem:[#allocation3 + $0x100] sm:$0xff] }
  0x55   : > { %984 = vst [vmem:[#allocation2 + $0x7f0] sm:$0xff] %v3709_v34  ;;  %834 = vst [vmem:[#allocation2 + $0x398] sm:$0xff] %v3711_v35  ;;  %1918 = vmatmul.mubr.bf16.vlgmr.msra.gmra.mxu1 %v1537_v63  ;;  %3077 = vmatpush3.bf16.msra.mxu0 %v1756_v61  ;;  %v3861_v54 = vsel %vm710_vm0, %v750_v44, %v751_v45  ;;  %v3875_v61 = vld [vmem:[#allocation3 + $0x1b0] sm:$0xff]  ;;  %v842_v45 = vrot.slane %v3774_v7, 2 }
  0x56   : > { %835 = vst [vmem:[#allocation2 + $0x1d8] sm:$0xff] %v3713_v36  ;;  %1007 = vst [vmem:[#allocation2 + $0x7b0] sm:$0xff] %v3711_v35  ;;  %2965 = vmatpush3.bf16.msra.mxu1 %v1740_v55  ;;  %1925 = vmatprep.mubr.bf16.mxu1 %v1547_v21  ;;  %v335_v55 = vadd.f32 %v3640_v30, %v296_v46  ;;  %v3923_v21 = vld [vmem:[#allocation3 + $0x128] sm:$0xff] }
  0x57   : > { %1008 = vst [vmem:[#allocation2 + $0xe8] sm:$0xff] %v3713_v36  ;;  %1105 = vst [vmem:[#allocation2 + $0x3b8] sm:$0xff] %v3711_v35  ;;  %v3830_v40 = vld [vmem:[#allocation2 + $0x6c0] sm:$0xff]  ;;  %2966 = vmatprep.subr.bf16.mxu1 %v1747_v14  ;;  %3078 = vmatprep.subr.bf16.mxu0 %v1763_v23  ;;  %v1754_v23 = vpack.c.bf16 %v3881_v12, %v3879_v11 }
  0x58   : > { %1106 = vst [vmem:[#allocation2 + $0x718] sm:$0xff] %v3713_v36  ;;  %782 = vst [vmem:[#allocation2 + $0x2c8] sm:$0xfc] %v711_v38  ;;  %v1546_v63 = vpack.c.bf16 %v3700_v28, %v3830_v40  ;;  %v1556_v28 = vpack.c.bf16 %v3713_v36, %v3711_v35  ;;  %v3892_v34 = vmax.f32 %v335_v55, 0.0  ;;  %v3894_v14 = vld [vmem:[#allocation3 + $0x2c0] sm:$0xff]  ;;  %v3905_v35 = vld [vmem:[#allocation3 + $0x130] sm:$0xff]  ;;  %1830 = vmatmul.mubr.bf16.gmra.mxu0 %v3469_v1 }
  0x59   : > { %951 = vst [vmem:[#allocation2 + $0x758] sm:$0xfc] %v711_v38  ;;  %806 = vst [vmem:[#allocation2 + $0x658] sm:$0xfc] %v747_v51  ;;  %v295_v38 = vmul.f32 %v3635_v29, %v256_v13  ;;  %3079 = vmatpush3.bf16.msra.mxu0 %v1755_v43  ;;  %v3907_v36 = vld [vmem:[#allocation3 + $0x138] sm:$0xff]  ;;  %v3937_v40 = vld [vmem:[#allocation3 + $0x240] sm:$0xff]  ;;  %1837 = vmatprep.mubr.bf16.mxu0 %v1448_v5 }
  0x5a   : > { %975 = vst [vmem:[#allocation2 + $0x128] sm:$0xfc] %v747_v51  ;;  %1077 = vst [vmem:[#allocation2 + $0x860] sm:$0xfc] %v747_v51  ;;  %v259_v51 = vld [vmem:[%s3628_s6 + $0x38] sm:$0xff]  ;;  %2967 = vmatpush3.bf16.msra.mxu1 %v1739_v15  ;;  %3080 = vmatprep.subr.bf16.mxu0 %v1762_v48  ;;  %v299_v15 = vmul.f32 %v3635_v29, %v260_v56  ;;  %v718_v27 = vrot.slane %v3892_v34, 6  ;;  %v1736_v10 = vpack.c.bf16 %v3907_v36, %v3905_v35 }
  0x5b   : > { %976 = vst [vmem:[#allocation2 + $0x108] sm:$0xff] %v3772_v6  ;;  %1078 = vst [vmem:[#allocation2 + $0xf0] sm:$0xff] %v3772_v6  ;;  %v334_v49 = vadd.f32 %v3640_v30, %v295_v38  ;;  %2968 = vmatprep.subr.bf16.mxu1 %v1746_v33  ;;  %v1744_v38 = vpack.c.bf16 %v3890_v31, %v3875_v61  ;;  %v3939_v43 = vld [vmem:[#allocation3 + $0x248] sm:$0xff]  ;;  %v262_v55 = vld [vmem:[%s3628_s6 + $0x50] sm:$0xff]  ;;  %v4007_v35 = vsel %vm838_vm1, %v842_v45, %v3867_v62 }
  0x5c   : > { %985 = vst [vmem:[#allocation2 + $0x370] sm:$0xff] %v3774_v7  ;;  %986 = vst [vmem:[#allocation2 + $0x578] sm:$0xff] %v3776_v8  ;;  %v263_v56 = vld [vmem:[%s3628_s6 + $0x58] sm:$0xff]  ;;  %v1753_v60 = vpack.c.bf16 %v3939_v43, %v3937_v40  ;;  %v3984_v61 = vld [vmem:[#allocation3 + $0x2b0] sm:$0xff]  ;;  %v301_v17 = vmul.f32 %v3635_v29, %v262_v55  ;;  %v846_v40 = vrot.slane %v3892_v34, 2 }
  0x5d   : > { %784 = vst [vmem:[#allocation2 + $0x4f8] sm:$0xfc] %v714_v18  ;;  %953 = vst [vmem:[#allocation2 + $0x480] sm:$0xfc] %v714_v18  ;;  %v3883_v13 = vmax.f32 %v334_v49, 0.0  ;;  %v298_v18 = vmul.f32 %v3635_v29, %v259_v51  ;;  %1926 = vmatmul.mubr.bf16.gmra.mxu1 %v1546_v63  ;;  %v3953_v49 = vmax.f32 %v336_v32, 0.0  ;;  %v339_v51 = vadd.f32 %v3640_v30, %v300_v19 }
  0x5e   : > { %836 = vst [vmem:[#allocation2 + $0x790] sm:$0xff] %v3808_v25  ;;  %837 = vst [vmem:[#allocation2 + $0x8a0] sm:$0xff] %v3810_v26  ;;  %2969 = vmatpush3.bf16.msra.mxu1 %v1738_v47  ;;  %1933 = vmatprep.mubr.bf16.mxu1 %v1556_v28  ;;  %v1735_v47 = vpack.c.bf16 %v3923_v21, %v3921_v9  ;;  %v1660_v28 = vld [vmem:[#allocation3 + $0x2b8] sm:$0xff]  ;;  %v3994_v31 = vld [vmem:[#allocation3 + $0x230] sm:$0xff] }
  0x5f   : > { %1009 = vst [vmem:[#allocation2 + $0x8] sm:$0xff] %v3808_v25  ;;  %1010 = vst [vmem:[#allocation2 + $0x188] sm:$0xff] %v3810_v26  ;;  %v717_v58 = vrot.slane %v3883_v13, 6  ;;  %v337_v33 = vadd.f32 %v3640_v30, %v298_v18  ;;  %v3946_v1 = vld [vmem:[#allocation2 + $0x2c8] sm:$0xff]  ;;  %2970 = vmatprep.subr.bf16.mxu1 %v1745_v53  ;;  %v3976_v53 = vld [vmem:[#allocation3 + $0x198] sm:$0xff]  ;;  %3081 = vmatpush3.bf16.msra.mxu0 %v1754_v23  ;;  %v720_v63 = vrot.slane %v3953_v49, 6 }
  0x60   : > { %1107 = vst [vmem:[#allocation2 + $0x458] sm:$0xff] %v3808_v25  ;;  %1108 = vst [vmem:[#allocation2 + $0x5b0] sm:$0xff] %v3810_v26  ;;  %v3948_v46 = vld [vmem:[#allocation2 + $0x658] sm:$0xff]  ;;  %v1447_v7 = vpack.c.bf16 %v3759_v59, %v3946_v1  ;;  %v3990_v11 = vmax.f32 %v339_v51, 0.0  ;;  %v302_v18 = vmul.f32 %v3635_v29, %v263_v56  ;;  %v4009_v36 = vld [vmem:[#allocation3 + $0x2a0] sm:$0xff]  ;;  %v1760_v25 = vpack.c.bf16 %v1660_v28, %v3984_v61 }
  0x61   : > { %910 = vst [vmem:[#allocation2 + $0x3d0] sm:$0x3f] %v3828_v39  ;;  %1026 = vst [vmem:[#allocation2 + $0x570] sm:$0x3f] %v3828_v39  ;;  %v1761_v39 = vpack.c.bf16 %v3896_v16, %v3894_v14  ;;  %v3951_v48 = vsel %vm710_vm0, %v717_v58, %v718_v27  ;;  %v3955_v50 = vmax.f32 %v337_v33, 0.0  ;;  %v1555_v8 = vpack.c.bf16 %v3772_v6, %v3948_v46  ;;  %v264_v14 = vld [vmem:[%s3628_s6 + $0x60] sm:$0xff] }
  0x62   : > { %808 = vst [vmem:[#allocation2 + $0x460] sm:$0xfc] %v750_v44  ;;  %977 = vst [vmem:[#allocation2 + $0x318] sm:$0xfc] %v750_v44  ;;  %2971 = vmatpush3.bf16.msra.mxu1 %v1737_v4  ;;  %v1644_v6 = vld [vmem:[#allocation3 + $0x238] sm:$0xff]  ;;  %v1742_v4 = vpack.c.bf16 %v3976_v53, %v3974_v2  ;;  %v340_v26 = vadd.f32 %v3640_v30, %v301_v17  ;;  %v341_v27 = vadd.f32 %v3640_v30, %v302_v18  ;;  %v266_v46 = vld [vmem:[%s3628_s6 + $0x70] sm:$0xff] }
  0x63   : > { %1079 = vst [vmem:[#allocation2 + $0x1b0] sm:$0xfc] %v750_v44  ;;  %978 = vst [vmem:[#allocation2 + $0xd0] sm:$0xff] %v3861_v54  ;;  %v338_v44 = vadd.f32 %v3640_v30, %v299_v15  ;;  %v721_v5 = vrot.slane %v3955_v50, 6  ;;  %3082 = vmatprep.subr.bf16.mxu0 %v1761_v39  ;;  %2972 = vmatprep.subr.bf16.mxu1 %v1744_v38  ;;  %v845_v15 = vrot.slane %v3883_v13, 2  ;;  %v267_v51 = vld [vmem:[%s3628_s6 + $0x78] sm:$0xff] }
  0x64   : > { %1080 = vst [vmem:[#allocation2 + $0x3f8] sm:$0xff] %v3861_v54  ;;  %912 = vst [vmem:[#allocation2 + $0x538] sm:$0x3f] %v3867_v62  ;;  %v4022_v19 = vld [vmem:[#allocation2 + $0x4f8] sm:$0xff]  ;;  %3083 = vmatpush3.bf16.msra.mxu0 %v1753_v60  ;;  %v303_v32 = vmul.f32 %v3635_v29, %v264_v14  ;;  %v1752_v38 = vpack.c.bf16 %v1644_v6, %v3994_v31  ;;  %v1759_v39 = vpack.c.bf16 %v4011_v41, %v4009_v36  ;;  %v4053_v56 = vld [vmem:[#allocation3 + $0x110] sm:$0xff] }
  0x65   : > { %1028 = vst [vmem:[#allocation2 + $0x6f0] sm:$0x3f] %v3867_v62  ;;  %1085 = vst [vmem:[#allocation2 + $0x4d0] sm:$0xff] %v3883_v13  ;;  %v3968_v52 = vmax.f32 %v338_v44, 0.0  ;;  %v4001_v16 = vsel %vm710_vm0, %v720_v63, %v721_v5  ;;  %v265_v62 = vld [vmem:[%s3628_s6 + $0x68] sm:$0xff]  ;;  %1838 = vmatmul.mubr.bf16.gmra.mxu0 %v1447_v7  ;;  %1934 = vmatmul.mubr.bf16.gmra.mxu1 %v1555_v8  ;;  %v4038_v43 = vmax.f32 %v340_v26, 0.0 }
  0x66   : > { %1086 = vst [vmem:[#allocation2 + $0x3a8] sm:$0xff] %v3892_v34  ;;  %909 = vst [vmem:[#allocation2 + $0x820] sm:$0xff] %v3917_v20  ;;  %2973 = vmatpush3.bf16.msra.mxu1 %v1736_v10  ;;  %1845 = vmatprep.mubr.bf16.mxu0 %v1457_v0  ;;  %v4040_v44 = vmax.f32 %v341_v27, 0.0  ;;  %v304_v45 = vmul.f32 %v3635_v29, %v265_v62  ;;  %v342_v1 = vadd.f32 %v3640_v30, %v303_v32  ;;  %v4055_v0 = vld [vmem:[#allocation3 + $0x118] sm:$0xff]  ;;  %v4057_v60 = vld [vmem:[#allocation3 + $0x180] sm:$0xff] }
  0x67   : > { %786 = vst [vmem:[#allocation2 + $0x170] sm:$0xfc] %v717_v58  ;;  %955 = vst [vmem:[#allocation2 + $0x740] sm:$0xfc] %v717_v58  ;;  %v723_v12 = vrot.slane %v3968_v52, 6  ;;  %2974 = vmatprep.subr.bf16.mxu1 %v1743_v22  ;;  %1941 = vmatprep.mubr.bf16.mxu1 %v1565_v42  ;;  %v1456_v10 = vpack.c.bf16 %v3824_v37, %v4022_v19  ;;  %v4066_v22 = vld [vmem:[#allocation2 + $0x758] sm:$0xff]  ;;  %v305_v14 = vmul.f32 %v3635_v29, %v266_v46 }
  0x68   : > { %1057 = vst [vmem:[#allocation2 + $0x8f8] sm:$0xfc] %v717_v58  ;;  %1058 = vst [vmem:[#allocation2 + $0x580] sm:$0xff] %v3951_v48  ;;  %v724_v58 = vrot.slane %v3990_v11, 6  ;;  %3084 = vmatprep.subr.bf16.mxu0 %v1760_v25  ;;  %v727_v5 = vrot.slane %v4040_v44, 6  ;;  %v343_v61 = vadd.f32 %v3640_v30, %v304_v45  ;;  %v848_v7 = vrot.slane %v3953_v49, 2 }
  0x69   : > { %1087 = vst [vmem:[#allocation2 + $0x830] sm:$0xff] %v3953_v49  ;;  %1088 = vst [vmem:[#allocation2 + $0x5c0] sm:$0xff] %v3955_v50  ;;  %v4024_v23 = vld [vmem:[#allocation2 + $0x460] sm:$0xff]  ;;  %v4075_v8 = vld [vmem:[#allocation3 + $0x108] sm:$0xff]  ;;  %3085 = vmatpush3.bf16.msra.mxu0 %v1752_v38  ;;  %v4081_v31 = vmax.f32 %v342_v1, 0.0  ;;  %v306_v6 = vmul.f32 %v3635_v29, %v267_v51  ;;  %v849_v17 = vrot.slane %v3955_v50, 2  ;;  %v1734_v18 = vpack.c.bf16 %v4055_v0, %v4053_v56 }
  0x6a   : > { %1089 = vst [vmem:[#allocation2 + $0x470] sm:$0xff] %v3968_v52  ;;  %788 = vst [vmem:[#allocation2 + $0x798] sm:$0xfc] %v720_v63  ;;  %v4031_v33 = vsel %vm710_vm0, %v723_v12, %v724_v58  ;;  %v1564_v55 = vpack.c.bf16 %v3861_v54, %v4024_v23  ;;  %v726_v54 = vrot.slane %v4038_v43, 6  ;;  %v4079_v28 = vld [vmem:[#allocation3 + $0x228] sm:$0xff]  ;;  %2975 = vmatpush3.bf16.msra.mxu1 %v1735_v47  ;;  %3086 = vmatprep.subr.bf16.mxu0 %v1759_v39  ;;  %v4100_v58 = vld [vmem:[#allocation3 + $0x290] sm:$0xff] }
  0x6b   : > { %957 = vst [vmem:[#allocation2 + $0x310] sm:$0xfc] %v720_v63  ;;  %1059 = vst [vmem:[#allocation2 + $0x368] sm:$0xfc] %v720_v63  ;;  %v4060_v63 = vsel %vm838_vm1, %v845_v15, %v846_v40  ;;  %v4093_v36 = vpack.c.bf16 %v3892_v34, %v3883_v13  ;;  %v4098_v42 = vmax.f32 %v343_v61, 0.0  ;;  %v4102_v9 = vld [vmem:[#allocation3 + $0x298] sm:$0xff]  ;;  %2976 = vmatprep.subr.bf16.mxu1 %v1742_v4 }
  0x6c   : > { %1060 = vst [vmem:[#allocation2 + $0x4a0] sm:$0xff] %v4001_v16  ;;  %1090 = vst [vmem:[#allocation2 + $0x720] sm:$0xff] %v3990_v11  ;;  %v4096_v41 = vsel %vm710_vm0, %v726_v54, %v727_v5  ;;  %v268_v21 = vld [vmem:[%s3628_s6 + $0x80] sm:$0xff]  ;;  %v1741_v13 = vpack.c.bf16 %v4062_v57, %v4057_v60  ;;  %v1432_v34 = vpack.c.bf16 %v3759_v59, %v4066_v22  ;;  %v729_v47 = vrot.slane %v4081_v31, 6  ;;  %v269_v15 = vld [vmem:[%s3628_s6 + $0x88] sm:$0xff] }
  0x6d   : > { %790 = vst [vmem:[#allocation2 + $0x608] sm:$0xfc] %v723_v12  ;;  %959 = vst [vmem:[#allocation2 + $0x660] sm:$0xfc] %v723_v12  ;;  %v344_v62 = vadd.f32 %v3640_v30, %v305_v14  ;;  %v4117_v2 = vld [vmem:[#allocation3 + $0x3f0] sm:$0xff]  ;;  %v4119_v53 = vld [vmem:[#allocation3 + $0x3f8] sm:$0xff]  ;;  %v345_v19 = vadd.f32 %v3640_v30, %v306_v6  ;;  %v4127_v23 = vsel %vm838_vm1, %v848_v7, %v849_v17  ;;  %1846 = vmatmul.mubr.bf16.gmra.mxu0 %v1456_v10 }
  0x6e   : > { %1061 = vst [vmem:[#allocation2 + $0x328] sm:$0xfc] %v723_v12  ;;  %1062 = vst [vmem:[#allocation2 + $0x638] sm:$0xff] %v4031_v33  ;;  %v4077_v12 = vld [vmem:[#allocation3 + $0x220] sm:$0xff]  ;;  %v730_v59 = vrot.slane %v4098_v42, 6  ;;  %1942 = vmatmul.mubr.bf16.gmra.mxu1 %v1564_v55  ;;  %v1733_v25 = vpack.c.bf16 %v4075_v8, %v4064_v3  ;;  %v1758_v27 = vpack.c.bf16 %v4102_v9, %v4100_v58  ;;  %v4136_v32 = vld [vmem:[#allocation3 + $0x210] sm:$0xff]  ;;  %1853 = vmatprep.mubr.bf16.mxu0 %v4093_v36 }
  0x6f   : > { %914 = vst [vmem:[#allocation2 + $0x360] sm:$0x3f] %v846_v40  ;;  %1030 = vst [vmem:[#allocation2] sm:$0x3f] %v846_v40  ;;  %v1751_v4 = vpack.c.bf16 %v4079_v28, %v4077_v12  ;;  %v4131_v26 = vmax.f32 %v344_v62, 0.0  ;;  %v4138_v38 = vld [vmem:[#allocation3 + $0x218] sm:$0xff]  ;;  %v307_v39 = vmul.f32 %v3635_v29, %v268_v21  ;;  %2977 = vmatpush3.bf16.msra.mxu1 %v1734_v18  ;;  %1982 = vmatprep.mubr.bf16.mxu1 %v1432_v34 }
  0x70   : > { %1114 = vst [vmem:[#allocation2 + $0x8e0] sm:$0x3f] %v846_v40  ;;  %1091 = vst [vmem:[#allocation2 + $0x68] sm:$0xff] %v4038_v43  ;;  %v4142_v40 = vld [vmem:[#allocation2 + $0x170] sm:$0xff]  ;;  %v4145_v45 = vsel %vm710_vm0, %v729_v47, %v730_v59  ;;  %v4147_v1 = vmax.f32 %v345_v19, 0.0  ;;  %v308_v46 = vmul.f32 %v3635_v29, %v269_v15  ;;  %v851_v51 = vrot.slane %v3968_v52, 2  ;;  %2978 = vmatprep.subr.bf16.mxu1 %v1741_v13 }
  0x71   : > { %1092 = vst [vmem:[#allocation2 + $0x218] sm:$0xff] %v4040_v44  ;;  %1113 = vst [vmem:[#allocation2 + $0x6e8] sm:$0xff] %v4060_v63  ;;  %v1780_v10 = vpack.c.bf16 %v4119_v53, %v4117_v2  ;;  %v4153_v55 = vld [vmem:[#allocation3 + $0x370] sm:$0xff]  ;;  %v4155_v56 = vld [vmem:[#allocation3 + $0x378] sm:$0xff]  ;;  %v732_v29 = vrot.slane %v4131_v26, 6  ;;  %v346_v60 = vadd.f32 %v3640_v30, %v307_v39  ;;  %v852_v57 = vrot.slane %v3990_v11, 2  ;;  %3087 = vmatpush3.bf16.msra.mxu0 %v1751_v4 }
  0x72   : > { %792 = vst [vmem:[#allocation2 + $0x178] sm:$0xfc] %v726_v54  ;;  %961 = vst [vmem:[#allocation2 + $0x488] sm:$0xfc] %v726_v54  ;;  %v4157_v0 = vld [vmem:[#allocation3 + $0x3e0] sm:$0xff]  ;;  %v4166_v22 = vld [vmem:[#allocation3 + $0x3e8] sm:$0xff]  ;;  %v1750_v5 = vpack.c.bf16 %v4138_v38, %v4136_v32  ;;  %v1465_v8 = vpack.c.bf16 %v3951_v48, %v4142_v40  ;;  %3088 = vmatprep.subr.bf16.mxu0 %v1758_v27  ;;  %v1772_v9 = vpack.c.bf16 %v4155_v56, %v4153_v55 }
  0x73   : > { %1063 = vst [vmem:[#allocation2 + $0x40] sm:$0xfc] %v726_v54  ;;  %1064 = vst [vmem:[#allocation2 + $0x688] sm:$0xff] %v4096_v41  ;;  %v4164_v3 = vld [vmem:[#allocation2 + $0x480] sm:$0xff]  ;;  %v733_v54 = vrot.slane %v4147_v1, 6  ;;  %v270_v7 = vld [vmem:[%s3628_s6 + $0x90] sm:$0xff]  ;;  %v4186_v6 = vsel %vm838_vm1, %v851_v51, %v852_v57  ;;  %2979 = vmatpush3.bf16.msra.mxu1 %v1733_v25  ;;  %v4193_v21 = vpack.c.bf16 %v3955_v50, %v3953_v49 }
  0x74   : > { %1093 = vst [vmem:[#allocation2 + $0xe0] sm:$0xff] %v4081_v31  ;;  %916 = vst [vmem:[#allocation2 + $0x198] sm:$0x3f] %v849_v17  ;;  %v4175_v61 = vld [vmem:[%s4900_s2] ss:$0 sm:$0xff]  ;;  %v3411_v12 = vld [vmem:[#allocation2 + $0x808] sm:$0xff]  ;;  %3188 = vmatprep.subr.bf16.mxu1 %v1780_v10  ;;  %v1441_v15 = vpack.c.bf16 %v3824_v37, %v4164_v3  ;;  %v1779_v2 = vpack.c.bf16 %v4166_v22, %v4157_v0 }
  0x75   : > { %1032 = vst [vmem:[#allocation2 + $0x788] sm:$0x3f] %v849_v17  ;;  %1116 = vst [vmem:[#allocation2 + $0x1d0] sm:$0x3f] %v849_v17  ;;  %v347_v30 = vadd.f32 %v4175_v61, %v308_v46  ;;  %v4181_v28 = vpack.c.bf16 %v3411_v12, %v3411_v12  ;;  %v4183_v14 = vmax.f32 %v346_v60, 0.0  ;;  %v1653_v17 = vld [vmem:[#allocation3 + $0x280] sm:$0xff]  ;;  %v4196_v13 = vsel %vm710_vm0, %v732_v29, %v733_v54 }
  0x76   : > { %1094 = vst [vmem:[#allocation2 + $0x600] sm:$0xff] %v4098_v42  ;;  %794 = vst [vmem:[#allocation2 + $0x50] sm:$0xfc] %v729_v47  ;;  %v1654_v18 = vld [vmem:[#allocation3 + $0x288] sm:$0xff]  ;;  %v271_v58 = vld [vmem:[%s3628_s6 + $0x98] sm:$0xff]  ;;  %3089 = vmatpush3.bf16.msra.mxu0 %v1750_v5  ;;  %v854_v38 = vrot.slane %v4038_v43, 2 }
  0x77   : > { %963 = vst [vmem:[#allocation2 + $0x5c8] sm:$0xfc] %v729_v47  ;;  %1065 = vst [vmem:[#allocation2 + $0x5d8] sm:$0xfc] %v729_v47  ;;  %v4198_v34 = vmax.f32 %v347_v30, 0.0  ;;  %v1637_v47 = vld [vmem:[#allocation3 + $0x200] sm:$0xff]  ;;  %v1757_v27 = vpack.c.bf16 %v1654_v18, %v1653_v17  ;;  %1854 = vmatmul.mubr.bf16.gmra.mxu0 %v1465_v8  ;;  %1983 = vmatmul.mubr.bf16.vlgmr.msra.gmra.mxu1 %v4181_v28 }
  0x78   : > { %1115 = vst [vmem:[#allocation2 + $0x10] sm:$0xff] %v4127_v23  ;;  %1066 = vst [vmem:[#allocation2 + $0x450] sm:$0xff] %v4145_v45  ;;  %v1638_v62 = vld [vmem:[#allocation3 + $0x208] sm:$0xff]  ;;  %v1681_v53 = vld [vmem:[#allocation3 + $0x360] sm:$0xff]  ;;  %v735_v49 = vrot.slane %v4183_v14, 6  ;;  %v855_v46 = vrot.slane %v4040_v44, 2  ;;  %3189 = vmatpush3.bf16.msra.mxu1 %v1772_v9  ;;  %1861 = vmatprep.mubr.bf16.mxu0 %v4193_v21 }
  0x79   : > { %1095 = vst [vmem:[#allocation2 + $0x8b8] sm:$0xff] %v4131_v26  ;;  %1096 = vst [vmem:[#allocation2 + $0x2b0] sm:$0xff] %v4147_v1  ;;  %v1682_v4 = vld [vmem:[#allocation3 + $0x368] sm:$0xff]  ;;  %v4211_v50 = vld [vmem:[%s4899_s1] ss:$0 sm:$0xff]  ;;  %v736_v25 = vrot.slane %v4198_v34, 6  ;;  %v1749_v39 = vpack.c.bf16 %v1638_v62, %v1637_v47  ;;  %1990 = vmatprep.mubr.bf16.mxu1 %v1441_v15  ;;  %3190 = vmatprep.subr.bf16.mxu1 %v1779_v2  ;;  %v4243_v47 = vpack.c.bf16 %v3990_v11, %v3968_v52 }
  0x7a   : > { %796 = vst [vmem:[#allocation2 + $0x228] sm:$0xfc] %v732_v29  ;;  %965 = vst [vmem:[#allocation2 + $0x500] sm:$0xfc] %v732_v29  ;;  %v309_v59 = vmul.f32 %v4211_v50, %v270_v7  ;;  %v1695_v19 = vld [vmem:[#allocation3 + $0x3d0] sm:$0xff]  ;;  %v1696_v37 = vld [vmem:[#allocation3 + $0x3d8] sm:$0xff]  ;;  %v310_v32 = vmul.f32 %v4211_v50, %v271_v58  ;;  %v1771_v56 = vpack.c.bf16 %v1682_v4, %v1681_v53  ;;  %3090 = vmatprep.subr.bf16.mxu0 %v1757_v27 }
  0x7b   : > { %1067 = vst [vmem:[#allocation2 + $0x518] sm:$0xfc] %v732_v29  ;;  %918 = vst [vmem:[#allocation2 + $0x7d8] sm:$0x3f] %v852_v57  ;;  %v1715_v51 = vld [vmem:[#allocation3 + $0x470] sm:$0xff]  ;;  %v1716_v10 = vld [vmem:[#allocation3 + $0x478] sm:$0xff]  ;;  %v4223_v0 = vsel %vm710_vm0, %v735_v49, %v736_v25  ;;  %v1778_v3 = vpack.c.bf16 %v1696_v37, %v1695_v19  ;;  %v4231_v54 = vsel %vm838_vm1, %v854_v38, %v855_v46  ;;  %3091 = vmatpush3.bf16.msra.mxu0 %v1749_v39 }
  0x7c   : > { %1034 = vst [vmem:[#allocation2 + $0x800] sm:$0x3f] %v852_v57  ;;  %1118 = vst [vmem:[#allocation2 + $0x610] sm:$0x3f] %v852_v57  ;;  %v348_v40 = vadd.f32 %v4175_v61, %v309_v59  ;;  %v1231_v55 = vld [vmem:[#allocation2 + $0x798] sm:$0xff]  ;;  %v349_v29 = vadd.f32 %v4175_v61, %v310_v32  ;;  %v857_v60 = vrot.slane %v4081_v31, 2  ;;  %v4237_v12 = vpack.c.bf16 %v1716_v10, %v1715_v51 }
  0x7d   : > { %1117 = vst [vmem:[#allocation2 + $0x7e8] sm:$0xff] %v4186_v6  ;;  %1068 = vst [vmem:[#allocation2 + $0x18] sm:$0xff] %v4196_v13  ;;  %v1180_v57 = vld [vmem:[#allocation2 + $0x740] sm:$0xff]  ;;  %v858_v5 = vrot.slane %v4098_v42, 2  ;;  %v1679_v30 = vld [vmem:[#allocation3 + $0x350] sm:$0xff]  ;;  %v1474_v17 = vpack.c.bf16 %v4001_v16, %v1231_v55  ;;  %3191 = vmatpush3.bf16.msra.mxu1 %v1771_v56  ;;  %v860_v52 = vrot.slane %v4131_v26, 2 }
  0x7e   : > { %1097 = vst [vmem:[#allocation2 + $0x388] sm:$0xff] %v4183_v14  ;;  %1098 = vst [vmem:[#allocation2 + $0x3c8] sm:$0xff] %v4198_v34  ;;  %v4228_v22 = vmax.f32 %v348_v40, 0.0  ;;  %v1680_v7 = vld [vmem:[#allocation3 + $0x358] sm:$0xff]  ;;  %v4234_v8 = vmax.f32 %v349_v29, 0.0  ;;  %v1693_v18 = vld [vmem:[#allocation3 + $0x3c0] sm:$0xff]  ;;  %v1450_v62 = vpack.c.bf16 %v3951_v48, %v1180_v57  ;;  %3324 = vmatprep.subr.bf16.mxu0 %v4237_v12  ;;  %3192 = vmatprep.subr.bf16.mxu1 %v1778_v3 }
  0x7f   : > { %798 = vst [vmem:[#allocation2 + $0x550] sm:$0xfc] %v735_v49  ;;  %967 = vst [vmem:[#allocation2 + $0x530] sm:$0xfc] %v735_v49  ;;  %v1694_v58 = vld [vmem:[#allocation3 + $0x3c8] sm:$0xff]  ;;  %v4248_v2 = vsel %vm838_vm1, %v857_v60, %v858_v5  ;;  %v1770_v53 = vpack.c.bf16 %v1680_v7, %v1679_v30  ;;  %v861_v11 = vrot.slane %v4147_v1, 2  ;;  %1862 = vmatmul.mubr.bf16.gmra.mxu0 %v1474_v17  ;;  %1991 = vmatmul.mubr.bf16.gmra.mxu1 %v4181_v28 }
  0x80   : > { %1069 = vst [vmem:[#allocation2 + $0x640] sm:$0xfc] %v735_v49  ;;  %1070 = vst [vmem:[#allocation2 + $0x308] sm:$0xff] %v4223_v0  ;;  %v738_v9 = vrot.slane %v4228_v22, 6  ;;  %v739_v15 = vrot.slane %v4234_v8, 6  ;;  %v1777_v48 = vpack.c.bf16 %v1694_v58, %v1693_v18  ;;  %v1677_v4 = vld [vmem:[#allocation3 + $0x340] sm:$0xff]  ;;  %1869 = vmatprep.mubr.bf16.mxu0 %v4243_v47  ;;  %1998 = vmatprep.mubr.bf16.mxu1 %v1450_v62 }
  0x81   : > { %920 = vst [vmem:[#allocation2 + $0x158] sm:$0x3f] %v855_v46  ;;  %1036 = vst [vmem:[#allocation2 + $0x230] sm:$0x3f] %v855_v46  ;;  %v1678_v49 = vld [vmem:[#allocation3 + $0x348] sm:$0xff]  ;;  %v863_v19 = vrot.slane %v4183_v14, 2  ;;  %v4261_v32 = vsel %vm838_vm1, %v860_v52, %v861_v11  ;;  %3193 = vmatpush3.bf16.msra.mxu1 %v1770_v53 }
  0x82   : > { %1120 = vst [vmem:[#allocation2 + $0x350] sm:$0x3f] %v855_v46  ;;  %1119 = vst [vmem:[#allocation2 + $0x590] sm:$0xff] %v4231_v54  ;;  %v4255_v59 = vsel %vm710_vm0, %v738_v9, %v739_v15  ;;  %v864_v37 = vrot.slane %v4198_v34, 2  ;;  %v1691_v25 = vld [vmem:[#allocation3 + $0x3b0] sm:$0xff]  ;;  %v1692_v27 = vld [vmem:[#allocation3 + $0x3b8] sm:$0xff]  ;;  %v1769_v10 = vpack.c.bf16 %v1678_v49, %v1677_v4  ;;  %3194 = vmatprep.subr.bf16.mxu1 %v1777_v48 }
  0x83   : > { %922 = vst [vmem:[#allocation2 + $0x498] sm:$0x3f] %v858_v5  ;;  %1038 = vst [vmem:[#allocation2 + $0x5e8] sm:$0x3f] %v858_v5  ;;  %v866_v38 = vrot.slane %v4228_v22, 2  ;;  %v1249_v39 = vld [vmem:[#allocation2 + $0x608] sm:$0xff]  ;;  %v1776_v55 = vpack.c.bf16 %v1692_v27, %v1691_v25 }
  0x84   : > { %1122 = vst [vmem:[#allocation2 + $0x378] sm:$0x3f] %v858_v5  ;;  %800 = vst [vmem:[#allocation2 + $0x778] sm:$0xfc] %v738_v9  ;;  %v1188_v40 = vld [vmem:[#allocation2 + $0x3d0] sm:$0xff]  ;;  %v4267_v46 = vsel %vm838_vm1, %v863_v19, %v864_v37  ;;  %v867_v28 = vrot.slane %v4234_v8, 2  ;;  %v1483_v30 = vpack.c.bf16 %v4031_v33, %v1249_v39 }
  0x85   : > { %969 = vst [vmem:[#allocation2 + $0x588] sm:$0xfc] %v738_v9  ;;  %1071 = vst [vmem:[#allocation2 + $0x6b0] sm:$0xfc] %v738_v9  ;;  %v1198_v51 = vld [vmem:[#allocation2 + $0x310] sm:$0xff]  ;;  %v1676_v29 = vld [vmem:[#allocation3 + $0x338] sm:$0xff]  ;;  %v1449_v7 = vpack.c.bf16 %v1188_v40, %v3917_v20  ;;  %v4281_v9 = vpack.c.bf16 %v4040_v44, %v4038_v43  ;;  %3195 = vmatpush3.bf16.msra.mxu1 %v1769_v10 }
  0x86   : > { %1121 = vst [vmem:[#allocation2 + $0x2d8] sm:$0xff] %v4248_v2  ;;  %924 = vst [vmem:[#allocation2 + $0x240] sm:$0x3f] %v861_v11  ;;  %v1675_v56 = vld [vmem:[#allocation3 + $0x330] sm:$0xff]  ;;  %v1689_v60 = vld [vmem:[#allocation3 + $0x3a0] sm:$0xff]  ;;  %v4272_v57 = vsel %vm838_vm1, %v866_v38, %v867_v28  ;;  %v1459_v62 = vpack.c.bf16 %v4001_v16, %v1198_v51  ;;  %3196 = vmatprep.subr.bf16.mxu1 %v1776_v55 }
  0x87   : > { %1040 = vst [vmem:[#allocation2 + $0x4b8] sm:$0x3f] %v861_v11  ;;  %1124 = vst [vmem:[#allocation2 + $0x558] sm:$0x3f] %v861_v11  ;;  %v3413_v3 = vld [vmem:[#allocation2 + $0x260] sm:$0xff]  ;;  %v1690_v17 = vld [vmem:[#allocation3 + $0x3a8] sm:$0xff]  ;;  %v1768_v20 = vpack.c.bf16 %v1676_v29, %v1675_v56  ;;  %1870 = vmatmul.mubr.bf16.gmra.mxu0 %v1483_v30  ;;  %1999 = vmatmul.mubr.bf16.gmra.mxu1 %v1449_v7 }
  0x88   : > { %1123 = vst [vmem:[#allocation2 + $0x8c8] sm:$0xff] %v4261_v32  ;;  %926 = vst [vmem:[#allocation2 + $0x7c0] sm:$0x3f] %v864_v37  ;;  %v869_v5 = vrot.slane %v3413_v3, 2  ;;  %v280_v18 = vld [vmem:[%s3628_s6 + $0xe0] sm:$0xff]  ;;  %v281_v58 = vld [vmem:[%s3628_s6 + $0xe8] sm:$0xff]  ;;  %v1775_v43 = vpack.c.bf16 %v1690_v17, %v1689_v60  ;;  %1877 = vmatprep.mubr.bf16.mxu0 %v4281_v9  ;;  %2006 = vmatprep.mubr.bf16.mxu1 %v1459_v62 }
  0x89   : > { %1042 = vst [vmem:[#allocation2 + $0x3c0] sm:$0x3f] %v864_v37  ;;  %1126 = vst [vmem:[#allocation2 + $0x28] sm:$0x3f] %v864_v37  ;;  %v3414_v53 = vld [vmem:[#allocation2 + $0x1c0] sm:$0xff]  ;;  %v4288_v11 = vld [vmem:[#allocation2 + $0x538] sm:$0xff]  ;;  %v319_v16 = vmul.f32 %v4211_v50, %v280_v18  ;;  %3197 = vmatpush3.bf16.msra.mxu1 %v1768_v20 }
  0x8a   : > { %925 = vst [vmem:[#allocation2 + $0x390] sm:$0xff] %v4267_v46  ;;  %928 = vst [vmem:[#allocation2 + $0x508] sm:$0x3f] %v867_v28  ;;  %v4286_v15 = vsel %vm838_vm1, %v869_v5, %v3693_v24  ;;  %v872_v52 = vrot.slane %v3414_v53, 2  ;;  %v3415_v48 = vld [vmem:[#allocation2 + $0x8c0] sm:$0xff]  ;;  %v1674_v49 = vld [vmem:[#allocation3 + $0x328] sm:$0xff]  ;;  %v320_v24 = vmul.f32 %v4211_v50, %v281_v58  ;;  %v1458_v55 = vpack.c.bf16 %v4288_v11, %v4007_v35 }
  0x8b   : > { %1044 = vst [vmem:[#allocation2 + $0x5b8] sm:$0x3f] %v867_v28  ;;  %1128 = vst [vmem:[#allocation2 + $0x6f8] sm:$0x3f] %v867_v28  ;;  %v873_v4 = vrot.slane %v3415_v48, 2  ;;  %v1673_v44 = vld [vmem:[#allocation3 + $0x320] sm:$0xff]  ;;  %v358_v29 = vadd.f32 %v4175_v61, %v319_v16  ;;  %3198 = vmatprep.subr.bf16.mxu1 %v1775_v43 }
  0x8c   : > { %927 = vst [vmem:[#allocation2 + $0x78] sm:$0xff] %v4272_v57  ;;  %929 = vst [vmem:[#allocation2 + $0x330] sm:$0xff] %v4286_v15  ;;  %v3416_v19 = vld [vmem:[#allocation2 + $0x398] sm:$0xff]  ;;  %v282_v25 = vld [vmem:[%s3628_s6 + $0xf0] sm:$0xff]  ;;  %v359_v60 = vadd.f32 %v4175_v61, %v320_v24  ;;  %v1767_v3 = vpack.c.bf16 %v1674_v49, %v1673_v44  ;;  %v4319_v24 = vpack.c.bf16 %v4098_v42, %v4081_v31 }
  0x8d   : > { %v875_v37 = vrot.slane %v3416_v19, 2  ;;  %v1687_v27 = vld [vmem:[#allocation3 + $0x390] sm:$0xff]  ;;  %v1688_v38 = vld [vmem:[#allocation3 + $0x398] sm:$0xff]  ;;  %v4295_v39 = vsel %vm838_vm1, %v872_v52, %v873_v4  ;;  %932 = vst [vmem:[#allocation2 + $0x280] sm:$0x3f] %v873_v4  ;;  %v1216_v56 = vld [vmem:[#allocation2 + $0x660] sm:$0xff]  ;;  %v321_v30 = vmul.f32 %v4211_v50, %v282_v25 }
  0x8e   : > { %1048 = vst [vmem:[#allocation2 + $0x4e0] sm:$0x3f] %v873_v4  ;;  %1132 = vst [vmem:[#allocation2 + $0x528] sm:$0x3f] %v873_v4  ;;  %v3417_v40 = vld [vmem:[#allocation2 + $0x1d8] sm:$0xff]  ;;  %v3418_v7 = vld [vmem:[#allocation2 + $0x790] sm:$0xff]  ;;  %v1774_v18 = vpack.c.bf16 %v1688_v38, %v1687_v27  ;;  %v1468_v48 = vpack.c.bf16 %v4031_v33, %v1216_v56  ;;  %3199 = vmatpush3.bf16.msra.mxu1 %v1767_v3 }
  0x8f   : > { %v876_v28 = vrot.slane %v3417_v40, 2  ;;  %v283_v51 = vld [vmem:[%s3628_s6 + $0xf8] sm:$0xff]  ;;  %931 = vst [vmem:[#allocation2 + $0x6e0] sm:$0xff] %v4295_v39  ;;  %v878_v17 = vrot.slane %v3418_v7, 2  ;;  %v1671_v58 = vld [vmem:[#allocation3 + $0x310] sm:$0xff]  ;;  %v4308_v53 = vmax.f32 %v358_v29, 0.0  ;;  %v360_v49 = vadd.f32 %v4175_v61, %v321_v30  ;;  %2007 = vmatmul.mubr.bf16.gmra.mxu1 %v1458_v55 }
  0x90   : > { %v1267_v10 = vld [vmem:[#allocation2 + $0x178] sm:$0xff]  ;;  %v4310_v52 = vmax.f32 %v359_v60, 0.0  ;;  %v322_v11 = vmul.f32 %v4211_v50, %v283_v51  ;;  %v1685_v4 = vld [vmem:[#allocation3 + $0x380] sm:$0xff]  ;;  %v1686_v44 = vld [vmem:[#allocation3 + $0x388] sm:$0xff]  ;;  %3200 = vmatprep.subr.bf16.mxu1 %v1774_v18  ;;  %2014 = vmatprep.mubr.bf16.mxu1 %v1468_v48  ;;  %v4344_v7 = vpack.c.bf16 %v4147_v1, %v4131_v26  ;;  %v4353_v26 = vpack.c.bf16 %v4198_v34, %v4183_v14 }
  0x91   : > { %v4305_v5 = vsel %vm838_vm1, %v875_v37, %v876_v28  ;;  %934 = vst [vmem:[#allocation2 + $0x150] sm:$0x3f] %v876_v28  ;;  %1050 = vst [vmem:[#allocation2 + $0x70] sm:$0x3f] %v876_v28  ;;  %v1672_v62 = vld [vmem:[#allocation3 + $0x318] sm:$0xff]  ;;  %v1492_v20 = vpack.c.bf16 %v4096_v41, %v1267_v10  ;;  %v3419_v43 = vld [vmem:[#allocation2 + $0x8a0] sm:$0xff]  ;;  %v1773_v42 = vpack.c.bf16 %v1686_v44, %v1685_v4 }
  0x92   : > { %1134 = vst [vmem:[#allocation2 + $0x220] sm:$0x3f] %v876_v28  ;;  %933 = vst [vmem:[#allocation2 + $0x430] sm:$0xff] %v4305_v5  ;;  %v879_v16 = vrot.slane %v3419_v43, 2  ;;  %v941_v19 = vrot.slane %v4308_v53, 6  ;;  %v942_v37 = vrot.slane %v4310_v52, 6  ;;  %v361_v50 = vadd.f32 %v4175_v61, %v322_v11 }
  0x93   : > { %v1766_v25 = vpack.c.bf16 %v1672_v62, %v1671_v58  ;;  %v4324_v27 = vmax.f32 %v360_v49, 0.0  ;;  %v1669_v38 = vld [vmem:[#allocation3 + $0x300] sm:$0xff]  ;;  %v1670_v40 = vld [vmem:[#allocation3 + $0x308] sm:$0xff]  ;;  %1878 = vmatmul.mubr.bf16.gmra.mxu0 %v1492_v20  ;;  %v1285_v51 = vld [vmem:[#allocation2 + $0x50] sm:$0xff]  ;;  %v1016_v11 = vrot.slane %v4310_v52, 2  ;;  %v1015_v49 = vrot.slane %v4308_v53, 2 }
  0x94   : > { %v4327_v33 = vsel %vm838_vm1, %v878_v17, %v879_v16  ;;  %936 = vst [vmem:[#allocation2 + $0x60] sm:$0x3f] %v879_v16  ;;  %1052 = vst [vmem:[#allocation2 + $0x748] sm:$0x3f] %v879_v16  ;;  %v4330_v31 = vsel %vm710_vm0, %v941_v19, %v942_v37  ;;  %v4332_v61 = vmax.f32 %v361_v50, 0.0  ;;  %1885 = vmatprep.mubr.bf16.mxu0 %v4319_v24  ;;  %v1224_v10 = vld [vmem:[#allocation2 + $0x360] sm:$0xff] }
  0x95   : > { %1136 = vst [vmem:[#allocation2 + $0x208] sm:$0x3f] %v879_v16  ;;  %979 = vst [vmem:[#allocation2 + $0x1a0] sm:$0xfc] %v941_v19  ;;  %v944_v28 = vrot.slane %v4324_v27, 6  ;;  %v1234_v29 = vld [vmem:[#allocation2 + $0x488] sm:$0xff]  ;;  %3201 = vmatpush3.bf16.msra.mxu1 %v1766_v25  ;;  %v1765_v60 = vpack.c.bf16 %v1670_v40, %v1669_v38  ;;  %v1501_v55 = vpack.c.bf16 %v4145_v45, %v1285_v51 }
  0x96   : > { %1081 = vst [vmem:[#allocation2 + $0x1e0] sm:$0xfc] %v941_v19  ;;  %v945_v56 = vrot.slane %v4332_v61, 6  ;;  %3202 = vmatprep.subr.bf16.mxu1 %v1773_v42  ;;  %v1467_v30 = vpack.c.bf16 %v1224_v10, %v4060_v63  ;;  %v1477_v17 = vpack.c.bf16 %v4096_v41, %v1234_v29  ;;  %v1303_v18 = vld [vmem:[#allocation2 + $0x228] sm:$0xff]  ;;  %v1242_v58 = vld [vmem:[#allocation2 + $0x198] sm:$0xff]  ;;  %v1321_v1 = vld [vmem:[#allocation2 + $0x550] sm:$0xff]  ;;  %v4366_v34 = vpack.c.bf16 %v4234_v8, %v4228_v22 }
  0x97   : > { %981 = vst [vmem:[#allocation2 + $0x338] sm:$0xfc] %v944_v28  ;;  %1083 = vst [vmem:[#allocation2 + $0x428] sm:$0xfc] %v944_v28  ;;  %v1252_v62 = vld [vmem:[#allocation2 + $0x5c8] sm:$0xff]  ;;  %v1510_v20 = vpack.c.bf16 %v4196_v13, %v1303_v18  ;;  %v1476_v48 = vpack.c.bf16 %v1242_v58, %v4127_v23  ;;  %v1260_v4 = vld [vmem:[#allocation2 + $0x7d8] sm:$0xff]  ;;  %v1519_v16 = vpack.c.bf16 %v4223_v0, %v1321_v1 }
  0x98   : > { %v4338_v3 = vsel %vm710_vm0, %v944_v28, %v945_v56  ;;  %2015 = vmatmul.mubr.bf16.gmra.mxu1 %v1467_v30  ;;  %v1486_v41 = vpack.c.bf16 %v4145_v45, %v1252_v62  ;;  %1054 = vst [vmem:[#allocation2 + $0xa0] sm:$0x3f] %v1016_v11  ;;  %1138 = vst [vmem:[#allocation2 + $0x410] sm:$0x3f] %v1016_v11  ;;  %v1270_v44 = vld [vmem:[#allocation2 + $0x500] sm:$0xff]  ;;  %v1019_v43 = vrot.slane %v4332_v61, 2 }
  0x99   : > { %3203 = vmatpush3.bf16.msra.mxu1 %v1765_v60  ;;  %2022 = vmatprep.mubr.bf16.mxu1 %v1477_v17  ;;  %v1485_v14 = vpack.c.bf16 %v1260_v4, %v4186_v6  ;;  %v4362_v45 = vsel %vm838_vm1, %v1015_v49, %v1016_v11  ;;  %v1495_v19 = vpack.c.bf16 %v4196_v13, %v1270_v44  ;;  %v1339_v50 = vld [vmem:[#allocation2 + $0x778] sm:$0xff]  ;;  %v1288_v42 = vld [vmem:[#allocation2 + $0x530] sm:$0xff]  ;;  %v1018_v22 = vrot.slane %v4324_v27, 2  ;;  %v1145_v56 = vld [vmem:[#allocation2 + $0x320] sm:$0xff] }
  0x9a   : > { %1056 = vst [vmem:[#allocation2 + $0x870] sm:$0x3f] %v1019_v43  ;;  %1140 = vst [vmem:[#allocation2 + $0x690] sm:$0x3f] %v1019_v43  ;;  %v4371_v37 = vpack.c.bf16 %v4310_v52, %v4308_v53  ;;  %v1278_v25 = vld [vmem:[#allocation2 + $0x158] sm:$0xff]  ;;  %v1155_v38 = vld [vmem:[#allocation2 + $0x570] sm:$0xff]  ;;  %v1528_v8 = vpack.c.bf16 %v4255_v59, %v1339_v50  ;;  %v1504_v53 = vpack.c.bf16 %v4223_v0, %v1288_v42 }
  0x9b   : > { %1886 = vmatmul.mubr.bf16.gmra.mxu0 %v1501_v55  ;;  %v1494_v13 = vpack.c.bf16 %v1278_v25, %v4231_v54  ;;  %v4378_v40 = vsel %vm838_vm1, %v1018_v22, %v1019_v43  ;;  %v3420_v52 = vld [vmem:[#allocation2 + $0x820] sm:$0xff]  ;;  %v4383_v51 = vpack.c.bf16 %v4332_v61, %v4324_v27  ;;  %v1296_v10 = vld [vmem:[#allocation2 + $0x498] sm:$0xff]  ;;  %v1154_v29 = vld [vmem:[#allocation2 + $0x7f0] sm:$0xff] }
  0x9c   : > { %1893 = vmatprep.mubr.bf16.mxu0 %v4344_v7  ;;  %v1434_v28 = vpack.c.bf16 %v1155_v38, %v3420_v52  ;;  %v1306_v60 = vld [vmem:[#allocation2 + $0x588] sm:$0xff]  ;;  %v1173_v55 = vld [vmem:[#allocation2 + $0x6f0] sm:$0xff]  ;;  %v1713_v30 = vld [vmem:[#allocation3 + $0x460] sm:$0xff]  ;;  %v1503_v18 = vpack.c.bf16 %v1296_v10, %v4248_v2  ;;  %v1433_v0 = vpack.c.bf16 %v1154_v29, %v1145_v56 }
  0x9d   : > { %v1714_v17 = vld [vmem:[#allocation3 + $0x468] sm:$0xff]  ;;  %v1513_v58 = vpack.c.bf16 %v4255_v59, %v1306_v60  ;;  %v1443_v62 = vpack.c.bf16 %v1173_v55, %v4007_v35  ;;  %v1711_v61 = vld [vmem:[#allocation3 + $0x450] sm:$0xff]  ;;  %v1712_v11 = vld [vmem:[#allocation3 + $0x458] sm:$0xff] }
  0x9e   : > { %v1787_v27 = vpack.c.bf16 %v1714_v17, %v1713_v30  ;;  %v1324_v1 = vld [vmem:[#allocation2 + $0x38] sm:$0xff]  ;;  %v1191_v44 = vld [vmem:[#allocation2] sm:$0xff]  ;;  %v1786_v49 = vpack.c.bf16 %v1712_v11, %v1711_v61  ;;  %v1707_v25 = vld [vmem:[#allocation3 + $0x430] sm:$0xff] }
  0x9f   : > { %v1333_v4 = vld [vmem:[#allocation2 + $0x6b8] sm:$0xff]  ;;  %v1452_v50 = vpack.c.bf16 %v1191_v44, %v4060_v63  ;;  %v1332_v38 = vld [vmem:[#allocation2 + $0x7c0] sm:$0xff]  ;;  %v1342_v22 = vld [vmem:[#allocation2 + $0x7a8] sm:$0xff] }
  0xa0   : > { %2023 = vmatmul.mubr.bf16.gmra.mxu1 %v1476_v48  ;;  %v1163_v48 = vld [vmem:[#allocation2 + $0x370] sm:$0xff]  ;;  %v1708_v42 = vld [vmem:[#allocation3 + $0x438] sm:$0xff]  ;;  %v1521_v52 = vpack.c.bf16 %v1332_v38, %v4267_v46  ;;  %v1706_v63 = vld [vmem:[#allocation3 + $0x428] sm:$0xff] }
  0xa1   : > { %2030 = vmatprep.mubr.bf16.mxu1 %v1486_v41  ;;  %v1172_v41 = vld [vmem:[#allocation2 + $0x578] sm:$0xff]  ;;  %v1703_v60 = vld [vmem:[#allocation3 + $0x410] sm:$0xff]  ;;  %v1350_v30 = vld [vmem:[#allocation2 + $0x508] sm:$0xff] }
  0xa2   : > { %v1442_v35 = vpack.c.bf16 %v1172_v41, %v1163_v48  ;;  %v1704_v55 = vld [vmem:[#allocation3 + $0x418] sm:$0xff]  ;;  %v1360_v17 = vld [vmem:[#allocation2 + $0x128] sm:$0xff]  ;;  %v1387_v41 = vld [vmem:[#allocation2 + $0xd0] sm:$0xff] }
  0xa3   : > { %1894 = vmatmul.mubr.bf16.gmra.mxu0 %v1510_v20  ;;  %v1314_v20 = vld [vmem:[#allocation2 + $0x240] sm:$0xff]  ;;  %v1378_v48 = vld [vmem:[#allocation2 + $0x318] sm:$0xff]  ;;  %v1148_v38 = vld [vmem:[#allocation2 + $0x4d0] sm:$0xff] }
  0xa4   : > { %1901 = vmatprep.mubr.bf16.mxu0 %v4353_v26  ;;  %v1512_v43 = vpack.c.bf16 %v1314_v20, %v4261_v32  ;;  %v1368_v20 = vld [vmem:[#allocation2 + $0x738] sm:$0xff]  ;;  %v1549_v44 = vpack.c.bf16 %v1387_v41, %v1378_v48  ;;  %v1352_v48 = vld [vmem:[#allocation2 + $0x700] sm:$0xff] }
  0xa5   : > { %v1201_v41 = vld [vmem:[#allocation2 + $0x40] sm:$0xff] }
  0xa8   : > { %2031 = vmatmul.mubr.bf16.gmra.mxu1 %v1485_v14  ;;  %v1710_v14 = vld [vmem:[#allocation3 + $0x448] sm:$0xff] }
  0xa9   : > { %2038 = vmatprep.mubr.bf16.mxu1 %v1495_v19  ;;  %v1522_v19 = vpack.c.bf16 %v1333_v4, %v1324_v1  ;;  %v1245_v1 = vld [vmem:[#allocation2 + $0x230] sm:$0xff]  ;;  %v1539_v4 = vpack.c.bf16 %v1368_v20, %v4286_v15 }
  0xab   : > { %1902 = vmatmul.mubr.bf16.gmra.mxu0 %v1519_v16  ;;  %v1709_v16 = vld [vmem:[#allocation3 + $0x440] sm:$0xff] }
  0xac   : > { %1909 = vmatprep.mubr.bf16.mxu0 %v4366_v34 }
  0xb0   : > { %2039 = vmatmul.mubr.bf16.gmra.mxu1 %v1494_v13  ;;  %v1209_v13 = vld [vmem:[#allocation2 + $0x788] sm:$0xff] }
  0xb1   : > { %2046 = vmatprep.mubr.bf16.mxu1 %v1504_v53  ;;  %v1784_v53 = vpack.c.bf16 %v1708_v42, %v1707_v25  ;;  %v1461_v56 = vpack.c.bf16 %v1209_v13, %v4127_v23  ;;  %v1701_v23 = vld [vmem:[#allocation3 + $0x400] sm:$0xff] }
  0xb2   : > { %v1299_v42 = vld [vmem:[#allocation2 + $0x3c0] sm:$0xff] }
  0xb3   : > { %1910 = vmatmul.mubr.bf16.gmra.mxu0 %v1528_v8  ;;  %v1351_v8 = vld [vmem:[#allocation2 + $0x160] sm:$0xff] }
  0xb4   : > { %2143 = vmatprep.mubr.bf16.mxu0 %v1434_v28  ;;  %v1705_v28 = vld [vmem:[#allocation3 + $0x420] sm:$0xff]  ;;  %v1531_v10 = vpack.c.bf16 %v1351_v8, %v1342_v22  ;;  %v1506_v8 = vpack.c.bf16 %v1299_v42, %v4267_v46  ;;  %v1165_v46 = vld [vmem:[#allocation2 + $0x368] sm:$0xff] }
  0xb5   : > { %v1783_v29 = vpack.c.bf16 %v1706_v63, %v1705_v28  ;;  %v1175_v28 = vld [vmem:[#allocation2 + $0x5c0] sm:$0xff] }
  0xb8   : > { %2047 = vmatmul.mubr.bf16.gmra.mxu1 %v1503_v18  ;;  %v1369_v18 = vld [vmem:[#allocation2 + $0x108] sm:$0xff] }
  0xb9   : > { %2054 = vmatprep.mubr.bf16.mxu1 %v1513_v58  ;;  %v1782_v58 = vpack.c.bf16 %v1704_v55, %v1703_v60  ;;  %v1540_v61 = vpack.c.bf16 %v1369_v18, %v1360_v17  ;;  %v1335_v60 = vld [vmem:[#allocation2 + $0x670] sm:$0xff]  ;;  %v1193_v55 = vld [vmem:[#allocation2 + $0x720] sm:$0xff] }
  0xba   : > { %v1524_v17 = vpack.c.bf16 %v1335_v60, %v4286_v15  ;;  %v1343_v15 = vld [vmem:[#allocation2 + $0x118] sm:$0xff] }
  0xbb   : > { %2144 = vmatmul.mubr.bf16.vlgmr.msra.gmra.mxu0 %v1433_v0  ;;  %v1227_v0 = vld [vmem:[#allocation2 + $0x800] sm:$0xff] }
  0xbc   : > { %3325 = vmatpush3.bf16.msra.mxu0 %v4237_v12  ;;  %2151 = vmatprep.mubr.bf16.mxu0 %v1443_v62  ;;  %v1785_v12 = vpack.c.bf16 %v1710_v14, %v1709_v16  ;;  %v1530_v62 = vpack.c.bf16 %v1350_v30, %v4272_v57  ;;  %v1470_v11 = vpack.c.bf16 %v1227_v0, %v4186_v6  ;;  %v1386_v6 = vld [vmem:[#allocation2 + $0x280] sm:$0xff]  ;;  %v1325_v0 = vld [vmem:[#allocation2 + $0x6d8] sm:$0xff] }
  0xbd   : > { %3326 = vmatprep.subr.bf16.mxu0 %v1787_v27 }
  0xc0   : > { %3327 = vmatpush3.bf16.msra.mxu0 %v1787_v27  ;;  %2055 = vmatmul.mubr.bf16.gmra.mxu1 %v1512_v43  ;;  %v1702_v27 = vld [vmem:[#allocation3 + $0x408] sm:$0xff] }
  0xc1   : > { %3328 = vmatprep.subr.bf16.mxu0 %v1786_v49  ;;  %2062 = vmatprep.mubr.bf16.mxu1 %v1522_v19  ;;  %v1263_v43 = vld [vmem:[#allocation2 + $0x5e8] sm:$0xff]  ;;  %v1414_v19 = vld [vmem:[#allocation2 + $0x338] sm:$0xff] }
  0xc2   : > { %v1488_v14 = vpack.c.bf16 %v1263_v43, %v4248_v2  ;;  %v1422_v2 = vld [vmem:[#allocation2 + $0x60] sm:$0xff] }
  0xc3   : > { %2152 = vmatmul.mubr.bf16.gmra.mxu0 %v1442_v35  ;;  %v1548_v35 = vpack.c.bf16 %v1386_v6, %v4295_v39  ;;  %v1566_v22 = vpack.c.bf16 %v1422_v2, %v4327_v33  ;;  %v1532_v6 = vpack.c.bf16 %v1352_v48, %v1343_v15 }
  0xc4   : > { %2159 = vmatprep.mubr.bf16.mxu0 %v1452_v50  ;;  %3329 = vmatpush3.bf16.msra.mxu0 %v1786_v49  ;;  %v1479_v49 = vpack.c.bf16 %v1245_v1, %v4231_v54  ;;  %v1404_v54 = vld [vmem:[#allocation2 + $0x150] sm:$0xff]  ;;  %v1281_v50 = vld [vmem:[#allocation2 + $0x4b8] sm:$0xff]  ;;  %v1210_v1 = vld [vmem:[#allocation2 + $0x688] sm:$0xff] }
  0xc5   : > { %3330 = vmatprep.subr.bf16.mxu0 %v1785_v12  ;;  %v1497_v25 = vpack.c.bf16 %v1281_v50, %v4261_v32  ;;  %v1147_v32 = vld [vmem:[#allocation2 + $0x8f8] sm:$0xff] }
  0xc6   : > { %v1238_v50 = vld [vmem:[#allocation2 + $0x8b8] sm:$0xff] }
  0xc8   : > { %3331 = vmatpush3.bf16.msra.mxu0 %v1785_v12  ;;  %2063 = vmatmul.mubr.bf16.gmra.mxu1 %v1521_v52  ;;  %v1567_v12 = vpack.c.bf16 %v4338_v3, %v1414_v19  ;;  %v1317_v52 = vld [vmem:[#allocation2 + $0x5b8] sm:$0xff]  ;;  %v1389_v19 = vld [vmem:[#allocation2 + $0x748] sm:$0xff] }
  0xc9   : > { %3332 = vmatprep.subr.bf16.mxu0 %v1784_v53  ;;  %2070 = vmatprep.mubr.bf16.mxu1 %v1531_v10  ;;  %v1515_v10 = vpack.c.bf16 %v1317_v52, %v4272_v57  ;;  %v1334_v57 = vld [vmem:[#allocation2 + $0x2b8] sm:$0xff]  ;;  %v1551_v2 = vpack.c.bf16 %v1389_v19, %v4327_v33  ;;  %v1407_v52 = vld [vmem:[#allocation2 + $0xa0] sm:$0xff] }
  0xca   : > { %v1158_v19 = vld [vmem:[#allocation2 + $0x8e0] sm:$0xff] }
  0xcb   : > { %2160 = vmatmul.mubr.bf16.gmra.mxu0 %v4093_v36  ;;  %v1781_v36 = vpack.c.bf16 %v1702_v27, %v1701_v23  ;;  %v1202_v23 = vld [vmem:[#allocation2 + $0x68] sm:$0xff]  ;;  %v1211_v27 = vld [vmem:[#allocation2 + $0x218] sm:$0xff] }
  0xcc   : > { %2167 = vmatprep.mubr.bf16.mxu0 %v1461_v56  ;;  %3333 = vmatpush3.bf16.msra.mxu0 %v1784_v53  ;;  %v1156_v53 = vld [vmem:[#allocation2 + $0x580] sm:$0xff]  ;;  %v1463_v20 = vpack.c.bf16 %v1211_v27, %v1202_v23 }
  0xcd   : > { %3334 = vmatprep.subr.bf16.mxu0 %v1783_v29  ;;  %v1435_v63 = vpack.c.bf16 %v1156_v53, %v1147_v32 }
  0xd0   : > { %3335 = vmatpush3.bf16.msra.mxu0 %v1783_v29  ;;  %2071 = vmatmul.mubr.bf16.gmra.mxu1 %v1530_v62  ;;  %v1174_v29 = vld [vmem:[#allocation2 + $0x4a0] sm:$0xff] }
  0xd1   : > { %3336 = vmatprep.subr.bf16.mxu0 %v1782_v58  ;;  %2078 = vmatprep.mubr.bf16.mxu1 %v1540_v61  ;;  %v1444_v30 = vpack.c.bf16 %v1174_v29, %v1165_v46  ;;  %v1353_v62 = vld [vmem:[#allocation2 + $0x4e0] sm:$0xff]  ;;  %v1523_v61 = vpack.c.bf16 %v1334_v57, %v1325_v0 }
  0xd3   : > { %2168 = vmatmul.mubr.bf16.gmra.mxu0 %v4193_v21  ;;  %v1396_v21 = vld [vmem:[#allocation2 + $0x1a0] sm:$0xff] }
  0xd4   : > { %2175 = vmatprep.mubr.bf16.mxu0 %v1470_v11  ;;  %3337 = vmatpush3.bf16.msra.mxu0 %v1782_v58  ;;  %v1558_v16 = vpack.c.bf16 %v4330_v31, %v1396_v21  ;;  %v1192_v58 = vld [vmem:[#allocation2 + $0x638] sm:$0xff]  ;;  %v1462_v21 = vpack.c.bf16 %v1210_v1, %v1201_v41 }
  0xd5   : > { %3338 = vmatprep.subr.bf16.mxu0 %v1781_v36 }
  0xd8   : > { %3339 = vmatpush3.bf16.msra.mxu0 %v1781_v36  ;;  %2079 = vmatmul.mubr.bf16.gmra.mxu1 %v1539_v4  ;;  %v1533_v36 = vpack.c.bf16 %v1353_v62, %v4295_v39  ;;  %v1371_v4 = vld [vmem:[#allocation2 + $0x70] sm:$0xff]  ;;  %v1264_v62 = vld [vmem:[#allocation2 + $0x308] sm:$0xff] }
  0xd9   : > { %2086 = vmatprep.mubr.bf16.mxu1 %v1549_v44  ;;  %v1220_v44 = vld [vmem:[#allocation2 + $0xe0] sm:$0xff]  ;;  %v1542_v43 = vpack.c.bf16 %v1371_v4, %v4305_v5  ;;  %v1361_v39 = vld [vmem:[#allocation2 + $0x7b0] sm:$0xff] }
  0xdb   : > { %2176 = vmatmul.mubr.bf16.gmra.mxu0 %v4243_v47  ;;  %v1557_v47 = vpack.c.bf16 %v1404_v54, %v4305_v5  ;;  %v1228_v54 = vld [vmem:[#allocation2 + $0x450] sm:$0xff]  ;;  %v1379_v5 = vld [vmem:[#allocation2 + $0x8] sm:$0xff] }
  0xdc   : > { %2183 = vmatprep.mubr.bf16.mxu0 %v1479_v49  ;;  %v1229_v49 = vld [vmem:[#allocation2 + $0x600] sm:$0xff] }
  0xe0   : > { %2087 = vmatmul.mubr.bf16.gmra.mxu1 %v1548_v35  ;;  %v1472_v35 = vpack.c.bf16 %v1229_v49, %v1220_v44 }
  0xe1   : > { %2094 = vmatprep.mubr.bf16.mxu1 %v1558_v16  ;;  %v1370_v16 = vld [vmem:[#allocation2 + $0xe8] sm:$0xff] }
  0xe3   : > { %2184 = vmatmul.mubr.bf16.gmra.mxu0 %v4281_v9  ;;  %v1157_v9 = vld [vmem:[#allocation2 + $0x3a8] sm:$0xff] }
  0xe4   : > { %2191 = vmatprep.mubr.bf16.mxu0 %v1488_v14  ;;  %v1436_v13 = vpack.c.bf16 %v1157_v9, %v1148_v38  ;;  %v1219_v14 = vld [vmem:[#allocation2 + $0x5d8] sm:$0xff] }
  0xe8   : > { %2095 = vmatmul.mubr.bf16.gmra.mxu1 %v1557_v47  ;;  %v1247_v47 = vld [vmem:[#allocation2 + $0x2b0] sm:$0xff] }
  0xe9   : > { %2102 = vmatprep.mubr.bf16.mxu1 %v1567_v12  ;;  %v1541_v12 = vpack.c.bf16 %v1370_v16, %v1361_v39  ;;  %v1481_v42 = vpack.c.bf16 %v1247_v47, %v1238_v50 }
  0xeb   : > { %2192 = vmatmul.mubr.bf16.gmra.mxu0 %v4319_v24  ;;  %v1166_v24 = vld [vmem:[#allocation2 + $0x830] sm:$0xff] }
  0xec   : > { %2199 = vmatprep.mubr.bf16.mxu0 %v1497_v25  ;;  %v1445_v56 = vpack.c.bf16 %v1175_v28, %v1166_v24  ;;  %v1471_v25 = vpack.c.bf16 %v1228_v54, %v1219_v14  ;;  %v1256_v24 = vld [vmem:[#allocation2 + $0x388] sm:$0xff]  ;;  %v1301_v14 = vld [vmem:[#allocation2 + $0x490] sm:$0xff] }
  0xed   : > { %v1265_v28 = vld [vmem:[#allocation2 + $0x3c8] sm:$0xff] }
  0xee   : > { %v1149_v54 = vld [vmem:[#allocation2 + $0x6e8] sm:$0xff] }
  0xf0   : > { %2103 = vmatmul.mubr.bf16.gmra.mxu1 %v1566_v22  ;;  %v1388_v22 = vld [vmem:[#allocation2 + $0x188] sm:$0xff] }
  0xf1   : > { %2304 = vmatprep.mubr.bf16.mxu1 %v1436_v13  ;;  %v1246_v13 = vld [vmem:[#allocation2 + $0x18] sm:$0xff]  ;;  %v1550_v29 = vpack.c.bf16 %v1388_v22, %v1379_v5 }
  0xf3   : > { %2200 = vmatmul.mubr.bf16.gmra.mxu0 %v4344_v7  ;;  %v1184_v7 = vld [vmem:[#allocation2 + $0x470] sm:$0xff] }
  0xf4   : > { %2207 = vmatprep.mubr.bf16.mxu0 %v1506_v8  ;;  %v1454_v18 = vpack.c.bf16 %v1193_v55, %v1184_v7  ;;  %v1237_v8 = vld [vmem:[#allocation2 + $0x518] sm:$0xff]  ;;  %v1560_v7 = vpack.c.bf16 %v1407_v52, %v4362_v45  ;;  %v1490_v55 = vpack.c.bf16 %v1265_v28, %v1256_v24  ;;  %v1167_v52 = vld [vmem:[#allocation2 + $0x10] sm:$0xff] }
  0xf5   : > { %v1480_v60 = vpack.c.bf16 %v1246_v13, %v1237_v8  ;;  %v1176_v24 = vld [vmem:[#allocation2 + $0x1d0] sm:$0xff] }
  0xf8   : > { %2305 = vmatmul.mubr.bf16.vlgmr.msra.gmra.mxu1 %v1435_v63 }
  0xf9   : > { %2312 = vmatprep.mubr.bf16.mxu1 %v1445_v56 }
  0xfb   : > { %2208 = vmatmul.mubr.bf16.gmra.mxu0 %v4353_v26  ;;  %v1183_v26 = vld [vmem:[#allocation2 + $0x328] sm:$0xff] }
  0xfc   : > { %2215 = vmatprep.mubr.bf16.mxu0 %v1515_v10  ;;  %v1453_v11 = vpack.c.bf16 %v1192_v58, %v1183_v26  ;;  %v1255_v58 = vld [vmem:[#allocation2 + $0x640] sm:$0xff] }
  0xfd   : > { %v1489_v48 = vpack.c.bf16 %v1264_v62, %v1255_v58 }
 0x100   : > { %2313 = vmatmul.mubr.bf16.gmra.mxu1 %v1444_v30 }
 0x101   : > { %2320 = vmatprep.mubr.bf16.mxu1 %v1454_v18 }
 0x103   : > { %2216 = vmatmul.mubr.bf16.gmra.mxu0 %v4366_v34 }
 0x104   : > { %2223 = vmatprep.mubr.bf16.mxu0 %v1524_v17 }
 0x108   : > { %2321 = vmatmul.mubr.bf16.gmra.mxu1 %v1453_v11 }
 0x109   : > { %2328 = vmatprep.mubr.bf16.mxu1 %v1463_v20 }
 0x10b   : > { %2224 = vmatmul.mubr.bf16.gmra.mxu0 %v1523_v61  ;;  %v1425_v61 = vld [vmem:[#allocation2 + $0x870] sm:$0xff] }
 0x10c   : > { %2231 = vmatprep.mubr.bf16.mxu0 %v1533_v36  ;;  %v1569_v41 = vpack.c.bf16 %v1425_v61, %v4378_v40 }
 0x10f   : > { %v2868_v38 = vpop.f32.mrf.mxu0 }
 0x110   : > { %2329 = vmatmul.mubr.bf16.gmra.mxu1 %v1462_v21 }
 0x111   : > { %2336 = vmatprep.mubr.bf16.mxu1 %v1472_v35  ;;  %v2869_v32 = vpop.f32.mrf.mxu0  ;;  %v1292_v35 = vld [vmem:[#allocation2 + $0x3e8] sm:$0xff] }
 0x112   : > { %v4418_v63 = vadd.f32 %v2869_v32, %v2868_v38  ;;  %v1437_v38 = vpack.c.bf16 %v1158_v19, %v1149_v54  ;;  %v1291_v32 = vld [vmem:[#allocation2 + $0x408] sm:$0xff] }
 0x113   : > { %2232 = vmatmul.mubr.bf16.gmra.mxu0 %v1532_v6  ;;  %v2871_v56 = vpop.f32.mrf.mxu0 }
 0x114   : > { %2239 = vmatprep.mubr.bf16.mxu0 %v1542_v43  ;;  %v1273_v43 = vld [vmem:[#allocation2 + $0x6b0] sm:$0xff] }
 0x115   : > { %v2940_v9 = vpop.f32.mrf.mxu1  ;;  %v2872_v30 = vpop.f32.mrf.mxu0 }
 0x116   : > { %v4423_v18 = vadd.f32 %v2872_v30, %v2871_v56 }
 0x117   : > { %v2941_v53 = vpop.f32.mrf.mxu1 }
 0x118   : > { %2337 = vmatmul.mubr.bf16.gmra.mxu1 %v1471_v25  ;;  %v4420_v10 = vadd.f32 %v2941_v53, %v2940_v9  ;;  %v2874_v57 = vpop.f32.mrf.mxu0  ;;  %v1300_v53 = vld [vmem:[#allocation2 + $0x1f0] sm:$0xff] }
 0x119   : > { %2344 = vmatprep.mubr.bf16.mxu1 %v1481_v42  ;;  %v2943_v46 = vpop.f32.mrf.mxu1  ;;  %v1508_v42 = vpack.c.bf16 %v1301_v14, %v1292_v35  ;;  %v1230_v14 = vld [vmem:[#allocation2 + $0x378] sm:$0xff] }
 0x11a   : > { %v2875_v23 = vpop.f32.mrf.mxu0 }
 0x11b   : > { %2240 = vmatmul.mubr.bf16.gmra.mxu0 %v1541_v12  ;;  %v2944_v17 = vpop.f32.mrf.mxu1  ;;  %v4427_v11 = vadd.f32 %v2875_v23, %v2874_v57  ;;  %v1507_v57 = vpack.c.bf16 %v1300_v53, %v1291_v32 }
 0x11c   : > { %2247 = vmatprep.mubr.bf16.mxu0 %v1551_v2  ;;  %v4425_v0 = vadd.f32 %v2944_v17, %v2943_v46  ;;  %v2877_v20 = vpop.f32.mrf.mxu0  ;;  %v1498_v2 = vpack.c.bf16 %v4255_v59, %v1273_v43  ;;  %v1310_v59 = vld [vmem:[#allocation2 + $0x80] sm:$0xff] }
 0x11d   : > { %v2946_v26 = vpop.f32.mrf.mxu1  ;;  %v1319_v46 = vld [vmem:[#allocation2 + $0x4c0] sm:$0xff] }
 0x11e   : > { %v2878_v1 = vpop.f32.mrf.mxu0  ;;  %v1517_v58 = vpack.c.bf16 %v1319_v46, %v1310_v59  ;;  %v1327_v59 = vld [vmem:[#allocation2 + $0x860] sm:$0xff]  ;;  %v1248_v46 = vld [vmem:[#allocation2 + $0x558] sm:$0xff] }
 0x11f   : > { %v2947_v27 = vpop.f32.mrf.mxu1  ;;  %v4432_v44 = vadd.f32 %v2878_v1, %v2877_v20  ;;  %v1318_v1 = vld [vmem:[#allocation2 + $0x780] sm:$0xff] }
 0x120   : > { %2345 = vmatmul.mubr.bf16.gmra.mxu1 %v1480_v60  ;;  %v4429_v36 = vadd.f32 %v2947_v27, %v2946_v26  ;;  %v1194_v60 = vld [vmem:[#allocation2 + $0x610] sm:$0xff]  ;;  %v1446_v26 = vpack.c.bf16 %v1176_v24, %v1167_v52 }
 0x121   : > { %2352 = vmatprep.mubr.bf16.mxu1 %v1490_v55  ;;  %v2949_v15 = vpop.f32.mrf.mxu1 }
 0x123   : > { %2248 = vmatmul.mubr.bf16.gmra.mxu0 %v1550_v29  ;;  %v2950_v4 = vpop.f32.mrf.mxu1  ;;  %v1185_v29 = vld [vmem:[#allocation2 + $0x7e8] sm:$0xff] }
 0x124   : > { %2255 = vmatprep.mubr.bf16.mxu0 %v1560_v7  ;;  %v4434_v49 = vadd.f32 %v2950_v4, %v2949_v15  ;;  %v1455_v62 = vpack.c.bf16 %v1194_v60, %v1185_v29  ;;  %v1203_v4 = vld [vmem:[#allocation2 + $0x590] sm:$0xff] }
 0x125   : > { %v2880_v6 = vpop.f32.mrf.mxu0  ;;  %v2952_v21 = vpop.f32.mrf.mxu1 }
 0x127   : > { %v2881_v39 = vpop.f32.mrf.mxu0  ;;  %v2953_v16 = vpop.f32.mrf.mxu1 }
 0x128   : > { %2353 = vmatmul.mubr.bf16.gmra.mxu1 %v1489_v48  ;;  %v4438_v50 = vadd.f32 %v2881_v39, %v2880_v6  ;;  %v4440_v47 = vadd.f32 %v2953_v16, %v2952_v21  ;;  %v1212_v6 = vld [vmem:[#allocation2 + $0x350] sm:$0xff]  ;;  %v1328_v21 = vld [vmem:[#allocation2 + $0x3b8] sm:$0xff] }
 0x129   : > { %2360 = vmatprep.mubr.bf16.mxu1 %v4366_v34  ;;  %v2883_v12 = vpop.f32.mrf.mxu0  ;;  %v2955_v25 = vpop.f32.mrf.mxu1  ;;  %v1337_v39 = vld [vmem:[#allocation2 + $0x718] sm:$0xff] }
 0x12a   : > { %v1221_v16 = vld [vmem:[#allocation2 + $0x2d8] sm:$0xff] }
 0x12b   : > { %2256 = vmatmul.mubr.bf16.gmra.mxu0 %v4371_v37  ;;  %v2884_v9 = vpop.f32.mrf.mxu0  ;;  %v2956_v5 = vpop.f32.mrf.mxu1 }
 0x12c   : > { %2263 = vmatprep.mubr.bf16.mxu0 %v1569_v41  ;;  %v4443_v34 = vadd.f32 %v2884_v9, %v2883_v12  ;;  %v4445_v22 = vadd.f32 %v2956_v5, %v2955_v25  ;;  %v1309_v41 = vld [vmem:[#allocation2 + $0x298] sm:$0xff]  ;;  %v1526_v9 = vpack.c.bf16 %v1337_v39, %v1328_v21  ;;  %v1473_v5 = vpack.c.bf16 %v1230_v14, %v1221_v16  ;;  %v1345_v14 = vld [vmem:[#allocation2 + $0x1b0] sm:$0xff] }
 0x12d   : > { %v2886_v8 = vpop.f32.mrf.mxu0 }
 0x12e   : > { %v2958_v13 = vpop.f32.mrf.mxu1 }
 0x12f   : > { %v2887_v28 = vpop.f32.mrf.mxu0 }
 0x130   : > { %2361 = vmatmul.mubr.bf16.gmra.mxu1 %v1498_v2  ;;  %v2959_v56 = vpop.f32.mrf.mxu1  ;;  %v4448_v7 = vadd.f32 %v2887_v28, %v2886_v8  ;;  %v1516_v2 = vpack.c.bf16 %v1318_v1, %v1309_v41  ;;  %v3421_v41 = vld [vmem:[#allocation2 + $0x390] sm:$0xff] }
 0x131   : > { %2368 = vmatprep.mubr.bf16.mxu1 %v1508_v42  ;;  %v4450_v55 = vadd.f32 %v2959_v56, %v2958_v13  ;;  %v2889_v30 = vpop.f32.mrf.mxu0  ;;  %v1464_v42 = vpack.c.bf16 %v1212_v6, %v1203_v4  ;;  %v1336_v56 = vld [vmem:[#allocation2 + $0xf0] sm:$0xff] }
 0x132   : > { %v2961_v17 = vpop.f32.mrf.mxu1 }
 0x133   : > { %2264 = vmatmul.mubr.bf16.gmra.mxu0 %v4383_v51  ;;  %v2890_v23 = vpop.f32.mrf.mxu0 }
 0x134   : > { %3340 = vmatprep.mubr.bf16.mxu0 %v1437_v38  ;;  %v2962_v27 = vpop.f32.mrf.mxu1  ;;  %v4452_v61 = vadd.f32 %v2890_v23, %v2889_v30  ;;  %v1346_v30 = vld [vmem:[#allocation2 + $0x458] sm:$0xff] }
 0x135   : > { %v4454_v20 = vadd.f32 %v2962_v27, %v2961_v17  ;;  %v1355_v17 = vld [vmem:[#allocation2 + $0x5b0] sm:$0xff]  ;;  %v1525_v27 = vpack.c.bf16 %v1336_v56, %v1327_v59 }
 0x137   : > { %v2892_v15 = vpop.f32.mrf.mxu0  ;;  %v2980_v48 = vpop.f32.mrf.mxu1 }
 0x138   : > { %2369 = vmatmul.mubr.bf16.gmra.mxu1 %v1507_v57  ;;  %v1266_v57 = vld [vmem:[#allocation2 + $0x28] sm:$0xff] }
 0x139   : > { %2376 = vmatprep.mubr.bf16.mxu1 %v1517_v58  ;;  %v2893_v43 = vpop.f32.mrf.mxu0  ;;  %v2981_v35 = vpop.f32.mrf.mxu1  ;;  %v1491_v1 = vpack.c.bf16 %v1266_v57, %v3421_v41  ;;  %v1363_v57 = vld [vmem:[#allocation2 + $0x1e0] sm:$0xff] }
 0x13a   : > { %v4456_v54 = vadd.f32 %v2893_v43, %v2892_v15  ;;  %v2982_v19 = vadd.f32 %v2981_v35, %v2980_v48  ;;  %v1535_v48 = vpack.c.bf16 %v1355_v17, %v1346_v30 }
 0x13b   : > { %3341 = vmatmul.mubr.bf16.vlgmr.msra.gmra.mxu0 %v1446_v26  ;;  %v2895_v12 = vpop.f32.mrf.mxu0  ;;  %v2983_v25 = vpop.f32.mrf.mxu1 }
 0x13c   : > { %3344 = vmatprep.mubr.bf16.mxu0 %v1455_v62  ;;  %v4459_v38 = vadd.f32 %v2982_v19, %v4418_v63  ;;  %v1239_v63 = vld [vmem:[#allocation2 + $0x8c8] sm:$0xff]  ;;  %v1284_v19 = vld [vmem:[#allocation2 + $0x6f8] sm:$0xff] }
 0x13d   : > { %v2896_v8 = vpop.f32.mrf.mxu0  ;;  %v2984_v13 = vpop.f32.mrf.mxu1  ;;  %v1482_v15 = vpack.c.bf16 %v1248_v46, %v1239_v63 }
 0x13e   : > { %v4461_v32 = vadd.f32 %v2896_v8, %v2895_v12  ;;  %v2985_v53 = vadd.f32 %v2984_v13, %v2983_v25 }
 0x13f   : > { %v2898_v52 = vpop.f32.mrf.mxu0  ;;  %v2986_v24 = vpop.f32.mrf.mxu1 }
 0x140   : > { %2377 = vmatmul.mubr.bf16.gmra.mxu1 %v1516_v2  ;;  %v4464_v28 = vadd.f32 %v2985_v53, %v4423_v18  ;;  %v1302_v2 = vld [vmem:[#allocation2 + $0xa8] sm:$0xff]  ;;  %v3422_v53 = vld [vmem:[#allocation2 + $0x78] sm:$0xff] }
 0x141   : > { %2384 = vmatprep.mubr.bf16.mxu1 %v1526_v9  ;;  %v2899_v29 = vpop.f32.mrf.mxu0  ;;  %v2987_v60 = vpop.f32.mrf.mxu1 }
 0x142   : > { %v4466_v26 = vadd.f32 %v2899_v29, %v2898_v52  ;;  %v2988_v58 = vadd.f32 %v2987_v60, %v2986_v24  ;;  %v1500_v52 = vpack.c.bf16 %v1284_v19, %v3422_v53 }
 0x143   : > { %3345 = vmatmul.mubr.bf16.gmra.mxu0 %v1464_v42  ;;  %v2901_v62 = vpop.f32.mrf.mxu0  ;;  %v2989_v23 = vpop.f32.mrf.mxu1 }
 0x144   : > { %3348 = vmatprep.mubr.bf16.mxu0 %v1473_v5  ;;  %v4469_v18 = vadd.f32 %v2988_v58, %v4427_v11  ;;  %v1354_v11 = vld [vmem:[#allocation2 + $0x3f8] sm:$0xff] }
 0x145   : > { %v2902_v4 = vpop.f32.mrf.mxu0  ;;  %v2990_v6 = vpop.f32.mrf.mxu1  ;;  %v1534_v13 = vpack.c.bf16 %v1354_v11, %v1345_v14 }
 0x146   : > { %v4471_v21 = vadd.f32 %v2902_v4, %v2901_v62  ;;  %v2991_v43 = vadd.f32 %v2990_v6, %v2989_v23  ;;  %v1338_v23 = vld [vmem:[#allocation2 + $0x220] sm:$0xff] }
 0x147   : > { %v2904_v35 = vpop.f32.mrf.mxu0  ;;  %v2992_v39 = vpop.f32.mrf.mxu1  ;;  %v3424_v4 = vld [vmem:[#allocation2 + $0x6e0] sm:$0xff] }
 0x148   : > { %2385 = vmatmul.mubr.bf16.gmra.mxu1 %v1525_v27  ;;  %v4474_v16 = vadd.f32 %v2991_v43, %v4432_v44  ;;  %v3423_v44 = vld [vmem:[#allocation2 + $0x330] sm:$0xff] }
 0x149   : > { %2392 = vmatprep.mubr.bf16.mxu1 %v1535_v48  ;;  %v2905_v12 = vpop.f32.mrf.mxu0  ;;  %v2993_v25 = vpop.f32.mrf.mxu1  ;;  %v1509_v59 = vpack.c.bf16 %v1302_v2, %v3423_v44  ;;  %v3425_v43 = vld [vmem:[#allocation2 + $0x430] sm:$0xff] }
 0x14a   : > { %v4476_v42 = vadd.f32 %v2905_v12, %v2904_v35  ;;  %v2994_v9 = vadd.f32 %v2993_v25, %v2992_v39 }
 0x14b   : > { %3349 = vmatmul.mubr.bf16.gmra.mxu0 %v1482_v15  ;;  %v2907_v5 = vpop.f32.mrf.mxu0  ;;  %v2995_v8 = vpop.f32.mrf.mxu1 }
 0x14c   : > { %3352 = vmatprep.mubr.bf16.mxu0 %v1491_v1  ;;  %v4479_v24 = vadd.f32 %v2994_v9, %v4438_v50  ;;  %v1320_v50 = vld [vmem:[#allocation2 + $0x528] sm:$0xff]  ;;  %v1543_v1 = vpack.c.bf16 %v4330_v31, %v1363_v57 }
 0x14d   : > { %v2908_v56 = vpop.f32.mrf.mxu0  ;;  %v2996_v63 = vpop.f32.mrf.mxu1  ;;  %v1518_v6 = vpack.c.bf16 %v1320_v50, %v3424_v4  ;;  %v1381_v31 = vld [vmem:[#allocation2 + $0x428] sm:$0xff] }
 0x14e   : > { %v4481_v46 = vadd.f32 %v2908_v56, %v2907_v5  ;;  %v2997_v29 = vadd.f32 %v2996_v63, %v2995_v8  ;;  %v1374_v5 = vld [vmem:[#allocation2 + $0x410] sm:$0xff]  ;;  %v1552_v44 = vpack.c.bf16 %v4338_v3, %v1381_v31  ;;  %v3426_v56 = vld [vmem:[#allocation2 + $0x808] sm:$0xff] }
 0x14f   : > { %v2998_v30 = vpop.f32.mrf.mxu1  ;;  %v1545_v63 = vpack.c.bf16 %v1374_v5, %v4362_v45 }
 0x150   : > { %2393 = vmatmul.mubr.bf16.gmra.mxu1 %v1534_v13  ;;  %v4484_v17 = vadd.f32 %v2997_v29, %v4443_v34 }
 0x151   : > { %2400 = vmatprep.mubr.bf16.mxu1 %v4371_v37  ;;  %v2999_v62 = vpop.f32.mrf.mxu1  ;;  %v1527_v37 = vpack.c.bf16 %v1338_v23, %v3425_v43 }
 0x152   : > { %v3000_v15 = vadd.f32 %v2999_v62, %v2998_v30 }
 0x153   : > { %v2910_v60 = vpop.f32.mrf.mxu0  ;;  %3353 = vmatmul.mubr.bf16.gmra.mxu0 %v1500_v52  ;;  %v3001_v41 = vpop.f32.mrf.mxu1 }
 0x154   : > { %3356 = vmatprep.mubr.bf16.mxu0 %v1509_v59  ;;  %v4491_v34 = vadd.f32 %v3000_v15, %v4448_v7  ;;  %v1356_v7 = vld [vmem:[#allocation2 + $0x208] sm:$0xff] }
 0x155   : > { %v2911_v58 = vpop.f32.mrf.mxu0  ;;  %v3002_v39 = vpop.f32.mrf.mxu1  ;;  %v1536_v59 = vpack.c.bf16 %v1356_v7, %v4327_v33  ;;  %v1392_v33 = vld [vmem:[#allocation2 + $0x690] sm:$0xff] }
 0x156   : > { %v4487_v27 = vadd.f32 %v2911_v58, %v2910_v60  ;;  %v3003_v11 = vadd.f32 %v3002_v39, %v3001_v41  ;;  %v1554_v41 = vpack.c.bf16 %v1392_v33, %v4378_v40 }
 0x157   : > { %v2913_v48 = vpop.f32.mrf.mxu0 }
 0x158   : > { %v3004_v12 = vpop.f32.mrf.mxu1  ;;  %2401 = vmatmul.mubr.bf16.gmra.mxu1 %v1543_v1  ;;  %v4496_v25 = vadd.f32 %v3003_v11, %v4452_v61 }
 0x159   : > { %v2914_v35 = vpop.f32.mrf.mxu0  ;;  %2408 = vmatprep.mubr.bf16.mxu1 %v4383_v51  ;;  %v1562_v51 = vpack.c.bf16 %v3426_v56, %v3426_v56 }
 0x15a   : > { %v4493_v14 = vadd.f32 %v2914_v35, %v2913_v48  ;;  %v3005_v9 = vpop.f32.mrf.mxu1 }
 0x15b   : > { %v2916_v19 = vpop.f32.mrf.mxu0  ;;  %3357 = vmatmul.mubr.bf16.gmra.mxu0 %v1518_v6  ;;  %v3006_v13 = vadd.f32 %v3005_v9, %v3004_v12 }
 0x15c   : > { %3360 = vmatprep.mubr.bf16.mxu0 %v1527_v37  ;;  %v3007_v52 = vpop.f32.mrf.mxu1 }
 0x15d   : > { %v2917_v2 = vpop.f32.mrf.mxu0  ;;  %v4504_v61 = vadd.f32 %v3006_v13, %v4456_v54 }
 0x15e   : > { %v4499_v8 = vadd.f32 %v2917_v2, %v2916_v19  ;;  %v3008_v60 = vpop.f32.mrf.mxu1 }
 0x15f   : > { %v2919_v53 = vpop.f32.mrf.mxu0  ;;  %v3009_v57 = vadd.f32 %v3008_v60, %v3007_v52 }
 0x160   : > { %v3010_v58 = vpop.f32.mrf.mxu1  ;;  %2409 = vmatmul.mubr.bf16.gmra.mxu1 %v1552_v44 }
 0x161   : > { %v2920_v29 = vpop.f32.mrf.mxu0  ;;  %v4510_v3 = vadd.f32 %v3009_v57, %v4461_v32  ;;  %2416 = vmatprep.mubr.bf16.mxu1 %v1562_v51 }
 0x162   : > { %v4507_v30 = vadd.f32 %v2920_v29, %v2919_v53  ;;  %v3011_v62 = vpop.f32.mrf.mxu1 }
 0x163   : > { %v2922_v50 = vpop.f32.mrf.mxu0  ;;  %3361 = vmatmul.mubr.bf16.gmra.mxu0 %v1536_v59  ;;  %v3012_v45 = vadd.f32 %v3011_v62, %v3010_v58 }
 0x164   : > { %3364 = vmatprep.mubr.bf16.mxu0 %v1545_v63  ;;  %v3013_v48 = vpop.f32.mrf.mxu1 }
 0x165   : > { %v2923_v54 = vpop.f32.mrf.mxu0  ;;  %v4516_v1 = vadd.f32 %v3012_v45, %v4466_v26 }
 0x166   : > { %v4512_v23 = vadd.f32 %v2923_v54, %v2922_v50  ;;  %v3014_v6 = vpop.f32.mrf.mxu1 }
 0x167   : > { %v2925_v15 = vpop.f32.mrf.mxu0  ;;  %v3015_v32 = vadd.f32 %v3014_v6, %v3013_v48 }
 0x168   : > { %v3016_v35 = vpop.f32.mrf.mxu1  ;;  %2417 = vmatmul.mubr.bf16.gmra.mxu1 %v1562_v51 }
 0x169   : > { %v2926_v4 = vpop.f32.mrf.mxu0  ;;  %v4521_v39 = vadd.f32 %v3015_v32, %v4471_v21  ;;  %2424 = vmatprep.mubr.bf16.mxu1 %v1562_v51 }
 0x16a   : > { %v4518_v43 = vadd.f32 %v2926_v4, %v2925_v15  ;;  %v3017_v19 = vpop.f32.mrf.mxu1 }
 0x16b   : > { %v2928_v37 = vpop.f32.mrf.mxu0  ;;  %3365 = vmatmul.mubr.bf16.gmra.mxu0 %v1554_v41  ;;  %v3018_v26 = vadd.f32 %v3017_v19, %v3016_v35 }
 0x16c   : > { %3368 = vmatprep.mubr.bf16.mxu0 %v1562_v51  ;;  %v3019_v31 = vpop.f32.mrf.mxu1 }
 0x16d   : > { %v2929_v11 = vpop.f32.mrf.mxu0  ;;  %v4526_v7 = vadd.f32 %v3018_v26, %v4476_v42 }
 0x16e   : > { %v4523_v40 = vadd.f32 %v2929_v11, %v2928_v37  ;;  %v3020_v9 = vpop.f32.mrf.mxu1 }
 0x16f   : > { %v2931_v12 = vpop.f32.mrf.mxu0  ;;  %v3021_v13 = vadd.f32 %v3020_v9, %v3019_v31 }
 0x170   : > { %v3022_v21 = vpop.f32.mrf.mxu1  ;;  %2425 = vmatmul.mubr.bf16.gmra.mxu1 %v1562_v51 }
 0x171   : > { %v2932_v2 = vpop.f32.mrf.mxu0  ;;  %v4531_v52 = vadd.f32 %v3021_v13, %v4481_v46 }
 0x172   : > { %v4528_v5 = vadd.f32 %v2932_v2, %v2931_v12  ;;  %v3023_v59 = vpop.f32.mrf.mxu1 }
 0x173   : > { %v2934_v53 = vpop.f32.mrf.mxu0  ;;  %3369 = vmatmul.mubr.bf16.gmra.mxu0 %v1562_v51  ;;  %v3024_v63 = vadd.f32 %v3023_v59, %v3022_v21 }
 0x174   : > { %v3025_v42 = vpop.f32.mrf.mxu1 }
 0x175   : > { %v2935_v44 = vpop.f32.mrf.mxu0  ;;  %v4536_v60 = vadd.f32 %v3024_v63, %v4487_v27 }
 0x176   : > { %v4533_v56 = vadd.f32 %v2935_v44, %v2934_v53  ;;  %v3026_v50 = vpop.f32.mrf.mxu1 }
 0x177   : > { %v2937_v29 = vpop.f32.mrf.mxu0  ;;  %v3027_v33 = vadd.f32 %v3026_v50, %v3025_v42 }
 0x178   : > { %v3028_v54 = vpop.f32.mrf.mxu1 }
 0x179   : > { %v2938_v57 = vpop.f32.mrf.mxu0  ;;  %v4541_v46 = vadd.f32 %v3027_v33, %v4493_v14 }
 0x17a   : > { %v4538_v58 = vadd.f32 %v2938_v57, %v2937_v29  ;;  %v3029_v62 = vpop.f32.mrf.mxu1 }
 0x17b   : > { %v3092_v51 = vpop.f32.mrf.mxu0  ;;  %v3030_v15 = vadd.f32 %v3029_v62, %v3028_v54 }
 0x17c   : > { %v3031_v41 = vpop.f32.mrf.mxu1 }
 0x17d   : > { %v3093_v45 = vpop.f32.mrf.mxu0  ;;  %v4544_v6 = vadd.f32 %v3030_v15, %v4499_v8 }
 0x17e   : > { %v3094_v48 = vadd.f32 %v3093_v45, %v3092_v51  ;;  %v3032_v32 = vpop.f32.mrf.mxu1 }
 0x17f   : > { %v3095_v4 = vpop.f32.mrf.mxu0  ;;  %v3033_v35 = vadd.f32 %v3032_v32, %v3031_v41 }
 0x180   : > { %v4547_v27 = vadd.f32 %v3094_v48, %v4459_v38  ;;  %v3034_v19 = vpop.f32.mrf.mxu1 }
 0x181   : > { %v3096_v37 = vpop.f32.mrf.mxu0  ;;  %v4550_v14 = vadd.f32 %v3033_v35, %v4507_v30 }
 0x182   : > { %v3097_v11 = vadd.f32 %v3096_v37, %v3095_v4  ;;  %v3035_v31 = vpop.f32.mrf.mxu1 }
 0x183   : > { %v3098_v26 = vpop.f32.mrf.mxu0  ;;  %v3036_v9 = vadd.f32 %v3035_v31, %v3034_v19 }
 0x184   : > { %v4553_v12 = vadd.f32 %v3097_v11, %v4464_v28  ;;  %v3037_v13 = vpop.f32.mrf.mxu1 }
 0x185   : > { %v3099_v2 = vpop.f32.mrf.mxu0  ;;  %v4556_v38 = vadd.f32 %v3036_v9, %v4512_v23 }
 0x186   : > { %v3100_v8 = vadd.f32 %v3099_v2, %v3098_v26  ;;  %v3038_v44 = vpop.f32.mrf.mxu1 }
 0x187   : > { %v3101_v53 = vpop.f32.mrf.mxu0  ;;  %v3039_v63 = vadd.f32 %v3038_v44, %v3037_v13 }
 0x188   : > { %v4559_v21 = vadd.f32 %v3100_v8, %v4469_v18  ;;  %v3040_v29 = vpop.f32.mrf.mxu1 }
 0x189   : > { %v3102_v59 = vpop.f32.mrf.mxu0  ;;  %v4562_v28 = vadd.f32 %v3039_v63, %v4518_v43 }
 0x18a   : > { %v3103_v30 = vadd.f32 %v3102_v59, %v3101_v53  ;;  %v3041_v50 = vpop.f32.mrf.mxu1 }
 0x18b   : > { %v3104_v42 = vpop.f32.mrf.mxu0  ;;  %v3042_v54 = vadd.f32 %v3041_v50, %v3040_v29 }
 0x18c   : > { %v4565_v57 = vadd.f32 %v3103_v30, %v4474_v16  ;;  %v3043_v51 = vpop.f32.mrf.mxu1 }
 0x18d   : > { %v3105_v33 = vpop.f32.mrf.mxu0  ;;  %v4568_v18 = vadd.f32 %v3042_v54, %v4523_v40 }
 0x18e   : > { %v3106_v23 = vadd.f32 %v3105_v33, %v3104_v42  ;;  %v3044_v15 = vpop.f32.mrf.mxu1 }
 0x18f   : > { %v3107_v62 = vpop.f32.mrf.mxu0  ;;  %v3045_v41 = vadd.f32 %v3044_v15, %v3043_v51 }
 0x190   : > { %v4571_v45 = vadd.f32 %v3106_v23, %v4479_v24  ;;  %v3046_v4 = vpop.f32.mrf.mxu1 }
 0x191   : > { %v3108_v48 = vpop.f32.mrf.mxu0  ;;  %v4574_v16 = vadd.f32 %v3045_v41, %v4528_v5 }
 0x192   : > { %v3109_v43 = vadd.f32 %v3108_v48, %v3107_v62  ;;  %v3047_v35 = vpop.f32.mrf.mxu1 }
 0x193   : > { %v3110_v32 = vpop.f32.mrf.mxu0  ;;  %v3048_v19 = vadd.f32 %v3047_v35, %v3046_v4 }
 0x194   : > { %v4577_v37 = vadd.f32 %v3109_v43, %v4484_v17  ;;  %v3049_v26 = vpop.f32.mrf.mxu1 }
 0x195   : > { %v3111_v11 = vpop.f32.mrf.mxu0  ;;  %v4580_v24 = vadd.f32 %v3048_v19, %v4533_v56 }
 0x196   : > { %v3112_v40 = vadd.f32 %v3111_v11, %v3110_v32  ;;  %v3050_v9 = vpop.f32.mrf.mxu1 }
 0x197   : > { %v3113_v31 = vpop.f32.mrf.mxu0  ;;  %v3051_v13 = vadd.f32 %v3050_v9, %v3049_v26 }
 0x198   : > { %v4583_v2 = vadd.f32 %v3112_v40, %v4491_v34  ;;  %v3052_v53 = vpop.f32.mrf.mxu1 }
 0x199   : > { %v3114_v8 = vpop.f32.mrf.mxu0  ;;  %v4586_v17 = vadd.f32 %v3051_v13, %v4538_v58 }
 0x19a   : > { %v3115_v5 = vadd.f32 %v3114_v8, %v3113_v31  ;;  %v3053_v63 = vpop.f32.mrf.mxu1 }
 0x19b   : > { %v3116_v44 = vpop.f32.mrf.mxu0  ;;  %v3054_v29 = vadd.f32 %v3053_v63, %v3052_v53 }
 0x19c   : > { %v4589_v59 = vadd.f32 %v3115_v5, %v4496_v25  ;;  %v3055_v42 = vpop.f32.mrf.mxu1 }
 0x19d   : > { %v3117_v30 = vpop.f32.mrf.mxu0  ;;  %v4592_v34 = vadd.f32 %v3054_v29, %v4420_v10 }
 0x19e   : > { %v3118_v56 = vadd.f32 %v3117_v30, %v3116_v44  ;;  %v3056_v54 = vpop.f32.mrf.mxu1 }
 0x19f   : > { %v3119_v50 = vpop.f32.mrf.mxu0  ;;  %v3057_v51 = vadd.f32 %v3056_v54, %v3055_v42 }
 0x1a0   : > { %v4595_v33 = vadd.f32 %v3118_v56, %v4504_v61  ;;  %v3058_v62 = vpop.f32.mrf.mxu1 }
 0x1a1   : > { %v3120_v23 = vpop.f32.mrf.mxu0  ;;  %v4598_v25 = vadd.f32 %v3057_v51, %v4425_v0 }
 0x1a2   : > { %v3121_v58 = vadd.f32 %v3120_v23, %v3119_v50  ;;  %v3059_v41 = vpop.f32.mrf.mxu1 }
 0x1a3   : > { %v3122_v15 = vpop.f32.mrf.mxu0  ;;  %v3060_v4 = vadd.f32 %v3059_v41, %v3058_v62 }
 0x1a4   : > { %v4601_v48 = vadd.f32 %v3121_v58, %v4510_v3  ;;  %v3061_v32 = vpop.f32.mrf.mxu1 }
 0x1a5   : > { %v3123_v43 = vpop.f32.mrf.mxu0  ;;  %v4604_v61 = vadd.f32 %v3060_v4, %v4429_v36 }
 0x1a6   : > { %v3124_v10 = vadd.f32 %v3123_v43, %v3122_v15  ;;  %v3062_v19 = vpop.f32.mrf.mxu1 }
 0x1a7   : > { %v3125_v35 = vpop.f32.mrf.mxu0  ;;  %v3063_v26 = vadd.f32 %v3062_v19, %v3061_v32 }
 0x1a8   : > { %v4607_v11 = vadd.f32 %v3124_v10, %v4516_v1  ;;  %v3064_v31 = vpop.f32.mrf.mxu1 }
 0x1a9   : > { %v3126_v40 = vpop.f32.mrf.mxu0  ;;  %v4610_v3 = vadd.f32 %v3063_v26, %v4434_v49 }
 0x1aa   : > { %v3127_v0 = vadd.f32 %v3126_v40, %v3125_v35  ;;  %v3065_v13 = vpop.f32.mrf.mxu1 }
 0x1ab   : > { %v3128_v9 = vpop.f32.mrf.mxu0  ;;  %v3066_v53 = vadd.f32 %v3065_v13, %v3064_v31 }
 0x1ac   : > { %v4613_v8 = vadd.f32 %v3127_v0, %v4521_v39  ;;  %v3067_v44 = vpop.f32.mrf.mxu1 }
 0x1ad   : > { %v3129_v5 = vpop.f32.mrf.mxu0  ;;  %v4616_v1 = vadd.f32 %v3066_v53, %v4440_v47 }
 0x1ae   : > { %v3130_v36 = vadd.f32 %v3129_v5, %v3128_v9  ;;  %v3068_v29 = vpop.f32.mrf.mxu1 }
 0x1af   : > { %v3131_v63 = vpop.f32.mrf.mxu0  ;;  %v3069_v42 = vadd.f32 %v3068_v29, %v3067_v44 }
 0x1b0   : > { %v4619_v30 = vadd.f32 %v3130_v36, %v4526_v7  ;;  %v3070_v50 = vpop.f32.mrf.mxu1 }
 0x1b1   : > { %v3132_v56 = vpop.f32.mrf.mxu0  ;;  %v4622_v39 = vadd.f32 %v3069_v42, %v4445_v22 }
 0x1b2   : > { %v3133_v49 = vadd.f32 %v3132_v56, %v3131_v63  ;;  %v3071_v51 = vpop.f32.mrf.mxu1 }
 0x1b3   : > { %v3134_v54 = vpop.f32.mrf.mxu0  ;;  %v3072_v62 = vadd.f32 %v3071_v51, %v3070_v50 }
 0x1b4   : > { %v4625_v23 = vadd.f32 %v3133_v49, %v4531_v52  ;;  %v3073_v15 = vpop.f32.mrf.mxu1 }
 0x1b5   : > { %v3135_v58 = vpop.f32.mrf.mxu0  ;;  %v4628_v7 = vadd.f32 %v3072_v62, %v4450_v55 }
 0x1b6   : > { %v3136_v47 = vadd.f32 %v3135_v58, %v3134_v54  ;;  %v3074_v4 = vpop.f32.mrf.mxu1 }
 0x1b7   : > { %v3137_v41 = vpop.f32.mrf.mxu0  ;;  %v3075_v32 = vadd.f32 %v3074_v4, %v3073_v15 }
 0x1b8   : > { %v4631_v43 = vadd.f32 %v3136_v47, %v4536_v60  ;;  %v4633_v19 = vpop.f32.mrf.mxu1 }
 0x1b9   : > { %v3138_v10 = vpop.f32.mrf.mxu0  ;;  %v4636_v52 = vadd.f32 %v3075_v32, %v4454_v20 }
 0x1ba   : > { %v3139_v22 = vadd.f32 %v3138_v10, %v3137_v41  ;;  %v4641_v0 = vpop.f32.mrf.mxu1 }
 0x1bb   : > { %v3140_v35 = vpop.f32.mrf.mxu0 }
 0x1bc   : > { %v4639_v40 = vadd.f32 %v3139_v22, %v4541_v46  ;;  %v4643_v60 = vpop.f32.mrf.mxu1 }
 0x1bd   : > { %v3141_v26 = vpop.f32.mrf.mxu0 }
 0x1be   : > { %v3142_v55 = vadd.f32 %v3141_v26, %v3140_v35  ;;  %v4648_v5 = vpop.f32.mrf.mxu1 }
 0x1bf   : > { %v3143_v31 = vpop.f32.mrf.mxu0 }
 0x1c0   : > { %v4646_v9 = vadd.f32 %v3142_v55, %v4544_v6  ;;  %v4650_v20 = vpop.f32.mrf.mxu1 }
 0x1c1   : > { %v3144_v13 = vpop.f32.mrf.mxu0 }
 0x1c2   : > { %v3145_v53 = vadd.f32 %v3144_v13, %v3143_v31  ;;  %v4655_v63 = vpop.f32.mrf.mxu1 }
 0x1c3   : > { %v3146_v36 = vpop.f32.mrf.mxu0 }
 0x1c4   : > { %v4653_v46 = vadd.f32 %v3145_v53, %v4550_v14  ;;  %v4657_v42 = vpop.f32.mrf.mxu1 }
 0x1c5   : > { %v3147_v44 = vpop.f32.mrf.mxu0 }
 0x1c6   : > { %4905 = vst [vmem:[#allocation6_spill] sm:$0xff] %v4653_v46  ;;  %v3148_v29 = vadd.f32 %v3147_v44, %v3146_v36  ;;  %v4662_v50 = vpop.f32.mrf.mxu1 }
 0x1c7   : > { %v3149_v56 = vpop.f32.mrf.mxu0 }
 0x1c8   : > { %v4660_v6 = vadd.f32 %v3148_v29, %v4556_v38  ;;  %v4664_v58 = vpop.f32.mrf.mxu1 }
 0x1c9   : > { %v3150_v49 = vpop.f32.mrf.mxu0 }
 0x1ca   : > { %v3151_v54 = vadd.f32 %v3150_v49, %v3149_v56  ;;  %v4669_v47 = vpop.f32.mrf.mxu1 }
 0x1cb   : > { %v3152_v51 = vpop.f32.mrf.mxu0 }
 0x1cc   : > { %v4667_v14 = vadd.f32 %v3151_v54, %v4562_v28  ;;  %v4671_v4 = vpop.f32.mrf.mxu1 }
 0x1cd   : > { %v3153_v62 = vpop.f32.mrf.mxu0 }
 0x1ce   : > { %v3154_v15 = vadd.f32 %v3153_v62, %v3152_v51  ;;  %v4676_v32 = vpop.f32.mrf.mxu1 }
 0x1cf   : > { %v3155_v41 = vpop.f32.mrf.mxu0 }
 0x1d0   : > { %v4674_v38 = vadd.f32 %v3154_v15, %v4568_v18  ;;  %v4678_v26 = vpop.f32.mrf.mxu1 }
 0x1d1   : > { %v3156_v10 = vpop.f32.mrf.mxu0 }
 0x1d2   : > { %4906 = vst [vmem:[#allocation7_spill] sm:$0xff] %v4674_v38  ;;  %v3157_v22 = vadd.f32 %v3156_v10, %v3155_v41  ;;  %v4683_v31 = vpop.f32.mrf.mxu1 }
 0x1d3   : > { %v3158_v35 = vpop.f32.mrf.mxu0 }
 0x1d4   : > { %v4681_v28 = vadd.f32 %v3157_v22, %v4574_v16  ;;  %v4685_v36 = vpop.f32.mrf.mxu1 }
 0x1d5   : > { %v3159_v55 = vpop.f32.mrf.mxu0 }
 0x1d6   : > { %4907 = vst [vmem:[#allocation8_spill] sm:$0xff] %v4681_v28  ;;  %v3160_v13 = vadd.f32 %v3159_v55, %v3158_v35  ;;  %v4690_v29 = vpop.f32.mrf.mxu1 }
 0x1d7   : > { %v3161_v53 = vpop.f32.mrf.mxu0 }
 0x1d8   : > { %v4688_v18 = vadd.f32 %v3160_v13, %v4580_v24  ;;  %v4692_v54 = vpop.f32.mrf.mxu1 }
 0x1d9   : > { %v3162_v44 = vpop.f32.mrf.mxu0 }
 0x1da   : > { %4908 = vst [vmem:[#allocation9_spill] sm:$0xff] %v4688_v18  ;;  %v3163_v56 = vadd.f32 %v3162_v44, %v3161_v53  ;;  %v4697_v62 = vpop.f32.mrf.mxu1 }
 0x1db   : > { %v3164_v49 = vpop.f32.mrf.mxu0 }
 0x1dc   : > { %v4695_v16 = vadd.f32 %v3163_v56, %v4586_v17  ;;  %v4699_v10 = vpop.f32.mrf.mxu1 }
 0x1dd   : > { %v3165_v51 = vpop.f32.mrf.mxu0 }
 0x1de   : > { %4909 = vst [vmem:[#allocation10_spill] sm:$0xff] %v4695_v16  ;;  %v3166_v15 = vadd.f32 %v3165_v51, %v3164_v49  ;;  %v4704_v35 = vpop.f32.mrf.mxu1 }
 0x1df   : > { %v3167_v41 = vpop.f32.mrf.mxu0 }
 0x1e0   : > { %v4702_v24 = vadd.f32 %v3166_v15, %v4592_v34  ;;  %v4706_v53 = vpop.f32.mrf.mxu1 }
 0x1e1   : > { %v3168_v22 = vpop.f32.mrf.mxu0 }
 0x1e2   : > { %4910 = vst [vmem:[#allocation11_spill] sm:$0xff] %v4702_v24  ;;  %v3169_v55 = vadd.f32 %v3168_v22, %v3167_v41  ;;  %v4711_v56 = vpop.f32.mrf.mxu1 }
 0x1e3   : > { %v3170_v13 = vpop.f32.mrf.mxu0 }
 0x1e4   : > { %v4709_v17 = vadd.f32 %v3169_v55, %v4598_v25  ;;  %v4713_v28 = vpop.f32.mrf.mxu1 }
 0x1e5   : > { %v3171_v44 = vpop.f32.mrf.mxu0 }
 0x1e6   : > { %4911 = vst [vmem:[#allocation12_spill] sm:$0xff] %v4709_v17  ;;  %v3172_v49 = vadd.f32 %v3171_v44, %v3170_v13  ;;  %v4718_v24 = vpop.f32.mrf.mxu1 }
 0x1e7   : > { %v3173_v51 = vpop.f32.mrf.mxu0 }
 0x1e8   : > { %v4716_v34 = vadd.f32 %v3172_v49, %v4604_v61  ;;  %v4720_v16 = vpop.f32.mrf.mxu1 }
 0x1e9   : > { %v3174_v15 = vpop.f32.mrf.mxu0 }
 0x1ea   : > { %4912 = vst [vmem:[#allocation13_spill] sm:$0xff] %v4716_v34  ;;  %v3175_v41 = vadd.f32 %v3174_v15, %v3173_v51  ;;  %v4725_v17 = vpop.f32.mrf.mxu1 }
 0x1eb   : > { %v3176_v22 = vpop.f32.mrf.mxu0 }
 0x1ec   : > { %v4723_v25 = vadd.f32 %v3175_v41, %v4610_v3  ;;  %v4727_v38 = vpop.f32.mrf.mxu1 }
 0x1ed   : > { %v3177_v55 = vpop.f32.mrf.mxu0 }
 0x1ee   : > { %4913 = vst [vmem:[#allocation14_spill] sm:$0xff] %v4723_v25  ;;  %v3178_v13 = vadd.f32 %v3177_v55, %v3176_v22  ;;  %v4732_v34 = vpop.f32.mrf.mxu1  ;;  %v3212_v22 = vadd.f32 %v4655_v63, %v4650_v20 }
 0x1ef   : > { %v3179_v44 = vpop.f32.mrf.mxu0 }
 0x1f0   : > { %v4730_v61 = vadd.f32 %v3178_v13, %v4616_v1  ;;  %v4734_v18 = vpop.f32.mrf.mxu1 }
 0x1f1   : > { %v3180_v49 = vpop.f32.mrf.mxu0 }
 0x1f2   : > { %4914 = vst [vmem:[#allocation15_spill] sm:$0xff] %v4730_v61  ;;  %v3181_v51 = vadd.f32 %v3180_v49, %v3179_v44  ;;  %v4739_v25 = vpop.f32.mrf.mxu1  ;;  %v3206_v44 = vadd.f32 %v4641_v0, %v4633_v19  ;;  %v3209_v19 = vadd.f32 %v4648_v5, %v4643_v60 }
 0x1f3   : > { %v3182_v15 = vpop.f32.mrf.mxu0 }
 0x1f4   : > { %v4737_v3 = vadd.f32 %v3181_v51, %v4622_v39  ;;  %v4743_v13 = vpop.f32.mrf.mxu1  ;;  %v3215_v39 = vadd.f32 %v4662_v50, %v4657_v42  ;;  %v2310_v5 = vadd.f32 %v3209_v19, %v4553_v12 }
 0x1f5   : > { %v3183_v41 = vpop.f32.mrf.mxu0 }
 0x1f6   : > { %4915 = vst [vmem:[#allocation16_spill] sm:$0xff] %v4737_v3  ;;  %v3184_v55 = vadd.f32 %v3183_v41, %v3182_v15  ;;  %v4750_v46 = vpop.f32.mrf.mxu1  ;;  %v2315_v3 = vadd.f32 %v3212_v22, %v4559_v21  ;;  %v2307_v21 = vadd.f32 %v3206_v44, %v4547_v27  ;;  %v2318_v41 = vadd.f32 %v3215_v39, %v4565_v57 }
 0x1f7   : > { %v3185_v1 = vpop.f32.mrf.mxu0  ;;  %v3218_v27 = vadd.f32 %v4669_v47, %v4664_v58  ;;  %v3221_v58 = vadd.f32 %v4676_v32, %v4671_v4  ;;  %v3236_v47 = vadd.f32 %v4711_v56, %v4706_v53 }
 0x1f8   : > { %v4748_v49 = vadd.f32 %v3184_v55, %v4628_v7  ;;  %v4755_v20 = vpop.f32.mrf.mxu1 }
 0x1f9   : > { %v3186_v61 = vpop.f32.mrf.mxu0 }
 0x1fa   : > { %v3187_v51 = vadd.f32 %v3186_v61, %v3185_v1  ;;  %v4770_v42 = vpop.f32.mrf.mxu1  ;;  %v3224_v61 = vadd.f32 %v4683_v31, %v4678_v26  ;;  %v3227_v26 = vadd.f32 %v4690_v29, %v4685_v36 }
 0x1fb   : > { %v3342_v7 = vpop.f32.mrf.mxu0 }
 0x1fc   : > { %v4767_v0 = vadd.f32 %v3187_v51, %v4636_v52  ;;  %v2476_v63 = vadd.f32 %v3342_v7, %v2315_v3  ;;  %v4776_v22 = vpop.f32.mrf.mxu1  ;;  %v2331_v57 = vadd.f32 %v3224_v61, %v4583_v2  ;;  %v2323_v2 = vadd.f32 %v3218_v27, %v4571_v45 }
 0x1fd   : > { %v2467_v50 = vpop.f32.mrf.mxu0  ;;  %v2334_v61 = vadd.f32 %v3227_v26, %v4589_v59  ;;  %v2347_v59 = vadd.f32 %v3236_v47, %v4607_v11 }
 0x1fe   : > { %2596 = vst [vmem:[%s4762_s17 + $0x10] sm:$0xff] %v2476_v63  ;;  %v2468_v15 = vadd.f32 %v2467_v50, %v2307_v21  ;;  %v4782_v3 = vpop.f32.mrf.mxu1  ;;  %v2665_v19 = vmul.f32 %v2476_v63, %v2476_v63 }
 0x1ff   : > { %v3343_v60 = vpop.f32.mrf.mxu0 }
 0x200   : > { %2594 = vst [vmem:[%s4762_s17] sm:$0xff] %v2468_v15  ;;  %v2479_v52 = vadd.f32 %v3343_v60, %v2318_v41  ;;  %v4788_v1 = vpop.f32.mrf.mxu1  ;;  %v2663_v39 = vmul.f32 %v2468_v15, %v2468_v15 }
 0x201   : > { %v2470_v55 = vpop.f32.mrf.mxu0 }
 0x202   : > { %2597 = vst [vmem:[%s4762_s17 + $0x18] sm:$0xff] %v2479_v52  ;;  %v2471_v31 = vadd.f32 %v2470_v55, %v2310_v5  ;;  %v4795_v36 = vpop.f32.mrf.mxu1  ;;  %v2666_v53 = vmul.f32 %v2479_v52, %v2479_v52 }
 0x203   : > { %v3346_v44 = vpop.f32.mrf.mxu0 }
 0x204   : > { %2595 = vst [vmem:[%s4762_s17 + $0x8] sm:$0xff] %v2471_v31  ;;  %v2626_v12 = vadd.f32 %v2471_v31, %v2468_v15  ;;  %v2664_v51 = vmul.f32 %v2471_v31, %v2471_v31  ;;  %v2492_v7 = vadd.f32 %v3346_v44, %v2331_v57  ;;  %v3230_v15 = vadd.f32 %v4697_v62, %v4692_v54  ;;  %v4802_v4 = vpop.f32.mrf.mxu1 }
 0x205   : > { %v2483_v29 = vpop.f32.mrf.mxu0  ;;  %v3239_v54 = vadd.f32 %v4718_v24, %v4713_v28  ;;  %v3233_v44 = vadd.f32 %v4704_v35, %v4699_v10 }
 0x206   : > { %v2627_v21 = vadd.f32 %v2626_v12, %v2476_v63  ;;  %v2695_v50 = vadd.f32 %v2664_v51, %v2663_v39  ;;  %2600 = vst [vmem:[%s4762_s17 + $0x30] sm:$0xff] %v2492_v7  ;;  %v2484_v41 = vadd.f32 %v2483_v29, %v2323_v2  ;;  %v4805_v45 = vpop.f32.mrf.mxu1  ;;  %v2326_v63 = vadd.f32 %v3221_v58, %v4577_v37 }
 0x207   : > { %v3347_v32 = vpop.f32.mrf.mxu0  ;;  %v2339_v12 = vadd.f32 %v3230_v15, %v4595_v33  ;;  %v3248_v58 = vadd.f32 %v4739_v25, %v4734_v18  ;;  %v2350_v2 = vadd.f32 %v3239_v54, %v4613_v8  ;;  %v2669_v10 = vmul.f32 %v2492_v7, %v2492_v7 }
 0x208   : > { %v2696_v56 = vadd.f32 %v2695_v50, %v2665_v19  ;;  %v2628_v60 = vadd.f32 %v2627_v21, %v2479_v52  ;;  %v2495_v5 = vadd.f32 %v3347_v32, %v2334_v61  ;;  %2598 = vst [vmem:[%s4762_s17 + $0x20] sm:$0xff] %v2484_v41  ;;  %v2667_v55 = vmul.f32 %v2484_v41, %v2484_v41  ;;  %v4812_v52 = vpop.f32.mrf.mxu1 }
 0x209   : > { %v2486_v27 = vpop.f32.mrf.mxu0  ;;  %v3242_v21 = vadd.f32 %v4725_v17, %v4720_v16  ;;  %v2342_v61 = vadd.f32 %v3233_v44, %v4601_v48 }
 0x20a   : > { %v2629_v62 = vadd.f32 %v2628_v60, %v2484_v41  ;;  %v2697_v26 = vadd.f32 %v2696_v56, %v2666_v53  ;;  %2601 = vst [vmem:[%s4762_s17 + $0x38] sm:$0xff] %v2495_v5  ;;  %v2487_v31 = vadd.f32 %v2486_v27, %v2326_v63  ;;  %v4818_v24 = vpop.f32.mrf.mxu1  ;;  %v2670_v18 = vmul.f32 %v2495_v5, %v2495_v5 }
 0x20b   : > { %v3350_v57 = vpop.f32.mrf.mxu0  ;;  %v2363_v53 = vadd.f32 %v3248_v58, %v4631_v43  ;;  %v3245_v63 = vadd.f32 %v4732_v34, %v4727_v38  ;;  %v3260_v43 = vadd.f32 %v4795_v36, %v4788_v1 }
 0x20c   : > { %v2698_v39 = vadd.f32 %v2697_v26, %v2667_v55  ;;  %v2508_v37 = vadd.f32 %v3350_v57, %v2347_v59  ;;  %2599 = vst [vmem:[%s4762_s17 + $0x28] sm:$0xff] %v2487_v31  ;;  %v2630_v11 = vadd.f32 %v2629_v62, %v2487_v31  ;;  %v2668_v28 = vmul.f32 %v2487_v31, %v2487_v31  ;;  %v4824_v19 = vpop.f32.mrf.mxu1 }
 0x20d   : > { %v2499_v51 = vpop.f32.mrf.mxu0  ;;  %v2355_v59 = vadd.f32 %v3242_v21, %v4619_v30  ;;  %v3254_v30 = vadd.f32 %v4770_v42, %v4755_v20  ;;  %v2379_v58 = vadd.f32 %v3260_v43, %v4660_v6 }
 0x20e   : > { %2604 = vst [vmem:[%s4762_s17 + $0x50] sm:$0xff] %v2508_v37  ;;  %v2500_v47 = vadd.f32 %v2499_v51, %v2339_v12  ;;  %v2631_v35 = vadd.f32 %v2630_v11, %v2492_v7  ;;  %v2699_v29 = vadd.f32 %v2698_v39, %v2668_v28  ;;  %v4830_v41 = vpop.f32.mrf.mxu1  ;;  %v3251_v7 = vadd.f32 %v4750_v46, %v4743_v13 }
 0x20f   : > { %v3351_v33 = vpop.f32.mrf.mxu0  ;;  %v2673_v31 = vmul.f32 %v2508_v37, %v2508_v37  ;;  %v2358_v12 = vadd.f32 %v3245_v63, %v4625_v23  ;;  %v3257_v23 = vadd.f32 %v4782_v3, %v4776_v22 }
 0x210   : > { %2602 = vst [vmem:[%s4762_s17 + $0x40] sm:$0xff] %v2500_v47  ;;  %v2511_v50 = vadd.f32 %v3351_v33, %v2350_v2  ;;  %v2700_v25 = vadd.f32 %v2699_v29, %v2669_v10  ;;  %v2632_v15 = vadd.f32 %v2631_v35, %v2495_v5  ;;  %v2671_v17 = vmul.f32 %v2500_v47, %v2500_v47  ;;  %v3270_v60 = vpop.f32.mrf.mxu1 }
 0x211   : > { %v2502_v8 = vpop.f32.mrf.mxu0  ;;  %v2366_v26 = vadd.f32 %v3251_v7, %v4639_v40  ;;  %v3263_v40 = vadd.f32 %v4805_v45, %v4802_v4  ;;  %v2371_v33 = vadd.f32 %v3254_v30, %v4646_v9  ;;  %v3266_v7 = vadd.f32 %v4818_v24, %v4812_v52 }
 0x212   : > { %2605 = vst [vmem:[%s4762_s17 + $0x58] sm:$0xff] %v2511_v50  ;;  %v2503_v32 = vadd.f32 %v2502_v8, %v2342_v61  ;;  %v2633_v16 = vadd.f32 %v2632_v15, %v2500_v47  ;;  %v2701_v56 = vadd.f32 %v2700_v25, %v2670_v18  ;;  %v3271_v54 = vpop.f32.mrf.mxu1  ;;  %v2674_v11 = vmul.f32 %v2511_v50, %v2511_v50 }
 0x213   : > { %v3354_v48 = vpop.f32.mrf.mxu0  ;;  %v3272_v6 = vadd.f32 %v3271_v54, %v3270_v60  ;;  %v2382_v18 = vadd.f32 %v3263_v40, %v4667_v14  ;;  %v3269_v54 = vadd.f32 %v4830_v41, %v4824_v19  ;;  %v4920_v40 = vld [vmem:[#allocation8_spill] sm:$0xff] }
 0x214   : > { %2603 = vst [vmem:[%s4762_s17 + $0x48] sm:$0xff] %v2503_v32  ;;  %v2672_v5 = vmul.f32 %v2503_v32, %v2503_v32  ;;  %v2524_v27 = vadd.f32 %v3354_v48, %v2363_v53  ;;  %v2702_v46 = vadd.f32 %v2701_v56, %v2671_v17  ;;  %v2634_v13 = vadd.f32 %v2633_v16, %v2503_v32  ;;  %v3273_v57 = vpop.f32.mrf.mxu1  ;;  %v4916_v32 = vld [vmem:[#allocation6_spill] sm:$0xff] }
 0x215   : > { %v2515_v62 = vpop.f32.mrf.mxu0  ;;  %v2374_v53 = vadd.f32 %v3257_v23, %v4916_v32 }
 0x216   : > { %2608 = vst [vmem:[%s4762_s17 + $0x70] sm:$0xff] %v2524_v27  ;;  %v2516_v55 = vadd.f32 %v2515_v62, %v2355_v59  ;;  %v2635_v38 = vadd.f32 %v2634_v13, %v2508_v37  ;;  %v2703_v34 = vadd.f32 %v2702_v46, %v2672_v5  ;;  %v3274_v28 = vpop.f32.mrf.mxu1  ;;  %v2677_v25 = vmul.f32 %v2524_v27, %v2524_v27  ;;  %v4917_v5 = vld [vmem:[#allocation9_spill] sm:$0xff] }
 0x217   : > { %v3355_v44 = vpop.f32.mrf.mxu0  ;;  %v3275_v14 = vadd.f32 %v3274_v28, %v3273_v57 }
 0x218   : > { %2606 = vst [vmem:[%s4762_s17 + $0x60] sm:$0xff] %v2516_v55  ;;  %v2527_v39 = vadd.f32 %v3355_v44, %v2366_v26  ;;  %v2704_v1 = vadd.f32 %v2703_v34, %v2673_v31  ;;  %v2636_v36 = vadd.f32 %v2635_v38, %v2511_v50  ;;  %v2675_v20 = vmul.f32 %v2516_v55, %v2516_v55  ;;  %v3276_v2 = vpop.f32.mrf.mxu1 }
 0x219   : > { %v2518_v51 = vpop.f32.mrf.mxu0 }
 0x21a   : > { %2609 = vst [vmem:[%s4762_s17 + $0x78] sm:$0xff] %v2527_v39  ;;  %v2519_v37 = vadd.f32 %v2518_v51, %v2358_v12  ;;  %v2637_v47 = vadd.f32 %v2636_v36, %v2516_v55  ;;  %v2705_v42 = vadd.f32 %v2704_v1, %v2674_v11  ;;  %v3277_v21 = vpop.f32.mrf.mxu1  ;;  %v2678_v16 = vmul.f32 %v2527_v39, %v2527_v39  ;;  %v4918_v55 = vld [vmem:[#allocation7_spill] sm:$0xff] }
 0x21b   : > { %v3358_v10 = vpop.f32.mrf.mxu0  ;;  %v2387_v26 = vadd.f32 %v3266_v7, %v4918_v55  ;;  %v3278_v28 = vadd.f32 %v3277_v21, %v3276_v2 }
 0x21c   : > { %2607 = vst [vmem:[%s4762_s17 + $0x68] sm:$0xff] %v2519_v37  ;;  %v2676_v35 = vmul.f32 %v2519_v37, %v2519_v37  ;;  %v2540_v29 = vadd.f32 %v3358_v10, %v2379_v58  ;;  %v2706_v4 = vadd.f32 %v2705_v42, %v2675_v20  ;;  %v2638_v45 = vadd.f32 %v2637_v47, %v2519_v37  ;;  %v3279_v22 = vpop.f32.mrf.mxu1 }
 0x21d   : > { %v2531_v50 = vpop.f32.mrf.mxu0  ;;  %v2390_v37 = vadd.f32 %v3269_v54, %v4920_v40 }
 0x21e   : > { %2612 = vst [vmem:[%s4762_s17 + $0x90] sm:$0xff] %v2540_v29  ;;  %v2532_v61 = vadd.f32 %v2531_v50, %v2371_v33  ;;  %v2639_v15 = vadd.f32 %v2638_v45, %v2524_v27  ;;  %v2707_v8 = vadd.f32 %v2706_v4, %v2676_v35  ;;  %v3280_v60 = vpop.f32.mrf.mxu1  ;;  %v2395_v27 = vadd.f32 %v3272_v6, %v4917_v5  ;;  %v4921_v33 = vld [vmem:[#allocation13_spill] sm:$0xff]  ;;  %v4924_v5 = vld [vmem:[#allocation12_spill] sm:$0xff] }
 0x21f   : > { %v3359_v3 = vpop.f32.mrf.mxu0  ;;  %v2681_v11 = vmul.f32 %v2540_v29, %v2540_v29  ;;  %v3281_v6 = vadd.f32 %v3280_v60, %v3279_v22 }
 0x220   : > { %2610 = vst [vmem:[%s4762_s17 + $0x80] sm:$0xff] %v2532_v61  ;;  %v2543_v9 = vadd.f32 %v3359_v3, %v2382_v18  ;;  %v2708_v17 = vadd.f32 %v2707_v8, %v2677_v25  ;;  %v2640_v56 = vadd.f32 %v2639_v15, %v2527_v39  ;;  %v2679_v46 = vmul.f32 %v2532_v61, %v2532_v61  ;;  %v3282_v52 = vpop.f32.mrf.mxu1  ;;  %v4919_v39 = vld [vmem:[#allocation10_spill] sm:$0xff]  ;;  %v4922_v25 = vld [vmem:[#allocation11_spill] sm:$0xff] }
 0x221   : > { %v2534_v48 = vpop.f32.mrf.mxu0  ;;  %v2398_v12 = vadd.f32 %v3275_v14, %v4919_v39  ;;  %v2403_v15 = vadd.f32 %v3278_v28, %v4922_v25 }
 0x222   : > { %2613 = vst [vmem:[%s4762_s17 + $0x98] sm:$0xff] %v2543_v9  ;;  %v2535_v63 = vadd.f32 %v2534_v48, %v2374_v53  ;;  %v2641_v59 = vadd.f32 %v2640_v56, %v2532_v61  ;;  %v2709_v13 = vadd.f32 %v2708_v17, %v2678_v16  ;;  %v3283_v34 = vpop.f32.mrf.mxu1  ;;  %v2682_v58 = vmul.f32 %v2543_v9, %v2543_v9  ;;  %v4923_v53 = vld [vmem:[#allocation14_spill] sm:$0xff] }
 0x223   : > { %v3362_v24 = vpop.f32.mrf.mxu0  ;;  %v3284_v44 = vadd.f32 %v3283_v34, %v3282_v52 }
 0x224   : > { %2611 = vst [vmem:[%s4762_s17 + $0x88] sm:$0xff] %v2535_v63  ;;  %v2680_v62 = vmul.f32 %v2535_v63, %v2535_v63  ;;  %v2556_v43 = vadd.f32 %v3362_v24, %v2395_v27  ;;  %v2710_v31 = vadd.f32 %v2709_v13, %v2679_v46  ;;  %v2642_v38 = vadd.f32 %v2641_v59, %v2535_v63  ;;  %v3285_v19 = vpop.f32.mrf.mxu1 }
 0x225   : > { %v2547_v57 = vpop.f32.mrf.mxu0  ;;  %v2406_v27 = vadd.f32 %v3281_v6, %v4924_v5 }
 0x226   : > { %2616 = vst [vmem:[%s4762_s17 + $0xb0] sm:$0xff] %v2556_v43  ;;  %v2548_v30 = vadd.f32 %v2547_v57, %v2387_v26  ;;  %v2643_v1 = vadd.f32 %v2642_v38, %v2540_v29  ;;  %v2711_v36 = vadd.f32 %v2710_v31, %v2680_v62  ;;  %v3286_v42 = vpop.f32.mrf.mxu1  ;;  %v2411_v29 = vadd.f32 %v3284_v44, %v4921_v33  ;;  %v4925_v57 = vld [vmem:[#allocation15_spill] sm:$0xff] }
 0x227   : > { %v3363_v41 = vpop.f32.mrf.mxu0  ;;  %v3287_v23 = vadd.f32 %v3286_v42, %v3285_v19  ;;  %v2685_v17 = vmul.f32 %v2556_v43, %v2556_v43 }
 0x228   : > { %2614 = vst [vmem:[%s4762_s17 + $0xa0] sm:$0xff] %v2548_v30  ;;  %v2559_v51 = vadd.f32 %v3363_v41, %v2398_v12  ;;  %v2712_v47 = vadd.f32 %v2711_v36, %v2681_v11  ;;  %v2644_v20 = vadd.f32 %v2643_v1, %v2543_v9  ;;  %v2683_v45 = vmul.f32 %v2548_v30, %v2548_v30  ;;  %v3288_v2 = vpop.f32.mrf.mxu1 }
 0x229   : > { %v2550_v10 = vpop.f32.mrf.mxu0  ;;  %v2414_v16 = vadd.f32 %v3287_v23, %v4923_v53 }
 0x22a   : > { %2617 = vst [vmem:[%s4762_s17 + $0xb8] sm:$0xff] %v2559_v51  ;;  %v2551_v35 = vadd.f32 %v2550_v10, %v2390_v37  ;;  %v2645_v4 = vadd.f32 %v2644_v20, %v2548_v30  ;;  %v2713_v50 = vadd.f32 %v2712_v47, %v2682_v58  ;;  %v3289_v7 = vpop.f32.mrf.mxu1  ;;  %v2686_v59 = vmul.f32 %v2559_v51, %v2559_v51  ;;  %v4926_v58 = vld [vmem:[#allocation16_spill] sm:$0xff] }
 0x22b   : > { %v3366_v21 = vpop.f32.mrf.mxu0  ;;  %v3290_v60 = vadd.f32 %v3289_v7, %v3288_v2 }
 0x22c   : > { %2615 = vst [vmem:[%s4762_s17 + $0xa8] sm:$0xff] %v2551_v35  ;;  %v2684_v61 = vmul.f32 %v2551_v35, %v2551_v35  ;;  %v2572_v18 = vadd.f32 %v3366_v21, %v2411_v29  ;;  %v2714_v8 = vadd.f32 %v2713_v50, %v2683_v45  ;;  %v2646_v3 = vadd.f32 %v2645_v4, %v2551_v35  ;;  %v3291_v14 = vpop.f32.mrf.mxu1 }
 0x22d   : > { %v2563_v9 = vpop.f32.mrf.mxu0  ;;  %v2419_v44 = vadd.f32 %v3290_v60, %v4925_v57 }
 0x22e   : > { %2620 = vst [vmem:[%s4762_s17 + $0xd0] sm:$0xff] %v2572_v18  ;;  %v2564_v32 = vadd.f32 %v2563_v9, %v2403_v15  ;;  %v2647_v56 = vadd.f32 %v2646_v3, %v2556_v43  ;;  %v2715_v48 = vadd.f32 %v2714_v8, %v2684_v61  ;;  %v3292_v52 = vpop.f32.mrf.mxu1  ;;  %v2689_v19 = vmul.f32 %v2572_v18, %v2572_v18 }
 0x22f   : > { %v3367_v22 = vpop.f32.mrf.mxu0  ;;  %v3293_v38 = vadd.f32 %v3292_v52, %v3291_v14 }
 0x230   : > { %2618 = vst [vmem:[%s4762_s17 + $0xc0] sm:$0xff] %v2564_v32  ;;  %v2575_v63 = vadd.f32 %v3367_v22, %v2414_v16  ;;  %v2716_v46 = vadd.f32 %v2715_v48, %v2685_v17  ;;  %v2648_v13 = vadd.f32 %v2647_v56, %v2559_v51  ;;  %v2687_v55 = vmul.f32 %v2564_v32, %v2564_v32  ;;  %v3294_v43 = vpop.f32.mrf.mxu1 }
 0x231   : > { %v2566_v24 = vpop.f32.mrf.mxu0  ;;  %v2422_v47 = vadd.f32 %v3293_v38, %v4926_v58 }
 0x232   : > { %2621 = vst [vmem:[%s4762_s17 + $0xd8] sm:$0xff] %v2575_v63  ;;  %v2567_v54 = vadd.f32 %v2566_v24, %v2406_v27  ;;  %v2649_v62 = vadd.f32 %v2648_v13, %v2564_v32  ;;  %v2717_v26 = vadd.f32 %v2716_v46, %v2686_v59  ;;  %v3295_v12 = vpop.f32.mrf.mxu1  ;;  %v2690_v20 = vmul.f32 %v2575_v63, %v2575_v63 }
 0x233   : > { %v3370_v31 = vpop.f32.mrf.mxu0  ;;  %v3296_v1 = vadd.f32 %v3295_v12, %v3294_v43 }
 0x234   : > { %2619 = vst [vmem:[%s4762_s17 + $0xc8] sm:$0xff] %v2567_v54  ;;  %v2688_v34 = vmul.f32 %v2567_v54, %v2567_v54  ;;  %v2718_v30 = vadd.f32 %v2717_v26, %v2687_v55  ;;  %v2650_v39 = vadd.f32 %v2649_v62, %v2567_v54  ;;  %v3297_v51 = vpop.f32.mrf.mxu1 }
 0x235   : > { %v2579_v11 = vpop.f32.mrf.mxu0  ;;  %v2427_v37 = vadd.f32 %v3296_v1, %v4748_v49 }
 0x236   : > { %v2580_v36 = vadd.f32 %v2579_v11, %v2419_v44  ;;  %v2651_v41 = vadd.f32 %v2650_v39, %v2572_v18  ;;  %v2719_v28 = vadd.f32 %v2718_v30, %v2688_v34  ;;  %v3298_v23 = vpop.f32.mrf.mxu1 }
 0x237   : > { %v3371_v40 = vpop.f32.mrf.mxu0  ;;  %v2588_v33 = vadd.f32 %v3370_v31, %v2427_v37  ;;  %v3299_v29 = vadd.f32 %v3298_v23, %v3297_v51 }
 0x238   : > { %2622 = vst [vmem:[%s4762_s17 + $0xe0] sm:$0xff] %v2580_v36  ;;  %v2720_v42 = vadd.f32 %v2719_v28, %v2689_v19  ;;  %v2652_v10 = vadd.f32 %v2651_v41, %v2575_v63  ;;  %v2691_v50 = vmul.f32 %v2580_v36, %v2580_v36 }
 0x239   : > { %v2582_v35 = vpop.f32.mrf.mxu0  ;;  %2624 = vst [vmem:[%s4762_s17 + $0xf0] sm:$0xff] %v2588_v33  ;;  %v2430_v21 = vadd.f32 %v3299_v29, %v4767_v0  ;;  %v2693_v25 = vmul.f32 %v2588_v33, %v2588_v33 }
 0x23a   : > { %v2583_v4 = vadd.f32 %v2582_v35, %v2422_v47  ;;  %v2653_v45 = vadd.f32 %v2652_v10, %v2580_v36  ;;  %v2721_v2 = vadd.f32 %v2720_v42, %v2690_v20 }
 0x23b   : > { %v2591_v18 = vadd.f32 %v3371_v40, %v2430_v21 }
 0x23c   : > { %2623 = vst [vmem:[%s4762_s17 + $0xe8] sm:$0xff] %v2583_v4  ;;  %v2692_v49 = vmul.f32 %v2583_v4, %v2583_v4  ;;  %v2722_v6 = vadd.f32 %v2721_v2, %v2691_v50  ;;  %v2654_v61 = vadd.f32 %v2653_v45, %v2583_v4 }
 0x23d   : > { %2625 = vst [vmem:[%s4762_s17 + $0xf8] sm:$0xff] %v2591_v18  ;;  %v2694_v3 = vmul.f32 %v2591_v18, %v2591_v18 }
 0x23e   : > { %v2655_v15 = vadd.f32 %v2654_v61, %v2588_v33  ;;  %v2723_v8 = vadd.f32 %v2722_v6, %v2692_v49 }
 0x240   : > { %v2656_v7 = vadd.f32 %v2655_v15, %v2591_v18  ;;  %v2724_v9 = vadd.f32 %v2723_v8, %v2693_v25 }
 0x242   : > { %v2657_v32 = vrot.slane %v2656_v7, 4  ;;  %v2725_v53 = vadd.f32 %v2724_v9, %v2694_v3 }
 0x244   : > { %v2658_v16 = vadd.f32 %v2657_v32, %v2656_v7  ;;  %v2726_v17 = vrot.slane %v2725_v53, 4 }
 0x246   : > { %v2659_v56 = vrot.slane %v2658_v16, 2  ;;  %v2727_v48 = vadd.f32 %v2726_v17, %v2725_v53 }
 0x248   : > { %v2660_v0 = vadd.f32 %v2659_v56, %v2658_v16  ;;  %v2728_v14 = vrot.slane %v2727_v48, 2 }
 0x24a   : > { %v2661_v22 = vrot.slane %v2660_v0, 1  ;;  %v2729_v60 = vadd.f32 %v2728_v14, %v2727_v48 }
 0x24c   : > { %v2730_v63 = vrot.slane %v2729_v60, 1  ;;  %v2662_v5 = vadd.f32 %v2661_v22, %v2660_v0 }
 0x24e   : > { %v2731_v27 = vadd.f32 %v2730_v63, %v2729_v60 }
 0x250   : > { %v2733_v59 = vsel %vm2732_vm2, %v2662_v5, %v2731_v27 }
 0x251   : > { %v2734_v46 = vsel %vm710_vm0, %v2733_v59, 0.0 }
 0x252   : > { %2735 = vst [vmem:[%s250_s23] sm:$0xff] %v2734_v46 }
 0x253 PF: > { %s17_s18 = sadd.s32 1, %s3463_s18  }
 0x254   : > { %p14_p1 = scmp.ge.s32.totalorder %s17_s18, 4  }
 0x256   :  { %16 = sbr.rel (!%p14_p1) target bundleno = 1 (0x1), region = 84 }
 0x25b   :  { %2771 = vsyncpa [#allocation4], 1 }
 0x25c   :  { %2773 = vsyncpa [#allocation4 + $0x1], 1 }

</bundles_post_ra>
